<compile_context>
chip_gen: v7x
topology: tpu7x:2x2x1
jax: 0.10.0
libtpu: 0.0.40
codegen_flags: <defaults>
</compile_context>

<pallas_src>
import functools

import jax
import jax.numpy as jnp
from jax.experimental import pallas as pl
from jax.experimental.pallas import tpu as pltpu

# Logical layer widths of the PyTorch Autoencoder: enc1..enc5, dec1..dec5
DIMS = [784, 256, 128, 64, 32, 16, 32, 64, 128, 256, 784]
NUM_LAYERS = len(DIMS) - 1  # 10
LANE = 128


def _round_up(n, m):
    return ((n + m - 1) // m) * m


# Lane-dense padded widths (multiples of 128): [896, 256, 128, ..., 256, 896]
PAD_DIMS = [_round_up(d, LANE) for d in DIMS]


def autoencoder_kernel(x_ref, *refs):
    """refs = (w1, b1, ..., w10, b10, out_ref).

    Weights are padded bf16 [din_pad, dout_pad] tiles fully resident in VMEM
    (~1.2 MiB total); biases are f32 [1, dout_pad].  The activation tile is a
    [bm, 896] slab.  Each layer: bf16 MXU matmul with f32 accumulation, then
    bias + ReLU in f32, fused.
    """
    out_ref = refs[-1]
    params = refs[:-1]

    h = x_ref[...].astype(jnp.bfloat16)  # single cast point for the MXU path
    for layer in range(NUM_LAYERS):
        w = params[2 * layer][...]            # bf16 [din_pad, dout_pad]
        b = params[2 * layer + 1][...]        # f32  [1, dout_pad]
        y = jnp.dot(h, w, preferred_element_type=jnp.float32) + b
        y = jnp.maximum(y, 0.0)               # ReLU (applied on ALL layers, per spec)
        h = y.astype(jnp.bfloat16) if layer + 1 < NUM_LAYERS else y
    out_ref[...] = h.astype(out_ref.dtype)


def _auto_bm(batch):
    """Pick a batch tile: big enough to fill the MXU / amortize per-step
    overhead, small enough for v7x's 64 MiB VMEM, and grid >= 2 when the
    batch allows (v7x has 2 TensorCores per chip)."""
    bm = min(1024, _round_up(batch, 8))
    if batch >= 2 * bm:
        return bm
    if batch >= 16:
        return min(bm, _round_up((batch + 1) // 2, 8))
    return bm


@functools.partial(jax.jit, static_argnames=("bm",))
def autoencoder_forward(x, prepared_params, *, bm=None):
    """x: [B, 784] float32.  prepared_params: output of prepare_params()."""
    B, F = x.shape
    assert F == DIMS[0], f"expected {DIMS[0]} input features, got {F}"
    if bm is None:
        bm = _auto_bm(B)
    assert bm % 8 == 0, "batch tile must be a multiple of 8 (sublane)"

    fin_pad, fout_pad = PAD_DIMS[0], PAD_DIMS[-1]
    b_pad = _round_up(B, bm)

    # Zero-pad batch and feature dims (lane-dense 896 = 7*128 slabs).
    xp = jnp.pad(x, ((0, b_pad - B), (0, fin_pad - F)))

    # BlockSpecs: tile the batch; padded weights/biases are full-array blocks
    # replicated (grid-invariant index_map) across the batch grid.
    in_specs = [pl.BlockSpec((bm, fin_pad), lambda i: (i, 0))]
    for layer in range(NUM_LAYERS):
        din, dout = PAD_DIMS[layer], PAD_DIMS[layer + 1]
        in_specs.append(pl.BlockSpec((din, dout), lambda i: (0, 0)))   # W (bf16)
        in_specs.append(pl.BlockSpec((1, dout), lambda i: (0, 0)))     # b (f32)
    out_spec = pl.BlockSpec((bm, fout_pad), lambda i: (i, 0))

    # Advisory cost estimate for XLA scheduling.
    flops = 2 * b_pad * sum(PAD_DIMS[l] * PAD_DIMS[l + 1] for l in range(NUM_LAYERS))
    param_bytes = sum(int(p.size) * p.dtype.itemsize for p in prepared_params)
    bytes_accessed = b_pad * (fin_pad + fout_pad) * 4 + param_bytes
    cost = pl.CostEstimate(flops=flops, transcendentals=0,
                           bytes_accessed=bytes_accessed)

    # VMEM budget: double-buffered in/out tiles + double-buffered params +
    # slack for in-kernel activation temporaries; capped well under v7x's
    # 64 MiB physical VMEM.
    tile_bytes = bm * max(fin_pad, fout_pad) * 4
    vmem_limit = min(48 << 20, 4 * tile_bytes + 2 * param_bytes + (16 << 20))

    out_pad = pl.pallas_call(
        autoencoder_kernel,
        out_shape=jax.ShapeDtypeStruct((b_pad, fout_pad), x.dtype),
        grid_spec=pltpu.PrefetchScalarGridSpec(
            num_scalar_prefetch=0,
            grid=(b_pad // bm,),
            in_specs=in_specs,
            out_specs=out_spec,
        ),
        compiler_params=pltpu.CompilerParams(
            dimension_semantics=("parallel",),
            vmem_limit_bytes=vmem_limit,
        ),
        cost_estimate=cost,
    )(xp, *prepared_params)

    return out_pad[:B, :DIMS[-1]]


def init_params(key):
    """Deterministic PyTorch-style init: U(-1/sqrt(fan_in), 1/sqrt(fan_in)).

    Returns the *logical* params: [w1 (din,dout) f32, b1 (dout,) f32, ...].
    (w is the transpose of nn.Linear.weight.)
    """
    params = []
    for layer in range(NUM_LAYERS):
        din, dout = DIMS[layer], DIMS[layer + 1]
        key, kw, kb = jax.random.split(key, 3)
        bound = 1.0 / (din ** 0.5)
        w = jax.random.uniform(kw, (din, dout), jnp.float32, -bound, bound)
        b = jax.random.uniform(kb, (dout,), jnp.float32, -bound, bound)
        params += [w, b]
    return params


def prepare_params(params):
    """Pad logical params to lane-dense shapes and cast weights to bf16.

    w: f32 (din, dout)  -> bf16 (din_pad, dout_pad), zero-padded
    b: f32 (dout,)      -> f32  (1, dout_pad),      zero-padded
    """
    prepared = []
    for layer in range(NUM_LAYERS):
        din, dout = DIMS[layer], DIMS[layer + 1]
        din_p, dout_p = PAD_DIMS[layer], PAD_DIMS[layer + 1]
        w = params[2 * layer]
        b = params[2 * layer + 1]
        w_p = jnp.pad(w, ((0, din_p - din), (0, dout_p - dout))).astype(jnp.bfloat16)
        b_p = jnp.pad(b.reshape(1, dout), ((0, 0), (0, dout_p - dout))).astype(jnp.float32)
        prepared += [w_p, b_p]
    return prepared


def reference_forward_f32(x, params):
    """Pure-f32 reference matching the PyTorch module exactly."""
    h = x
    for layer in range(NUM_LAYERS):
        w, b = params[2 * layer], params[2 * layer + 1]
        h = jnp.maximum(h @ w + b, 0.0)
    return h


def reference_forward_bf16(x, params):
    """Reference mirroring the kernel's bf16-matmul / f32-accumulate math."""
    h = x.astype(jnp.bfloat16)
    for layer in range(NUM_LAYERS):
        w = params[2 * layer].astype(jnp.bfloat16)
        b = params[2 * layer + 1]
        y = jnp.dot(h, w, preferred_element_type=jnp.float32) + b
        y = jnp.maximum(y, 0.0)
        h = y.astype(jnp.bfloat16) if layer + 1 < NUM_LAYERS else y
    return h


if __name__ == "__main__":
    key = jax.random.PRNGKey(0)
    kp, kx = jax.random.split(key)
    params = init_params(kp)
    prepared = prepare_params(params)

    B = 512  # auto-tiled as bm=256 -> grid of 2 (feeds both TCs on v7x)
    x = jax.random.uniform(kx, (B, 784), jnp.float32)  # flattened 28x28 inputs

    out = autoencoder_forward(x, prepared)
    out = jax.block_until_ready(out)
    assert out.shape == (B, 784)

    # Tight check against a reference using the same bf16-matmul math.
    ref_bf16 = reference_forward_bf16(x, params)
    assert jnp.allclose(out, ref_bf16, atol=1e-3, rtol=1e-3), \
        "mismatch vs bf16-matmul reference"

    # Looser semantic check against the pure-f32 PyTorch-equivalent forward.
    ref_f32 = reference_forward_f32(x, params)
    assert jnp.allclose(out, ref_f32, atol=5e-2, rtol=5e-2), \
        "mismatch vs f32 reference"

    print("KERNEL_OK")
</pallas_src>

<mosaic_0001>
module attributes {stable_mosaic.version = 11 : i64} {
  func.func @autoencoder_kernel(%arg0: i32, %arg1: memref<256x896xf32, #tpu.memory_space<vmem>>, %arg2: memref<896x256xbf16, #tpu.memory_space<vmem>>, %arg3: memref<1x256xf32, #tpu.memory_space<vmem>>, %arg4: memref<256x128xbf16, #tpu.memory_space<vmem>>, %arg5: memref<1x128xf32, #tpu.memory_space<vmem>>, %arg6: memref<128x128xbf16, #tpu.memory_space<vmem>>, %arg7: memref<1x128xf32, #tpu.memory_space<vmem>>, %arg8: memref<128x128xbf16, #tpu.memory_space<vmem>>, %arg9: memref<1x128xf32, #tpu.memory_space<vmem>>, %arg10: memref<128x128xbf16, #tpu.memory_space<vmem>>, %arg11: memref<1x128xf32, #tpu.memory_space<vmem>>, %arg12: memref<128x128xbf16, #tpu.memory_space<vmem>>, %arg13: memref<1x128xf32, #tpu.memory_space<vmem>>, %arg14: memref<128x128xbf16, #tpu.memory_space<vmem>>, %arg15: memref<1x128xf32, #tpu.memory_space<vmem>>, %arg16: memref<128x128xbf16, #tpu.memory_space<vmem>>, %arg17: memref<1x128xf32, #tpu.memory_space<vmem>>, %arg18: memref<128x256xbf16, #tpu.memory_space<vmem>>, %arg19: memref<1x256xf32, #tpu.memory_space<vmem>>, %arg20: memref<256x896xbf16, #tpu.memory_space<vmem>>, %arg21: memref<1x896xf32, #tpu.memory_space<vmem>>, %arg22: memref<256x896xf32, #tpu.memory_space<vmem>>) attributes {dimension_semantics = [#tpu.dimension_semantics<parallel>], iteration_bounds = array<i64: 2>, scalar_prefetch = 0 : i64, scratch_operands = 0 : i64, tpu.core_type = #tpu.core_type<tc>, window_params = [{transform_indices = @transform_0, window_bounds = array<i64: 256, 896>}, {pipeline_mode = #tpu.pipeline_mode<synchronous>, transform_indices = @transform_1, window_bounds = array<i64: 896, 256>}, {pipeline_mode = #tpu.pipeline_mode<synchronous>, transform_indices = @transform_2, window_bounds = array<i64: 1, 256>}, {pipeline_mode = #tpu.pipeline_mode<synchronous>, transform_indices = @transform_3, window_bounds = array<i64: 256, 128>}, {pipeline_mode = #tpu.pipeline_mode<synchronous>, transform_indices = @transform_4, window_bounds = array<i64: 1, 128>}, {pipeline_mode = #tpu.pipeline_mode<synchronous>, transform_indices = @transform_5, window_bounds = array<i64: 128, 128>}, {pipeline_mode = #tpu.pipeline_mode<synchronous>, transform_indices = @transform_6, window_bounds = array<i64: 1, 128>}, {pipeline_mode = #tpu.pipeline_mode<synchronous>, transform_indices = @transform_7, window_bounds = array<i64: 128, 128>}, {pipeline_mode = #tpu.pipeline_mode<synchronous>, transform_indices = @transform_8, window_bounds = array<i64: 1, 128>}, {pipeline_mode = #tpu.pipeline_mode<synchronous>, transform_indices = @transform_9, window_bounds = array<i64: 128, 128>}, {pipeline_mode = #tpu.pipeline_mode<synchronous>, transform_indices = @transform_10, window_bounds = array<i64: 1, 128>}, {pipeline_mode = #tpu.pipeline_mode<synchronous>, transform_indices = @transform_11, window_bounds = array<i64: 128, 128>}, {pipeline_mode = #tpu.pipeline_mode<synchronous>, transform_indices = @transform_12, window_bounds = array<i64: 1, 128>}, {pipeline_mode = #tpu.pipeline_mode<synchronous>, transform_indices = @transform_13, window_bounds = array<i64: 128, 128>}, {pipeline_mode = #tpu.pipeline_mode<synchronous>, transform_indices = @transform_14, window_bounds = array<i64: 1, 128>}, {pipeline_mode = #tpu.pipeline_mode<synchronous>, transform_indices = @transform_15, window_bounds = array<i64: 128, 128>}, {pipeline_mode = #tpu.pipeline_mode<synchronous>, transform_indices = @transform_16, window_bounds = array<i64: 1, 128>}, {pipeline_mode = #tpu.pipeline_mode<synchronous>, transform_indices = @transform_17, window_bounds = array<i64: 128, 256>}, {pipeline_mode = #tpu.pipeline_mode<synchronous>, transform_indices = @transform_18, window_bounds = array<i64: 1, 256>}, {pipeline_mode = #tpu.pipeline_mode<synchronous>, transform_indices = @transform_19, window_bounds = array<i64: 256, 896>}, {pipeline_mode = #tpu.pipeline_mode<synchronous>, transform_indices = @transform_20, window_bounds = array<i64: 1, 896>}, {transform_indices = @transform_21, window_bounds = array<i64: 256, 896>}]} {
    %c0 = arith.constant 0 : index
    %c0_0 = arith.constant 0 : index
    %0 = vector.load %arg1[%c0, %c0_0] : memref<256x896xf32, #tpu.memory_space<vmem>>, vector<256x896xf32>
    %1 = arith.truncf %0 : vector<256x896xf32> to vector<256x896xbf16>
    %c0_1 = arith.constant 0 : index
    %c0_2 = arith.constant 0 : index
    %2 = vector.load %arg2[%c0_1, %c0_2] : memref<896x256xbf16, #tpu.memory_space<vmem>>, vector<896x256xbf16>
    %c0_3 = arith.constant 0 : index
    %c0_4 = arith.constant 0 : index
    %3 = vector.load %arg3[%c0_3, %c0_4] : memref<1x256xf32, #tpu.memory_space<vmem>>, vector<1x256xf32>
    %cst = arith.constant dense<0.000000e+00> : vector<256x256xf32>
    %4 = tpu.matmul %1, %2, %cst {dimension_numbers = #tpu.dot_dimension_numbers<[1], [0], [0], [1], [0, 0, 1, 1], [], []>} : vector<256x896xbf16>, vector<896x256xbf16>, vector<256x256xf32> -> vector<256x256xf32>
    %5 = vector.broadcast %3 : vector<1x256xf32> to vector<256x256xf32>
    %6 = arith.addf %4, %5 : vector<256x256xf32>
    %cst_5 = arith.constant 0.000000e+00 : f32
    %7 = vector.broadcast %cst_5 : f32 to vector<256x256xf32>
    %8 = arith.maximumf %6, %7 : vector<256x256xf32>
    %9 = arith.truncf %8 : vector<256x256xf32> to vector<256x256xbf16>
    %c0_6 = arith.constant 0 : index
    %c0_7 = arith.constant 0 : index
    %10 = vector.load %arg4[%c0_6, %c0_7] : memref<256x128xbf16, #tpu.memory_space<vmem>>, vector<256x128xbf16>
    %c0_8 = arith.constant 0 : index
    %c0_9 = arith.constant 0 : index
    %11 = vector.load %arg5[%c0_8, %c0_9] : memref<1x128xf32, #tpu.memory_space<vmem>>, vector<1x128xf32>
    %cst_10 = arith.constant dense<0.000000e+00> : vector<256x128xf32>
    %12 = tpu.matmul %9, %10, %cst_10 {dimension_numbers = #tpu.dot_dimension_numbers<[1], [0], [0], [1], [0, 0, 1, 1], [], []>} : vector<256x256xbf16>, vector<256x128xbf16>, vector<256x128xf32> -> vector<256x128xf32>
    %13 = vector.broadcast %11 : vector<1x128xf32> to vector<256x128xf32>
    %14 = arith.addf %12, %13 : vector<256x128xf32>
    %cst_11 = arith.constant 0.000000e+00 : f32
    %15 = vector.broadcast %cst_11 : f32 to vector<256x128xf32>
    %16 = arith.maximumf %14, %15 : vector<256x128xf32>
    %17 = arith.truncf %16 : vector<256x128xf32> to vector<256x128xbf16>
    %c0_12 = arith.constant 0 : index
    %c0_13 = arith.constant 0 : index
    %18 = vector.load %arg6[%c0_12, %c0_13] : memref<128x128xbf16, #tpu.memory_space<vmem>>, vector<128x128xbf16>
    %c0_14 = arith.constant 0 : index
    %c0_15 = arith.constant 0 : index
    %19 = vector.load %arg7[%c0_14, %c0_15] : memref<1x128xf32, #tpu.memory_space<vmem>>, vector<1x128xf32>
    %cst_16 = arith.constant dense<0.000000e+00> : vector<256x128xf32>
    %20 = tpu.matmul %17, %18, %cst_16 {dimension_numbers = #tpu.dot_dimension_numbers<[1], [0], [0], [1], [0, 0, 1, 1], [], []>} : vector<256x128xbf16>, vector<128x128xbf16>, vector<256x128xf32> -> vector<256x128xf32>
    %21 = vector.broadcast %19 : vector<1x128xf32> to vector<256x128xf32>
    %22 = arith.addf %20, %21 : vector<256x128xf32>
    %cst_17 = arith.constant 0.000000e+00 : f32
    %23 = vector.broadcast %cst_17 : f32 to vector<256x128xf32>
    %24 = arith.maximumf %22, %23 : vector<256x128xf32>
    %25 = arith.truncf %24 : vector<256x128xf32> to vector<256x128xbf16>
    %c0_18 = arith.constant 0 : index
    %c0_19 = arith.constant 0 : index
    %26 = vector.load %arg8[%c0_18, %c0_19] : memref<128x128xbf16, #tpu.memory_space<vmem>>, vector<128x128xbf16>
    %c0_20 = arith.constant 0 : index
    %c0_21 = arith.constant 0 : index
    %27 = vector.load %arg9[%c0_20, %c0_21] : memref<1x128xf32, #tpu.memory_space<vmem>>, vector<1x128xf32>
    %cst_22 = arith.constant dense<0.000000e+00> : vector<256x128xf32>
    %28 = tpu.matmul %25, %26, %cst_22 {dimension_numbers = #tpu.dot_dimension_numbers<[1], [0], [0], [1], [0, 0, 1, 1], [], []>} : vector<256x128xbf16>, vector<128x128xbf16>, vector<256x128xf32> -> vector<256x128xf32>
    %29 = vector.broadcast %27 : vector<1x128xf32> to vector<256x128xf32>
    %30 = arith.addf %28, %29 : vector<256x128xf32>
    %cst_23 = arith.constant 0.000000e+00 : f32
    %31 = vector.broadcast %cst_23 : f32 to vector<256x128xf32>
    %32 = arith.maximumf %30, %31 : vector<256x128xf32>
    %33 = arith.truncf %32 : vector<256x128xf32> to vector<256x128xbf16>
    %c0_24 = arith.constant 0 : index
    %c0_25 = arith.constant 0 : index
    %34 = vector.load %arg10[%c0_24, %c0_25] : memref<128x128xbf16, #tpu.memory_space<vmem>>, vector<128x128xbf16>
    %c0_26 = arith.constant 0 : index
    %c0_27 = arith.constant 0 : index
    %35 = vector.load %arg11[%c0_26, %c0_27] : memref<1x128xf32, #tpu.memory_space<vmem>>, vector<1x128xf32>
    %cst_28 = arith.constant dense<0.000000e+00> : vector<256x128xf32>
    %36 = tpu.matmul %33, %34, %cst_28 {dimension_numbers = #tpu.dot_dimension_numbers<[1], [0], [0], [1], [0, 0, 1, 1], [], []>} : vector<256x128xbf16>, vector<128x128xbf16>, vector<256x128xf32> -> vector<256x128xf32>
    %37 = vector.broadcast %35 : vector<1x128xf32> to vector<256x128xf32>
    %38 = arith.addf %36, %37 : vector<256x128xf32>
    %cst_29 = arith.constant 0.000000e+00 : f32
    %39 = vector.broadcast %cst_29 : f32 to vector<256x128xf32>
    %40 = arith.maximumf %38, %39 : vector<256x128xf32>
    %41 = arith.truncf %40 : vector<256x128xf32> to vector<256x128xbf16>
    %c0_30 = arith.constant 0 : index
    %c0_31 = arith.constant 0 : index
    %42 = vector.load %arg12[%c0_30, %c0_31] : memref<128x128xbf16, #tpu.memory_space<vmem>>, vector<128x128xbf16>
    %c0_32 = arith.constant 0 : index
    %c0_33 = arith.constant 0 : index
    %43 = vector.load %arg13[%c0_32, %c0_33] : memref<1x128xf32, #tpu.memory_space<vmem>>, vector<1x128xf32>
    %cst_34 = arith.constant dense<0.000000e+00> : vector<256x128xf32>
    %44 = tpu.matmul %41, %42, %cst_34 {dimension_numbers = #tpu.dot_dimension_numbers<[1], [0], [0], [1], [0, 0, 1, 1], [], []>} : vector<256x128xbf16>, vector<128x128xbf16>, vector<256x128xf32> -> vector<256x128xf32>
    %45 = vector.broadcast %43 : vector<1x128xf32> to vector<256x128xf32>
    %46 = arith.addf %44, %45 : vector<256x128xf32>
    %cst_35 = arith.constant 0.000000e+00 : f32
    %47 = vector.broadcast %cst_35 : f32 to vector<256x128xf32>
    %48 = arith.maximumf %46, %47 : vector<256x128xf32>
    %49 = arith.truncf %48 : vector<256x128xf32> to vector<256x128xbf16>
    %c0_36 = arith.constant 0 : index
    %c0_37 = arith.constant 0 : index
    %50 = vector.load %arg14[%c0_36, %c0_37] : memref<128x128xbf16, #tpu.memory_space<vmem>>, vector<128x128xbf16>
    %c0_38 = arith.constant 0 : index
    %c0_39 = arith.constant 0 : index
    %51 = vector.load %arg15[%c0_38, %c0_39] : memref<1x128xf32, #tpu.memory_space<vmem>>, vector<1x128xf32>
    %cst_40 = arith.constant dense<0.000000e+00> : vector<256x128xf32>
    %52 = tpu.matmul %49, %50, %cst_40 {dimension_numbers = #tpu.dot_dimension_numbers<[1], [0], [0], [1], [0, 0, 1, 1], [], []>} : vector<256x128xbf16>, vector<128x128xbf16>, vector<256x128xf32> -> vector<256x128xf32>
    %53 = vector.broadcast %51 : vector<1x128xf32> to vector<256x128xf32>
    %54 = arith.addf %52, %53 : vector<256x128xf32>
    %cst_41 = arith.constant 0.000000e+00 : f32
    %55 = vector.broadcast %cst_41 : f32 to vector<256x128xf32>
    %56 = arith.maximumf %54, %55 : vector<256x128xf32>
    %57 = arith.truncf %56 : vector<256x128xf32> to vector<256x128xbf16>
    %c0_42 = arith.constant 0 : index
    %c0_43 = arith.constant 0 : index
    %58 = vector.load %arg16[%c0_42, %c0_43] : memref<128x128xbf16, #tpu.memory_space<vmem>>, vector<128x128xbf16>
    %c0_44 = arith.constant 0 : index
    %c0_45 = arith.constant 0 : index
    %59 = vector.load %arg17[%c0_44, %c0_45] : memref<1x128xf32, #tpu.memory_space<vmem>>, vector<1x128xf32>
    %cst_46 = arith.constant dense<0.000000e+00> : vector<256x128xf32>
    %60 = tpu.matmul %57, %58, %cst_46 {dimension_numbers = #tpu.dot_dimension_numbers<[1], [0], [0], [1], [0, 0, 1, 1], [], []>} : vector<256x128xbf16>, vector<128x128xbf16>, vector<256x128xf32> -> vector<256x128xf32>
    %61 = vector.broadcast %59 : vector<1x128xf32> to vector<256x128xf32>
    %62 = arith.addf %60, %61 : vector<256x128xf32>
    %cst_47 = arith.constant 0.000000e+00 : f32
    %63 = vector.broadcast %cst_47 : f32 to vector<256x128xf32>
    %64 = arith.maximumf %62, %63 : vector<256x128xf32>
    %65 = arith.truncf %64 : vector<256x128xf32> to vector<256x128xbf16>
    %c0_48 = arith.constant 0 : index
    %c0_49 = arith.constant 0 : index
    %66 = vector.load %arg18[%c0_48, %c0_49] : memref<128x256xbf16, #tpu.memory_space<vmem>>, vector<128x256xbf16>
    %c0_50 = arith.constant 0 : index
    %c0_51 = arith.constant 0 : index
    %67 = vector.load %arg19[%c0_50, %c0_51] : memref<1x256xf32, #tpu.memory_space<vmem>>, vector<1x256xf32>
    %cst_52 = arith.constant dense<0.000000e+00> : vector<256x256xf32>
    %68 = tpu.matmul %65, %66, %cst_52 {dimension_numbers = #tpu.dot_dimension_numbers<[1], [0], [0], [1], [0, 0, 1, 1], [], []>} : vector<256x128xbf16>, vector<128x256xbf16>, vector<256x256xf32> -> vector<256x256xf32>
    %69 = vector.broadcast %67 : vector<1x256xf32> to vector<256x256xf32>
    %70 = arith.addf %68, %69 : vector<256x256xf32>
    %cst_53 = arith.constant 0.000000e+00 : f32
    %71 = vector.broadcast %cst_53 : f32 to vector<256x256xf32>
    %72 = arith.maximumf %70, %71 : vector<256x256xf32>
    %73 = arith.truncf %72 : vector<256x256xf32> to vector<256x256xbf16>
    %c0_54 = arith.constant 0 : index
    %c0_55 = arith.constant 0 : index
    %74 = vector.load %arg20[%c0_54, %c0_55] : memref<256x896xbf16, #tpu.memory_space<vmem>>, vector<256x896xbf16>
    %c0_56 = arith.constant 0 : index
    %c0_57 = arith.constant 0 : index
    %75 = vector.load %arg21[%c0_56, %c0_57] : memref<1x896xf32, #tpu.memory_space<vmem>>, vector<1x896xf32>
    %cst_58 = arith.constant dense<0.000000e+00> : vector<256x896xf32>
    %76 = tpu.matmul %73, %74, %cst_58 {dimension_numbers = #tpu.dot_dimension_numbers<[1], [0], [0], [1], [0, 0, 1, 1], [], []>} : vector<256x256xbf16>, vector<256x896xbf16>, vector<256x896xf32> -> vector<256x896xf32>
    %77 = vector.broadcast %75 : vector<1x896xf32> to vector<256x896xf32>
    %78 = arith.addf %76, %77 : vector<256x896xf32>
    %cst_59 = arith.constant 0.000000e+00 : f32
    %79 = vector.broadcast %cst_59 : f32 to vector<256x896xf32>
    %80 = arith.maximumf %78, %79 : vector<256x896xf32>
    %c0_60 = arith.constant 0 : index
    %c0_61 = arith.constant 0 : index
    %81 = vector.load %arg22[%c0_60, %c0_61] : memref<256x896xf32, #tpu.memory_space<vmem>>, vector<256x896xf32>
    tpu.vector_store %arg22[%c0_60, %c0_61], %80 {strides = array<i32>} : memref<256x896xf32, #tpu.memory_space<vmem>>, vector<256x896xf32>,
    return
  }
  func.func @transform_0(%arg0: i32) -> (i32, i32) {
    %c0_i32 = arith.constant 0 : i32
    %c0_i32_0 = arith.constant 0 : i32
    return %arg0, %c0_i32 : i32, i32
  }
  func.func @transform_1(%arg0: i32) -> (i32, i32) {
    %c0_i32 = arith.constant 0 : i32
    %c0_i32_0 = arith.constant 0 : i32
    %c0_i32_1 = arith.constant 0 : i32
    return %c0_i32, %c0_i32_0 : i32, i32
  }
  func.func @transform_2(%arg0: i32) -> (i32, i32) {
    %c0_i32 = arith.constant 0 : i32
    %c0_i32_0 = arith.constant 0 : i32
    %c0_i32_1 = arith.constant 0 : i32
    return %c0_i32, %c0_i32_0 : i32, i32
  }
  func.func @transform_3(%arg0: i32) -> (i32, i32) {
    %c0_i32 = arith.constant 0 : i32
    %c0_i32_0 = arith.constant 0 : i32
    %c0_i32_1 = arith.constant 0 : i32
    return %c0_i32, %c0_i32_0 : i32, i32
  }
  func.func @transform_4(%arg0: i32) -> (i32, i32) {
    %c0_i32 = arith.constant 0 : i32
    %c0_i32_0 = arith.constant 0 : i32
    %c0_i32_1 = arith.constant 0 : i32
    return %c0_i32, %c0_i32_0 : i32, i32
  }
  func.func @transform_5(%arg0: i32) -> (i32, i32) {
    %c0_i32 = arith.constant 0 : i32
    %c0_i32_0 = arith.constant 0 : i32
    %c0_i32_1 = arith.constant 0 : i32
    return %c0_i32, %c0_i32_0 : i32, i32
  }
  func.func @transform_6(%arg0: i32) -> (i32, i32) {
    %c0_i32 = arith.constant 0 : i32
    %c0_i32_0 = arith.constant 0 : i32
    %c0_i32_1 = arith.constant 0 : i32
    return %c0_i32, %c0_i32_0 : i32, i32
  }
  func.func @transform_7(%arg0: i32) -> (i32, i32) {
    %c0_i32 = arith.constant 0 : i32
    %c0_i32_0 = arith.constant 0 : i32
    %c0_i32_1 = arith.constant 0 : i32
    return %c0_i32, %c0_i32_0 : i32, i32
  }
  func.func @transform_8(%arg0: i32) -> (i32, i32) {
    %c0_i32 = arith.constant 0 : i32
    %c0_i32_0 = arith.constant 0 : i32
    %c0_i32_1 = arith.constant 0 : i32
    return %c0_i32, %c0_i32_0 : i32, i32
  }
  func.func @transform_9(%arg0: i32) -> (i32, i32) {
    %c0_i32 = arith.constant 0 : i32
    %c0_i32_0 = arith.constant 0 : i32
    %c0_i32_1 = arith.constant 0 : i32
    return %c0_i32, %c0_i32_0 : i32, i32
  }
  func.func @transform_10(%arg0: i32) -> (i32, i32) {
    %c0_i32 = arith.constant 0 : i32
    %c0_i32_0 = arith.constant 0 : i32
    %c0_i32_1 = arith.constant 0 : i32
    return %c0_i32, %c0_i32_0 : i32, i32
  }
  func.func @transform_11(%arg0: i32) -> (i32, i32) {
    %c0_i32 = arith.constant 0 : i32
    %c0_i32_0 = arith.constant 0 : i32
    %c0_i32_1 = arith.constant 0 : i32
    return %c0_i32, %c0_i32_0 : i32, i32
  }
  func.func @transform_12(%arg0: i32) -> (i32, i32) {
    %c0_i32 = arith.constant 0 : i32
    %c0_i32_0 = arith.constant 0 : i32
    %c0_i32_1 = arith.constant 0 : i32
    return %c0_i32, %c0_i32_0 : i32, i32
  }
  func.func @transform_13(%arg0: i32) -> (i32, i32) {
    %c0_i32 = arith.constant 0 : i32
    %c0_i32_0 = arith.constant 0 : i32
    %c0_i32_1 = arith.constant 0 : i32
    return %c0_i32, %c0_i32_0 : i32, i32
  }
  func.func @transform_14(%arg0: i32) -> (i32, i32) {
    %c0_i32 = arith.constant 0 : i32
    %c0_i32_0 = arith.constant 0 : i32
    %c0_i32_1 = arith.constant 0 : i32
    return %c0_i32, %c0_i32_0 : i32, i32
  }
  func.func @transform_15(%arg0: i32) -> (i32, i32) {
    %c0_i32 = arith.constant 0 : i32
    %c0_i32_0 = arith.constant 0 : i32
    %c0_i32_1 = arith.constant 0 : i32
    return %c0_i32, %c0_i32_0 : i32, i32
  }
  func.func @transform_16(%arg0: i32) -> (i32, i32) {
    %c0_i32 = arith.constant 0 : i32
    %c0_i32_0 = arith.constant 0 : i32
    %c0_i32_1 = arith.constant 0 : i32
    return %c0_i32, %c0_i32_0 : i32, i32
  }
  func.func @transform_17(%arg0: i32) -> (i32, i32) {
    %c0_i32 = arith.constant 0 : i32
    %c0_i32_0 = arith.constant 0 : i32
    %c0_i32_1 = arith.constant 0 : i32
    return %c0_i32, %c0_i32_0 : i32, i32
  }
  func.func @transform_18(%arg0: i32) -> (i32, i32) {
    %c0_i32 = arith.constant 0 : i32
    %c0_i32_0 = arith.constant 0 : i32
    %c0_i32_1 = arith.constant 0 : i32
    return %c0_i32, %c0_i32_0 : i32, i32
  }
  func.func @transform_19(%arg0: i32) -> (i32, i32) {
    %c0_i32 = arith.constant 0 : i32
    %c0_i32_0 = arith.constant 0 : i32
    %c0_i32_1 = arith.constant 0 : i32
    return %c0_i32, %c0_i32_0 : i32, i32
  }
  func.func @transform_20(%arg0: i32) -> (i32, i32) {
    %c0_i32 = arith.constant 0 : i32
    %c0_i32_0 = arith.constant 0 : i32
    %c0_i32_1 = arith.constant 0 : i32
    return %c0_i32, %c0_i32_0 : i32, i32
  }
  func.func @transform_21(%arg0: i32) -> (i32, i32) {
    %c0_i32 = arith.constant 0 : i32
    %c0_i32_0 = arith.constant 0 : i32
    return %arg0, %c0_i32 : i32, i32
  }
}

</mosaic_0001>

<bundles_post_ra>
// kernel: autoencoder_forward.1
= control target key start
LH: loop header
LB: loop body
LE: loop exit
PB: predicated region body
PF: predicated region fallthrough
CT: control target
= control target key end

     0   :  { %s11098_s0 = inlined_call_operand.vmem [shape: f32[512,896], index: 0, kind: input, shape index: {}]   ;;  %s11099_s1 = inlined_call_operand.vmem [shape: bf16[896,256], index: 1, kind: input, shape index: {}]   ;;  %s11100_s2 = inlined_call_operand.vmem [shape: f32[1,256], index: 2, kind: input, shape index: {}]   ;;  %s11101_s3 = inlined_call_operand.vmem [shape: bf16[256,128], index: 3, kind: input, shape index: {}]   ;;  %s11102_s4 = inlined_call_operand.vmem [shape: f32[1,128], index: 4, kind: input, shape index: {}]   ;;  %s11103_s5 = inlined_call_operand.vmem [shape: bf16[128,128], index: 5, kind: input, shape index: {}]   ;;  %s11104_s6 = inlined_call_operand.vmem [shape: f32[1,128], index: 6, kind: input, shape index: {}]   ;;  %s11105_s7 = inlined_call_operand.vmem [shape: bf16[128,128], index: 7, kind: input, shape index: {}]   ;;  %s11106_s8 = inlined_call_operand.vmem [shape: f32[1,128], index: 8, kind: input, shape index: {}]   ;;  %s11107_s9 = inlined_call_operand.vmem [shape: bf16[128,128], index: 9, kind: input, shape index: {}]   ;;  %s11108_s10 = inlined_call_operand.vmem [shape: f32[1,128], index: 10, kind: input, shape index: {}]   ;;  %s11109_s11 = inlined_call_operand.vmem [shape: bf16[128,128], index: 11, kind: input, shape index: {}]   ;;  %s11110_s12 = inlined_call_operand.vmem [shape: f32[1,128], index: 12, kind: input, shape index: {}]   ;;  %s11111_s13 = inlined_call_operand.vmem [shape: bf16[128,128], index: 13, kind: input, shape index: {}]   ;;  %s11112_s14 = inlined_call_operand.vmem [shape: f32[1,128], index: 14, kind: input, shape index: {}]   ;;  %s11113_s15 = inlined_call_operand.vmem [shape: bf16[128,128], index: 15, kind: input, shape index: {}]   ;;  %s11114_s16 = inlined_call_operand.vmem [shape: f32[1,128], index: 16, kind: input, shape index: {}]   ;;  %s11115_s17 = inlined_call_operand.vmem [shape: bf16[128,256], index: 17, kind: input, shape index: {}]   ;;  %s11116_s18 = inlined_call_operand.vmem [shape: f32[1,256], index: 18, kind: input, shape index: {}]   ;;  %s11117_s19 = inlined_call_operand.vmem [shape: bf16[256,896], index: 19, kind: input, shape index: {}]   ;;  %s11118_s20 = inlined_call_operand.vmem [shape: f32[1,896], index: 20, kind: input, shape index: {}]   ;;  %s11119_s21 = inlined_call_operand.vmem [shape: f32[512,896], index: 21, kind: output, shape index: {}]  }
   0x1   :  { %11124 = sst [smem:[#allocation2_spill]] %s11098_s0 }
   0x2   :  { %11125 = sst [smem:[#allocation3_spill]] %s11099_s1 }
   0x3   :  { %11126 = sst [smem:[#allocation4_spill]] %s11100_s2  ;;  %s8758_s2 = smov 0  }
   0x4   :  { %11127 = sst [smem:[#allocation5_spill]] %s11101_s3 }
   0x5   :  { %11128 = sst [smem:[#allocation6_spill]] %s11102_s4 }
   0x6   :  { %11129 = sst [smem:[#allocation7_spill]] %s11103_s5 }
   0x7 LB: > { %s6962_s25 = sadd.s32 4294967295, %s8645_s2   ;;  %p6966_p0 = scmp.ge.s32.totalorder %s8645_s2, 1  ;;  %s8645_s2 = sphi %s8758_s2, %s31_s2  }
   0x8   : > { %p589_p1 = scmp.lt.s32.totalorder %s8645_s2, 3 }
   0xa   : > { %p590_p2 = pnand %p6966_p0, %p589_p1 }
   0xb   : > { %s11130_s3 = sld [smem:[#allocation3_spill]] (!%p590_p2)  ;;  %s6967_s22 = sshll.u32 (!%p590_p2), %s6962_s25, 5 }
   0xc   : > { %593 = sbr.rel (%p590_p2) target bundleno = 2990 (0xbae), region = 104  ;;  %p652_p3 = scmp.lt.s32.totalorder (!%p590_p2), %s6967_s22, 63 }
   0xd   : > { %s11131_s28 = sld [smem:[#allocation2_spill]] (!%p590_p2)  ;;  %s11132_s23 = sld [smem:[#allocation5_spill]] (!%p590_p2) }
   0xe   : > { %s11133_s29 = sld [smem:[#allocation7_spill]] (!%p590_p2)  ;;  %s11134_s5 = sld [smem:[#allocation4_spill]] (!%p590_p2) }
   0xf   : > { %s11135_s4 = sld [smem:[#allocation6_spill]] (!%p590_p2) }
  0x11   : > { %v8222_v0 = vld [vmem:[%s11130_s3 + $0x4] ss:$8 sps:$4 sm:$0xff] (!%p590_p2)   ;;  %v8224_v1 = vld [vmem:[%s11130_s3] ss:$8 sps:$4 sm:$0xff] (!%p590_p2)   ;;  %v8225_v2 = vld [vmem:[%s11130_s3 + $0x14] ss:$8 sps:$4 sm:$0xff] (!%p590_p2)  }
  0x12   : > { %1686 = vmatprep.subr.bf16.mxu0 (!%p590_p2), %v8222_v0  ;;  %v8227_v3 = vld [vmem:[%s11130_s3 + $0x10] ss:$8 sps:$4 sm:$0xff] (!%p590_p2)   ;;  %v8228_v4 = vld [vmem:[%s11130_s3 + $0x24] ss:$8 sps:$4 sm:$0xff] (!%p590_p2)   ;;  %v8230_v5 = vld [vmem:[%s11130_s3 + $0x20] ss:$8 sps:$4 sm:$0xff] (!%p590_p2)  }
  0x13   : > { %1687 = vmatpush1.bf16.msra.mxu0 %v8224_v1  ;;  %v8231_v6 = vld [vmem:[%s11130_s3 + $0x34] ss:$8 sps:$4 sm:$0xff]   ;;  %s11138_s22 = smov (!%p652_p3, %s6967_s22), 63  ;;  %v8233_v7 = vld [vmem:[%s11130_s3 + $0x30] ss:$8 sps:$4 sm:$0xff]  }
  0x14   : > { %1688 = vmatprep.subr.bf16.mxu0 %v8225_v2  ;;  %v8234_v8 = vld [vmem:[%s11130_s3 + $0x44] ss:$8 sps:$4 sm:$0xff]   ;;  %s11123_s30 = smul.u32 56, %s11138_s22  ;;  %v8236_v9 = vld [vmem:[%s11130_s3 + $0x40] ss:$8 sps:$4 sm:$0xff]  }
  0x15   : > { %v8237_v10 = vld [vmem:[%s11130_s3 + $0x54] ss:$8 sps:$4 sm:$0xff]   ;;  %v8239_v11 = vld [vmem:[%s11130_s3 + $0x50] ss:$8 sps:$4 sm:$0xff]   ;;  %v8240_v12 = vld [vmem:[%s11130_s3 + $0x64] ss:$8 sps:$4 sm:$0xff]  }
  0x16   : > { %s8807_s25 = scalar_lea.vmem %s11131_s28, %s11123_s30  ;;  %v8242_v16 = vld [vmem:[%s11130_s3 + $0x60] ss:$8 sps:$4 sm:$0xff]   ;;  %v8243_v17 = vld [vmem:[%s11130_s3 + $0x74] ss:$8 sps:$4 sm:$0xff]   ;;  %v8245_v18 = vld [vmem:[%s11130_s3 + $0x70] ss:$8 sps:$4 sm:$0xff]  }
  0x17   : > { %1689 = vmatpush1.bf16.msra.mxu0 %v8227_v3  ;;  %v667_v13 = vld [vmem:[%s8807_s25 + $0x8] sm:$0xff]  ;;  %v674_v14 = vld [vmem:[%s8807_s25 + $0x40] sm:$0xff]  ;;  %v8249_v21 = vld [vmem:[%s11130_s3 + $0x94] ss:$8 sps:$4 sm:$0xff]   ;;  %s11136_s27 = smul.u32 56, %s11138_s22 }
  0x18   : > { %1690 = vmatprep.subr.bf16.mxu0 %v8228_v4  ;;  %v891_v15 = vpack.c.bf16 %v674_v14, %v667_v13  ;;  %v8246_v19 = vld [vmem:[%s11130_s3 + $0x84] ss:$8 sps:$4 sm:$0xff]   ;;  %v8248_v20 = vld [vmem:[%s11130_s3 + $0x80] ss:$8 sps:$4 sm:$0xff]   ;;  %v8251_v22 = vld [vmem:[%s11130_s3 + $0x90] ss:$8 sps:$4 sm:$0xff]  }
  0x19   : > { %v8252_v23 = vld [vmem:[%s11130_s3 + $0xa4] ss:$8 sps:$4 sm:$0xff]   ;;  %v8254_v24 = vld [vmem:[%s11130_s3 + $0xa0] ss:$8 sps:$4 sm:$0xff]   ;;  %v8255_v25 = vld [vmem:[%s11130_s3 + $0xb4] ss:$8 sps:$4 sm:$0xff]  }
  0x1a   : > { %1718 = vmatprep.mubr.bf16.mxu0 %v891_v15  ;;  %v8257_v26 = vld [vmem:[%s11130_s3 + $0xb0] ss:$8 sps:$4 sm:$0xff]   ;;  %v8258_v27 = vld [vmem:[%s11130_s3 + $0xc4] ss:$8 sps:$4 sm:$0xff]   ;;  %v8260_v28 = vld [vmem:[%s11130_s3 + $0xc0] ss:$8 sps:$4 sm:$0xff]  }
  0x1b   : > { %1691 = vmatpush1.bf16.msra.mxu0 %v8230_v5  ;;  %v8261_v29 = vld [vmem:[%s11130_s3 + $0xd4] ss:$8 sps:$4 sm:$0xff]   ;;  %v8263_v30 = vld [vmem:[%s11130_s3 + $0xd0] ss:$8 sps:$4 sm:$0xff]   ;;  %v8264_v31 = vld [vmem:[%s11130_s3 + $0xe4] ss:$8 sps:$4 sm:$0xff]  }
  0x1c   : > { %1692 = vmatprep.subr.bf16.mxu0 %v8231_v6  ;;  %v8266_v32 = vld [vmem:[%s11130_s3 + $0xe0] ss:$8 sps:$4 sm:$0xff]   ;;  %v8267_v33 = vld [vmem:[%s11130_s3 + $0xf4] ss:$8 sps:$4 sm:$0xff]   ;;  %v8269_v34 = vld [vmem:[%s11130_s3 + $0xf0] ss:$8 sps:$4 sm:$0xff]  }
  0x1d   : > { %v666_v35 = vld [vmem:[%s8807_s25] sm:$0xff]  ;;  %v673_v36 = vld [vmem:[%s8807_s25 + $0x38] sm:$0xff]  ;;  %v688_v39 = vld [vmem:[%s8807_s25 + $0xb0] sm:$0xff] }
  0x1e   : > { %v8272_v37 = vld [vmem:[%s11130_s3 + $0x104] ss:$8 sps:$4 sm:$0xff]   ;;  %v681_v38 = vld [vmem:[%s8807_s25 + $0x78] sm:$0xff]  ;;  %v890_v40 = vpack.c.bf16 %v673_v36, %v666_v35  ;;  %v8270_v41 = vld [vmem:[%s11130_s3 + $0x100] ss:$8 sps:$4 sm:$0xff]  }
  0x1f   : > { %1693 = vmatpush1.bf16.msra.mxu0 %v8233_v7  ;;  %v898_v42 = vpack.c.bf16 %v688_v39, %v681_v38  ;;  %v8275_v43 = vld [vmem:[%s11130_s3 + $0x114] ss:$8 sps:$4 sm:$0xff]   ;;  %v687_v45 = vld [vmem:[%s8807_s25 + $0xa8] sm:$0xff]  ;;  %v8273_v46 = vld [vmem:[%s11130_s3 + $0x110] ss:$8 sps:$4 sm:$0xff]  }
  0x20   : > { %1694 = vmatprep.subr.bf16.mxu0 %v8234_v8  ;;  %v680_v44 = vld [vmem:[%s8807_s25 + $0x70] sm:$0xff]  ;;  %v695_v47 = vld [vmem:[%s8807_s25 + $0xe8] sm:$0xff]  ;;  %v702_v48 = vld [vmem:[%s8807_s25 + $0x120] sm:$0xff] }
  0x21   : > { %v8278_v49 = vld [vmem:[%s11130_s3 + $0x124] ss:$8 sps:$4 sm:$0xff]   ;;  %v8276_v50 = vld [vmem:[%s11130_s3 + $0x120] ss:$8 sps:$4 sm:$0xff]   ;;  %v897_v51 = vpack.c.bf16 %v687_v45, %v680_v44  ;;  %v8281_v52 = vld [vmem:[%s11130_s3 + $0x134] ss:$8 sps:$4 sm:$0xff]   ;;  %v905_v53 = vpack.c.bf16 %v702_v48, %v695_v47 }
  0x22   : > { %v694_v54 = vld [vmem:[%s8807_s25 + $0xe0] sm:$0xff]  ;;  %v701_v55 = vld [vmem:[%s8807_s25 + $0x118] sm:$0xff]  ;;  %v716_v57 = vld [vmem:[%s8807_s25 + $0x190] sm:$0xff] }
  0x23   : > { %1695 = vmatpush1.bf16.msra.mxu0 %v8236_v9  ;;  %v709_v56 = vld [vmem:[%s8807_s25 + $0x158] sm:$0xff]  ;;  %v8284_v59 = vld [vmem:[%s11130_s3 + $0x144] ss:$8 sps:$4 sm:$0xff]   ;;  %v8282_v60 = vld [vmem:[%s11130_s3 + $0x140] ss:$8 sps:$4 sm:$0xff]   ;;  %v904_v61 = vpack.c.bf16 %v701_v55, %v694_v54 }
  0x24   : > { %1696 = vmatprep.subr.bf16.mxu0 %v8237_v10  ;;  %v8279_v58 = vld [vmem:[%s11130_s3 + $0x130] ss:$8 sps:$4 sm:$0xff]   ;;  %v8287_v62 = vld [vmem:[%s11130_s3 + $0x154] ss:$8 sps:$4 sm:$0xff]   ;;  %v912_v63 = vpack.c.bf16 %v716_v57, %v709_v56  ;;  %v715_v1 = vld [vmem:[%s8807_s25 + $0x188] sm:$0xff] }
  0x25   : > { %v708_v0 = vld [vmem:[%s8807_s25 + $0x150] sm:$0xff]  ;;  %v723_v2 = vld [vmem:[%s8807_s25 + $0x1c8] sm:$0xff]  ;;  %v730_v3 = vld [vmem:[%s8807_s25 + $0x200] sm:$0xff] }
  0x26   : > { %v8285_v4 = vld [vmem:[%s11130_s3 + $0x150] ss:$8 sps:$4 sm:$0xff]   ;;  %v8290_v5 = vld [vmem:[%s11130_s3 + $0x164] ss:$8 sps:$4 sm:$0xff]   ;;  %v8288_v6 = vld [vmem:[%s11130_s3 + $0x160] ss:$8 sps:$4 sm:$0xff]   ;;  %v911_v7 = vpack.c.bf16 %v715_v1, %v708_v0  ;;  %v919_v9 = vpack.c.bf16 %v730_v3, %v723_v2 }
  0x27   : > { %1697 = vmatpush1.bf16.msra.mxu0 %v8239_v11  ;;  %v8293_v8 = vld [vmem:[%s11130_s3 + $0x174] ss:$8 sps:$4 sm:$0xff]   ;;  %v722_v10 = vld [vmem:[%s8807_s25 + $0x1c0] sm:$0xff]  ;;  %v8291_v14 = vld [vmem:[%s11130_s3 + $0x170] ss:$8 sps:$4 sm:$0xff]  }
  0x28   : > { %1698 = vmatprep.subr.bf16.mxu0 %v8240_v12  ;;  %v729_v11 = vld [vmem:[%s8807_s25 + $0x1f8] sm:$0xff]  ;;  %v744_v13 = vld [vmem:[%s8807_s25 + $0x270] sm:$0xff]  ;;  %v8296_v15 = vld [vmem:[%s11130_s3 + $0x184] ss:$8 sps:$4 sm:$0xff]  }
  0x29   : > { %v737_v12 = vld [vmem:[%s8807_s25 + $0x238] sm:$0xff]  ;;  %v8308_v35 = vld [vmem:[%s11130_s3 + $0x1c4] ss:$8 sps:$4 sm:$0xff]   ;;  %v8306_v36 = vld [vmem:[%s11130_s3 + $0x1c0] ss:$8 sps:$4 sm:$0xff]  }
  0x2a   : > { %v8311_v38 = vld [vmem:[%s11130_s3 + $0x1d4] ss:$8 sps:$4 sm:$0xff]   ;;  %v8309_v44 = vld [vmem:[%s11130_s3 + $0x1d0] ss:$8 sps:$4 sm:$0xff]   ;;  %v8314_v45 = vld [vmem:[%s11130_s3 + $0x1e4] ss:$8 sps:$4 sm:$0xff]  }
  0x2b   : > { %1699 = vmatpush1.bf16.msra.mxu0 %v8242_v16  ;;  %v8294_v16 = vld [vmem:[%s11130_s3 + $0x180] ss:$8 sps:$4 sm:$0xff]   ;;  %v8317_v48 = vld [vmem:[%s11130_s3 + $0x1f4] ss:$8 sps:$4 sm:$0xff]   ;;  %v8315_v54 = vld [vmem:[%s11130_s3 + $0x1f0] ss:$8 sps:$4 sm:$0xff]  }
  0x2c   : > { %1700 = vmatprep.subr.bf16.mxu0 %v8243_v17  ;;  %v918_v17 = vpack.c.bf16 %v729_v11, %v722_v10  ;;  %v8320_v55 = vld [vmem:[%s11130_s3 + $0x204] ss:$8 sps:$4 sm:$0xff]   ;;  %v813_v1 = vld [vmem:[%s8807_s25 + $0x498] sm:$0xff]  ;;  %v828_v3 = vld [vmem:[%s8807_s25 + $0x510] sm:$0xff] }
  0x2d   : > { %v806_v0 = vld [vmem:[%s8807_s25 + $0x460] sm:$0xff]  ;;  %v821_v2 = vld [vmem:[%s8807_s25 + $0x4d8] sm:$0xff] }
  0x2f   : > { %1701 = vmatpush1.bf16.msra.mxu0 %v8245_v18  ;;  %v8299_v18 = vld [vmem:[%s11130_s3 + $0x194] ss:$8 sps:$4 sm:$0xff]  }
  0x30   : > { %1702 = vmatprep.subr.bf16.mxu0 %v8246_v19  ;;  %v926_v19 = vpack.c.bf16 %v744_v13, %v737_v12  ;;  %v834_v12 = vld [vmem:[%s8807_s25 + $0x540] sm:$0xff]  ;;  %v841_v13 = vld [vmem:[%s8807_s25 + $0x578] sm:$0xff] }
  0x33   : > { %1703 = vmatpush1.bf16.msra.mxu0 %v8248_v20  ;;  %v736_v20 = vld [vmem:[%s8807_s25 + $0x230] sm:$0xff] }
  0x34   : > { %1704 = vmatprep.subr.bf16.mxu0 %v8249_v21  ;;  %v743_v21 = vld [vmem:[%s8807_s25 + $0x268] sm:$0xff] }
  0x37   : > { %1705 = vmatpush1.bf16.msra.mxu0 %v8251_v22  ;;  %v751_v22 = vld [vmem:[%s8807_s25 + $0x2a8] sm:$0xff] }
  0x38   : > { %1706 = vmatprep.subr.bf16.mxu0 %v8252_v23  ;;  %v758_v23 = vld [vmem:[%s8807_s25 + $0x2e0] sm:$0xff] }
  0x3b   : > { %1707 = vmatpush1.bf16.msra.mxu0 %v8254_v24  ;;  %v8297_v24 = vld [vmem:[%s11130_s3 + $0x190] ss:$8 sps:$4 sm:$0xff]  }
  0x3c   : > { %1708 = vmatprep.subr.bf16.mxu0 %v8255_v25  ;;  %v8302_v25 = vld [vmem:[%s11130_s3 + $0x1a4] ss:$8 sps:$4 sm:$0xff]  }
  0x3f   : > { %1709 = vmatpush1.bf16.msra.mxu0 %v8257_v26  ;;  %v8300_v26 = vld [vmem:[%s11130_s3 + $0x1a0] ss:$8 sps:$4 sm:$0xff]  }
  0x40   : > { %1710 = vmatprep.subr.bf16.mxu0 %v8258_v27  ;;  %v925_v27 = vpack.c.bf16 %v743_v21, %v736_v20  ;;  %v863_v20 = vld [vmem:[%s8807_s25 + $0x628] sm:$0xff]  ;;  %v870_v21 = vld [vmem:[%s8807_s25 + $0x660] sm:$0xff] }
  0x43   : > { %1711 = vmatpush1.bf16.msra.mxu0 %v8260_v28  ;;  %v8305_v28 = vld [vmem:[%s11130_s3 + $0x1b4] ss:$8 sps:$4 sm:$0xff]  }
  0x44   : > { %1712 = vmatprep.subr.bf16.mxu0 %v8261_v29  ;;  %v933_v29 = vpack.c.bf16 %v758_v23, %v751_v22  ;;  %v989_v23 = vpack.c.bf16 %v870_v21, %v863_v20  ;;  %v738_v20 = vld [vmem:[%s8807_s25 + $0x240] sm:$0xff]  ;;  %v745_v21 = vld [vmem:[%s8807_s25 + $0x278] sm:$0xff] }
  0x47   : > { %1713 = vmatpush1.bf16.msra.mxu0 %v8263_v30  ;;  %v750_v30 = vld [vmem:[%s8807_s25 + $0x2a0] sm:$0xff] }
  0x48   : > { %1714 = vmatprep.subr.bf16.mxu0 %v8264_v31  ;;  %v757_v31 = vld [vmem:[%s8807_s25 + $0x2d8] sm:$0xff] }
  0x4b   : > { %1715 = vmatpush1.bf16.msra.mxu0 %v8266_v32  ;;  %v765_v32 = vld [vmem:[%s8807_s25 + $0x318] sm:$0xff] }
  0x4c   : > { %1716 = vmatprep.subr.bf16.mxu0 %v8267_v33  ;;  %v772_v33 = vld [vmem:[%s8807_s25 + $0x350] sm:$0xff] }
  0x4d   : > { %v940_v39 = vpack.c.bf16 %v772_v33, %v765_v32  ;;  %v669_v32 = vld [vmem:[%s8807_s25 + $0x18] sm:$0xff]  ;;  %v676_v33 = vld [vmem:[%s8807_s25 + $0x50] sm:$0xff] }
  0x4f   : > { %1717 = vmatpush1.bf16.msra.mxu0 %v8269_v34  ;;  %v8303_v34 = vld [vmem:[%s11130_s3 + $0x1b0] ss:$8 sps:$4 sm:$0xff]  }
  0x50   : > { %1879 = vmatprep.subr.bf16.mxu0 %v8272_v37  ;;  %v932_v37 = vpack.c.bf16 %v757_v31, %v750_v30  ;;  %v876_v30 = vld [vmem:[%s8807_s25 + $0x690] sm:$0xff]  ;;  %v883_v31 = vld [vmem:[%s8807_s25 + $0x6c8] sm:$0xff] }
  0x52   : > { %1719 = vmatmul.mubr.bf16.vlgmr.msra.gmra.mrb[0].mxu0 %v890_v40  ;;  %v764_v40 = vld [vmem:[%s8807_s25 + $0x310] sm:$0xff] }
  0x53   : > { %1880 = vmatpush1.bf16.msra.mxu0 %v8270_v41  ;;  %1728 = vmatprep.mubr.bf16.mxu0 %v898_v42  ;;  %v771_v41 = vld [vmem:[%s8807_s25 + $0x348] sm:$0xff] }
  0x54   : > { %1881 = vmatprep.subr.bf16.mxu0 %v8275_v43  ;;  %v779_v42 = vld [vmem:[%s8807_s25 + $0x388] sm:$0xff]  ;;  %v786_v43 = vld [vmem:[%s8807_s25 + $0x3c0] sm:$0xff]  ;;  %v939_v47 = vpack.c.bf16 %v771_v41, %v764_v40 }
  0x55   : > { %v8318_v40 = vld [vmem:[%s11130_s3 + $0x200] ss:$8 sps:$4 sm:$0xff]  }
  0x57   : > { %1882 = vmatpush1.bf16.msra.mxu0 %v8273_v46  ;;  %v8312_v46 = vld [vmem:[%s11130_s3 + $0x1e0] ss:$8 sps:$4 sm:$0xff]  }
  0x58   : > { %1883 = vmatprep.subr.bf16.mxu0 %v8278_v49  ;;  %v947_v49 = vpack.c.bf16 %v786_v43, %v779_v42  ;;  %v8323_v42 = vld [vmem:[%s11130_s3 + $0x214] ss:$8 sps:$4 sm:$0xff]  }
  0x5a   : > { %1729 = vmatmul.mubr.bf16.gmra.mrb[4].mxu0 %v897_v51  ;;  %v785_v51 = vld [vmem:[%s8807_s25 + $0x3b8] sm:$0xff] }
  0x5b   : > { %1738 = vmatprep.mubr.bf16.mxu0 %v905_v53  ;;  %1884 = vmatpush1.bf16.msra.mxu0 %v8276_v50  ;;  %v778_v50 = vld [vmem:[%s8807_s25 + $0x380] sm:$0xff]  ;;  %v800_v53 = vld [vmem:[%s8807_s25 + $0x430] sm:$0xff] }
  0x5c   : > { %1885 = vmatprep.subr.bf16.mxu0 %v8281_v52  ;;  %v793_v52 = vld [vmem:[%s8807_s25 + $0x3f8] sm:$0xff]  ;;  %v946_v56 = vpack.c.bf16 %v785_v51, %v778_v50  ;;  %v8324_v50 = vld [vmem:[%s11130_s3 + $0x220] ss:$8 sps:$4 sm:$0xff]  }
  0x5d   : > { %v954_v57 = vpack.c.bf16 %v800_v53, %v793_v52  ;;  %v8329_v52 = vld [vmem:[%s11130_s3 + $0x234] ss:$8 sps:$4 sm:$0xff]  }
  0x5f   : > { %1886 = vmatpush1.bf16.msra.mxu0 %v8279_v58  ;;  %v792_v58 = vld [vmem:[%s8807_s25 + $0x3f0] sm:$0xff] }
  0x60   : > { %1887 = vmatprep.subr.bf16.mxu0 %v8284_v59  ;;  %v799_v59 = vld [vmem:[%s8807_s25 + $0x428] sm:$0xff] }
  0x62   : > { %1739 = vmatmul.mubr.bf16.gmra.mrb[8].mxu0 %v904_v61  ;;  %v814_v61 = vld [vmem:[%s8807_s25 + $0x4a0] sm:$0xff] }
  0x63   : > { %1748 = vmatprep.mubr.bf16.mxu0 %v912_v63  ;;  %1888 = vmatpush1.bf16.msra.mxu0 %v8282_v60  ;;  %v807_v60 = vld [vmem:[%s8807_s25 + $0x468] sm:$0xff] }
  0x64   : > { %1889 = vmatprep.subr.bf16.mxu0 %v8287_v62  ;;  %v953_v62 = vpack.c.bf16 %v799_v59, %v792_v58  ;;  %v961_v63 = vpack.c.bf16 %v814_v61, %v807_v60  ;;  %v8327_v58 = vld [vmem:[%s11130_s3 + $0x230] ss:$8 sps:$4 sm:$0xff]   ;;  %v8332_v59 = vld [vmem:[%s11130_s3 + $0x244] ss:$8 sps:$4 sm:$0xff]  }
  0x67   : > { %1890 = vmatpush1.bf16.msra.mxu0 %v8285_v4  ;;  %v960_v4 = vpack.c.bf16 %v813_v1, %v806_v0  ;;  %v710_v0 = vld [vmem:[%s8807_s25 + $0x160] sm:$0xff]  ;;  %v717_v1 = vld [vmem:[%s8807_s25 + $0x198] sm:$0xff] }
  0x68   : > { %1891 = vmatprep.subr.bf16.mxu0 %v8290_v5  ;;  %v968_v5 = vpack.c.bf16 %v828_v3, %v821_v2  ;;  %v8333_v2 = vld [vmem:[%s11130_s3 + $0x250] ss:$8 sps:$4 sm:$0xff]  }
  0x69   : > { %v725_v3 = vld [vmem:[%s8807_s25 + $0x1d8] sm:$0xff] }
  0x6a   : > { %1749 = vmatmul.mubr.bf16.gmra.mrb[12].mxu0 %v911_v7  ;;  %v827_v7 = vld [vmem:[%s8807_s25 + $0x508] sm:$0xff] }
  0x6b   : > { %1758 = vmatprep.mubr.bf16.mxu0 %v919_v9  ;;  %1892 = vmatpush1.bf16.msra.mxu0 %v8288_v6  ;;  %v820_v6 = vld [vmem:[%s8807_s25 + $0x4d0] sm:$0xff]  ;;  %v842_v9 = vld [vmem:[%s8807_s25 + $0x580] sm:$0xff] }
  0x6c   : > { %1893 = vmatprep.subr.bf16.mxu0 %v8293_v8  ;;  %v835_v8 = vld [vmem:[%s8807_s25 + $0x548] sm:$0xff]  ;;  %v967_v10 = vpack.c.bf16 %v827_v7, %v820_v6  ;;  %v913_v6 = vpack.c.bf16 %v717_v1, %v710_v0  ;;  %v808_v0 = vld [vmem:[%s8807_s25 + $0x470] sm:$0xff] }
  0x6d   : > { %v975_v11 = vpack.c.bf16 %v842_v9, %v835_v8  ;;  %v8336_v8 = vld [vmem:[%s11130_s3 + $0x260] ss:$8 sps:$4 sm:$0xff]   ;;  %v8341_v9 = vld [vmem:[%s11130_s3 + $0x274] ss:$8 sps:$4 sm:$0xff]  }
  0x6e   : > { %v815_v1 = vld [vmem:[%s8807_s25 + $0x4a8] sm:$0xff] }
  0x6f   : > { %1894 = vmatpush1.bf16.msra.mxu0 %v8291_v14  ;;  %v849_v14 = vld [vmem:[%s8807_s25 + $0x5b8] sm:$0xff] }
  0x70   : > { %1895 = vmatprep.subr.bf16.mxu0 %v8296_v15  ;;  %v856_v15 = vld [vmem:[%s8807_s25 + $0x5f0] sm:$0xff] }
  0x72   : > { %1759 = vmatmul.mubr.bf16.gmra.mrb[16].mxu0 %v918_v17  ;;  %v982_v17 = vpack.c.bf16 %v856_v15, %v849_v14  ;;  %v746_v14 = vld [vmem:[%s8807_s25 + $0x280] sm:$0xff] }
  0x73   : > { %1768 = vmatprep.mubr.bf16.mxu0 %v926_v19  ;;  %1896 = vmatpush1.bf16.msra.mxu0 %v8294_v16  ;;  %v974_v16 = vpack.c.bf16 %v841_v13, %v834_v12  ;;  %v855_v19 = vld [vmem:[%s8807_s25 + $0x5e8] sm:$0xff]  ;;  %v8339_v12 = vld [vmem:[%s11130_s3 + $0x270] ss:$8 sps:$4 sm:$0xff]  }
  0x74   : > { %1897 = vmatprep.subr.bf16.mxu0 %v8299_v18  ;;  %v848_v18 = vld [vmem:[%s8807_s25 + $0x5b0] sm:$0xff]  ;;  %v739_v13 = vld [vmem:[%s8807_s25 + $0x248] sm:$0xff] }
  0x75   : > { %v981_v22 = vpack.c.bf16 %v855_v19, %v848_v18  ;;  %v8344_v15 = vld [vmem:[%s11130_s3 + $0x284] ss:$8 sps:$4 sm:$0xff]   ;;  %v8342_v18 = vld [vmem:[%s11130_s3 + $0x280] ss:$8 sps:$4 sm:$0xff]   ;;  %v8347_v19 = vld [vmem:[%s11130_s3 + $0x294] ss:$8 sps:$4 sm:$0xff]  }
  0x77   : > { %1898 = vmatpush1.bf16.msra.mxu0 %v8297_v24  ;;  %v862_v24 = vld [vmem:[%s8807_s25 + $0x620] sm:$0xff] }
  0x78   : > { %1899 = vmatprep.subr.bf16.mxu0 %v8302_v25  ;;  %v869_v25 = vld [vmem:[%s8807_s25 + $0x658] sm:$0xff] }
  0x7a   : > { %1769 = vmatmul.mubr.bf16.gmra.mrb[20].mxu0 %v925_v27  ;;  %v884_v27 = vld [vmem:[%s8807_s25 + $0x6d0] sm:$0xff] }
  0x7b   : > { %1778 = vmatprep.mubr.bf16.mxu0 %v933_v29  ;;  %1900 = vmatpush1.bf16.msra.mxu0 %v8300_v26  ;;  %v877_v26 = vld [vmem:[%s8807_s25 + $0x698] sm:$0xff] }
  0x7c   : > { %1901 = vmatprep.subr.bf16.mxu0 %v8305_v28  ;;  %v988_v28 = vpack.c.bf16 %v869_v25, %v862_v24  ;;  %v996_v29 = vpack.c.bf16 %v884_v27, %v877_v26  ;;  %v760_v24 = vld [vmem:[%s8807_s25 + $0x2f0] sm:$0xff]  ;;  %v8350_v25 = vld [vmem:[%s11130_s3 + $0x2a4] ss:$8 sps:$4 sm:$0xff]   ;;  %v927_v26 = vpack.c.bf16 %v745_v21, %v738_v20  ;;  %v865_v20 = vld [vmem:[%s8807_s25 + $0x638] sm:$0xff] }
  0x7d   : > { %v872_v21 = vld [vmem:[%s8807_s25 + $0x670] sm:$0xff] }
  0x7f   : > { %1902 = vmatpush1.bf16.msra.mxu0 %v8303_v34  ;;  %v995_v34 = vpack.c.bf16 %v883_v31, %v876_v30  ;;  %v752_v30 = vld [vmem:[%s8807_s25 + $0x2b0] sm:$0xff]  ;;  %v759_v31 = vld [vmem:[%s8807_s25 + $0x2e8] sm:$0xff] }
  0x80   : > { %1903 = vmatprep.subr.bf16.mxu0 %v8308_v35  ;;  %v893_v35 = vpack.c.bf16 %v676_v33, %v669_v32  ;;  %v8351_v32 = vld [vmem:[%s11130_s3 + $0x2b0] ss:$8 sps:$4 sm:$0xff]   ;;  %v767_v33 = vld [vmem:[%s8807_s25 + $0x328] sm:$0xff] }
  0x82   : > { %1779 = vmatmul.mubr.bf16.gmra.mrb[24].mxu0 %v932_v37  ;;  %v675_v37 = vld [vmem:[%s8807_s25 + $0x48] sm:$0xff] }
  0x83   : > { %1788 = vmatprep.mubr.bf16.mxu0 %v940_v39  ;;  %1904 = vmatpush1.bf16.msra.mxu0 %v8306_v36  ;;  %v668_v36 = vld [vmem:[%s8807_s25 + $0x10] sm:$0xff]  ;;  %v690_v39 = vld [vmem:[%s8807_s25 + $0xc0] sm:$0xff] }
  0x84   : > { %1905 = vmatprep.subr.bf16.mxu0 %v8311_v38  ;;  %v683_v38 = vld [vmem:[%s8807_s25 + $0x88] sm:$0xff]  ;;  %v892_v41 = vpack.c.bf16 %v675_v37, %v668_v36  ;;  %v934_v36 = vpack.c.bf16 %v759_v31, %v752_v30  ;;  %v878_v30 = vld [vmem:[%s8807_s25 + $0x6a0] sm:$0xff]  ;;  %v885_v31 = vld [vmem:[%s8807_s25 + $0x6d8] sm:$0xff] }
  0x85   : > { %v900_v43 = vpack.c.bf16 %v690_v39, %v683_v38  ;;  %v8354_v38 = vld [vmem:[%s11130_s3 + $0x2c0] ss:$8 sps:$4 sm:$0xff]   ;;  %v8359_v39 = vld [vmem:[%s11130_s3 + $0x2d4] ss:$8 sps:$4 sm:$0xff]  }
  0x87   : > { %1906 = vmatpush1.bf16.msra.mxu0 %v8309_v44  ;;  %v682_v44 = vld [vmem:[%s8807_s25 + $0x80] sm:$0xff] }
  0x88   : > { %1907 = vmatprep.subr.bf16.mxu0 %v8314_v45  ;;  %v689_v45 = vld [vmem:[%s8807_s25 + $0xb8] sm:$0xff] }
  0x89   : > { %v899_v51 = vpack.c.bf16 %v689_v45, %v682_v44  ;;  %v788_v44 = vld [vmem:[%s8807_s25 + $0x3d0] sm:$0xff]  ;;  %v8362_v45 = vld [vmem:[%s11130_s3 + $0x2e4] ss:$8 sps:$4 sm:$0xff]  }
  0x8a   : > { %1789 = vmatmul.mubr.bf16.gmra.mrb[28].mxu0 %v939_v47  ;;  %v697_v47 = vld [vmem:[%s8807_s25 + $0xf8] sm:$0xff] }
  0x8b   : > { %1798 = vmatprep.mubr.bf16.mxu0 %v947_v49  ;;  %1908 = vmatpush1.bf16.msra.mxu0 %v8312_v46  ;;  %v8321_v46 = vld [vmem:[%s11130_s3 + $0x210] ss:$8 sps:$4 sm:$0xff]   ;;  %v8326_v49 = vld [vmem:[%s11130_s3 + $0x224] ss:$8 sps:$4 sm:$0xff]  }
  0x8c   : > { %1909 = vmatprep.subr.bf16.mxu0 %v8317_v48  ;;  %v704_v48 = vld [vmem:[%s8807_s25 + $0x130] sm:$0xff] }
  0x8d   : > { %v907_v53 = vpack.c.bf16 %v704_v48, %v697_v47  ;;  %v8360_v48 = vld [vmem:[%s11130_s3 + $0x2e0] ss:$8 sps:$4 sm:$0xff]  }
  0x8f   : > { %1910 = vmatpush1.bf16.msra.mxu0 %v8315_v54  ;;  %v696_v54 = vld [vmem:[%s8807_s25 + $0xf0] sm:$0xff] }
  0x90   : > { %2072 = vmatprep.subr.bf16.mxu0 %v8320_v55  ;;  %v703_v55 = vld [vmem:[%s8807_s25 + $0x128] sm:$0xff] }
  0x91   : > { %v906_v60 = vpack.c.bf16 %v703_v55, %v696_v54  ;;  %v802_v54 = vld [vmem:[%s8807_s25 + $0x440] sm:$0xff] }
  0x92   : > { %1799 = vmatmul.mubr.bf16.gmra.mrb[32].mxu0 %v946_v56  ;;  %v711_v56 = vld [vmem:[%s8807_s25 + $0x168] sm:$0xff] }
  0x93   : > { %1808 = vmatprep.mubr.bf16.mxu0 %v954_v57  ;;  %v718_v57 = vld [vmem:[%s8807_s25 + $0x1a0] sm:$0xff] }
  0x94   : > { %v914_v61 = vpack.c.bf16 %v718_v57, %v711_v56  ;;  %v8368_v55 = vld [vmem:[%s11130_s3 + $0x304] ss:$8 sps:$4 sm:$0xff]  }
  0x9a   : > { %1809 = vmatmul.mubr.bf16.gmra.mrb[36].mxu0 %v953_v62  ;;  %v8330_v62 = vld [vmem:[%s11130_s3 + $0x240] ss:$8 sps:$4 sm:$0xff]  }
  0x9b   : > { %1818 = vmatprep.mubr.bf16.mxu0 %v961_v63  ;;  %v8335_v63 = vld [vmem:[%s11130_s3 + $0x254] ss:$8 sps:$4 sm:$0xff]  }
  0xa2   : > { %1819 = vmatmul.mubr.bf16.gmra.mrb[40].mxu0 %v960_v4  ;;  %v732_v4 = vld [vmem:[%s8807_s25 + $0x210] sm:$0xff] }
  0xa3   : > { %1828 = vmatprep.mubr.bf16.mxu0 %v968_v5  ;;  %v8338_v5 = vld [vmem:[%s11130_s3 + $0x264] ss:$8 sps:$4 sm:$0xff]   ;;  %v921_v7 = vpack.c.bf16 %v732_v4, %v725_v3  ;;  %v962_v4 = vpack.c.bf16 %v815_v1, %v808_v0  ;;  %v712_v0 = vld [vmem:[%s8807_s25 + $0x170] sm:$0xff] }
  0xa4   : > { %v830_v3 = vld [vmem:[%s8807_s25 + $0x520] sm:$0xff]  ;;  %v719_v1 = vld [vmem:[%s8807_s25 + $0x1a8] sm:$0xff] }
  0xaa   : > { %1829 = vmatmul.mubr.bf16.gmra.mrb[44].mxu0 %v967_v10  ;;  %v724_v10 = vld [vmem:[%s8807_s25 + $0x1d0] sm:$0xff] }
  0xab   : > { %1838 = vmatprep.mubr.bf16.mxu0 %v975_v11  ;;  %v731_v11 = vld [vmem:[%s8807_s25 + $0x208] sm:$0xff] }
  0xb2   : > { %1839 = vmatmul.mubr.bf16.gmra.mrb[48].mxu0 %v974_v16  ;;  %v920_v16 = vpack.c.bf16 %v731_v11, %v724_v10 }
  0xb3   : > { %1848 = vmatprep.mubr.bf16.mxu0 %v982_v17  ;;  %v928_v17 = vpack.c.bf16 %v746_v14, %v739_v13  ;;  %v843_v13 = vld [vmem:[%s8807_s25 + $0x588] sm:$0xff] }
  0xb4   : > { %v851_v14 = vld [vmem:[%s8807_s25 + $0x5c8] sm:$0xff] }
  0xba   : > { %1849 = vmatmul.mubr.bf16.gmra.mrb[52].mxu0 %v981_v22  ;;  %v8345_v22 = vld [vmem:[%s11130_s3 + $0x290] ss:$8 sps:$4 sm:$0xff]  }
  0xbb   : > { %1858 = vmatprep.mubr.bf16.mxu0 %v989_v23  ;;  %v753_v23 = vld [vmem:[%s8807_s25 + $0x2b8] sm:$0xff] }
  0xbc   : > { %v935_v27 = vpack.c.bf16 %v760_v24, %v753_v23  ;;  %v991_v23 = vpack.c.bf16 %v872_v21, %v865_v20  ;;  %v864_v24 = vld [vmem:[%s8807_s25 + $0x630] sm:$0xff]  ;;  %v762_v20 = vld [vmem:[%s8807_s25 + $0x300] sm:$0xff] }
  0xc2   : > { %1859 = vmatmul.mubr.bf16.gmra.mrb[56].mxu0 %v988_v28  ;;  %v8348_v28 = vld [vmem:[%s11130_s3 + $0x2a0] ss:$8 sps:$4 sm:$0xff]  }
  0xc3   : > { %1868 = vmatprep.mubr.bf16.mxu0 %v996_v29  ;;  %v8353_v29 = vld [vmem:[%s11130_s3 + $0x2b4] ss:$8 sps:$4 sm:$0xff]  }
  0xca   : > { %1869 = vmatmul.mubr.bf16.gmra.mrb[60].mxu0 %v995_v34  ;;  %v774_v34 = vld [vmem:[%s8807_s25 + $0x360] sm:$0xff] }
  0xcb   : > { %1911 = vmatprep.mubr.bf16.mxu0 %v893_v35  ;;  %v8356_v35 = vld [vmem:[%s11130_s3 + $0x2c4] ss:$8 sps:$4 sm:$0xff]   ;;  %v942_v37 = vpack.c.bf16 %v774_v34, %v767_v33  ;;  %v997_v34 = vpack.c.bf16 %v885_v31, %v878_v30 }
  0xcc   : > { %v678_v33 = vld [vmem:[%s8807_s25 + $0x60] sm:$0xff]  ;;  %v775_v30 = vld [vmem:[%s8807_s25 + $0x368] sm:$0xff] }
  0xcd   : > { %v783_v31 = vld [vmem:[%s8807_s25 + $0x3a8] sm:$0xff] }
  0xd2   : > { %1912 = vmatmul.mubr.bf16.vlgmr.msra.gmra.mrb[0].mxu0 %v892_v41  ;;  %v773_v41 = vld [vmem:[%s8807_s25 + $0x358] sm:$0xff] }
  0xd3   : > { %2073 = vmatpush1.bf16.msra.mxu0 %v8318_v40  ;;  %1921 = vmatprep.mubr.bf16.mxu0 %v900_v43  ;;  %v766_v40 = vld [vmem:[%s8807_s25 + $0x320] sm:$0xff]  ;;  %v781_v43 = vld [vmem:[%s8807_s25 + $0x398] sm:$0xff] }
  0xd4   : > { %2074 = vmatprep.subr.bf16.mxu0 %v8323_v42  ;;  %v8357_v42 = vld [vmem:[%s11130_s3 + $0x2d0] ss:$8 sps:$4 sm:$0xff]   ;;  %v949_v47 = vpack.c.bf16 %v788_v44, %v781_v43  ;;  %v8371_v43 = vld [vmem:[%s11130_s3 + $0x314] ss:$8 sps:$4 sm:$0xff]  }
  0xd5   : > { %v684_v44 = vld [vmem:[%s8807_s25 + $0x90] sm:$0xff] }
  0xd7   : > { %2075 = vmatpush1.bf16.msra.mxu0 %v8321_v46  ;;  %v941_v46 = vpack.c.bf16 %v773_v41, %v766_v40  ;;  %v8366_v41 = vld [vmem:[%s11130_s3 + $0x300] ss:$8 sps:$4 sm:$0xff]  }
  0xd8   : > { %2076 = vmatprep.subr.bf16.mxu0 %v8326_v49  ;;  %v8365_v49 = vld [vmem:[%s11130_s3 + $0x2f4] ss:$8 sps:$4 sm:$0xff]  }
  0xda   : > { %1922 = vmatmul.mubr.bf16.gmra.mrb[4].mxu0 %v899_v51  ;;  %v787_v51 = vld [vmem:[%s8807_s25 + $0x3c8] sm:$0xff] }
  0xdb   : > { %1931 = vmatprep.mubr.bf16.mxu0 %v907_v53  ;;  %2077 = vmatpush1.bf16.msra.mxu0 %v8324_v50  ;;  %v780_v50 = vld [vmem:[%s8807_s25 + $0x390] sm:$0xff]  ;;  %v795_v53 = vld [vmem:[%s8807_s25 + $0x408] sm:$0xff] }
  0xdc   : > { %2078 = vmatprep.subr.bf16.mxu0 %v8329_v52  ;;  %v8363_v52 = vld [vmem:[%s11130_s3 + $0x2f0] ss:$8 sps:$4 sm:$0xff]   ;;  %v948_v56 = vpack.c.bf16 %v787_v51, %v780_v50  ;;  %v956_v57 = vpack.c.bf16 %v802_v54, %v795_v53  ;;  %v8377_v53 = vld [vmem:[%s11130_s3 + $0x334] ss:$8 sps:$4 sm:$0xff]   ;;  %v698_v54 = vld [vmem:[%s8807_s25 + $0x100] sm:$0xff] }
  0xdf   : > { %2079 = vmatpush1.bf16.msra.mxu0 %v8327_v58  ;;  %v794_v58 = vld [vmem:[%s8807_s25 + $0x400] sm:$0xff] }
  0xe0   : > { %2080 = vmatprep.subr.bf16.mxu0 %v8332_v59  ;;  %v801_v59 = vld [vmem:[%s8807_s25 + $0x438] sm:$0xff] }
  0xe2   : > { %1932 = vmatmul.mubr.bf16.gmra.mrb[8].mxu0 %v906_v60  ;;  %v809_v60 = vld [vmem:[%s8807_s25 + $0x478] sm:$0xff] }
  0xe3   : > { %1941 = vmatprep.mubr.bf16.mxu0 %v914_v61  ;;  %2081 = vmatpush1.bf16.msra.mxu0 %v8330_v62  ;;  %v816_v61 = vld [vmem:[%s8807_s25 + $0x4b0] sm:$0xff]  ;;  %v955_v62 = vpack.c.bf16 %v801_v59, %v794_v58  ;;  %v8380_v59 = vld [vmem:[%s11130_s3 + $0x344] ss:$8 sps:$4 sm:$0xff]  }
  0xe4   : > { %2082 = vmatprep.subr.bf16.mxu0 %v8335_v63  ;;  %v963_v63 = vpack.c.bf16 %v816_v61, %v809_v60  ;;  %v720_v58 = vld [vmem:[%s8807_s25 + $0x1b0] sm:$0xff] }
  0xe7   : > { %2083 = vmatpush1.bf16.msra.mxu0 %v8333_v2  ;;  %v823_v2 = vld [vmem:[%s8807_s25 + $0x4e8] sm:$0xff] }
  0xe8   : > { %2084 = vmatprep.subr.bf16.mxu0 %v8338_v5  ;;  %v970_v5 = vpack.c.bf16 %v830_v3, %v823_v2  ;;  %v8381_v2 = vld [vmem:[%s11130_s3 + $0x350] ss:$8 sps:$4 sm:$0xff]   ;;  %v727_v3 = vld [vmem:[%s8807_s25 + $0x1e8] sm:$0xff] }
  0xea   : > { %1942 = vmatmul.mubr.bf16.gmra.mrb[12].mxu0 %v913_v6  ;;  %v822_v6 = vld [vmem:[%s8807_s25 + $0x4e0] sm:$0xff] }
  0xeb   : > { %1951 = vmatprep.mubr.bf16.mxu0 %v921_v7  ;;  %2085 = vmatpush1.bf16.msra.mxu0 %v8336_v8  ;;  %v829_v7 = vld [vmem:[%s8807_s25 + $0x518] sm:$0xff] }
  0xec   : > { %2086 = vmatprep.subr.bf16.mxu0 %v8341_v9  ;;  %v837_v8 = vld [vmem:[%s8807_s25 + $0x558] sm:$0xff]  ;;  %v844_v9 = vld [vmem:[%s8807_s25 + $0x590] sm:$0xff]  ;;  %v969_v10 = vpack.c.bf16 %v829_v7, %v822_v6  ;;  %v915_v6 = vpack.c.bf16 %v719_v1, %v712_v0 }
  0xed   : > { %v977_v11 = vpack.c.bf16 %v844_v9, %v837_v8  ;;  %v8384_v8 = vld [vmem:[%s11130_s3 + $0x360] ss:$8 sps:$4 sm:$0xff]   ;;  %v8389_v9 = vld [vmem:[%s11130_s3 + $0x374] ss:$8 sps:$4 sm:$0xff]  }
  0xee   : > { %v852_v1 = vld [vmem:[%s8807_s25 + $0x5d0] sm:$0xff] }
  0xef   : > { %2087 = vmatpush1.bf16.msra.mxu0 %v8339_v12  ;;  %v836_v12 = vld [vmem:[%s8807_s25 + $0x550] sm:$0xff] }
  0xf0   : > { %2088 = vmatprep.subr.bf16.mxu0 %v8344_v15  ;;  %v858_v15 = vld [vmem:[%s8807_s25 + $0x600] sm:$0xff] }
  0xf2   : > { %1952 = vmatmul.mubr.bf16.gmra.mrb[16].mxu0 %v920_v16  ;;  %v976_v16 = vpack.c.bf16 %v843_v13, %v836_v12  ;;  %v8387_v12 = vld [vmem:[%s11130_s3 + $0x370] ss:$8 sps:$4 sm:$0xff]  }
  0xf3   : > { %1961 = vmatprep.mubr.bf16.mxu0 %v928_v17  ;;  %2089 = vmatpush1.bf16.msra.mxu0 %v8342_v18  ;;  %v984_v17 = vpack.c.bf16 %v858_v15, %v851_v14  ;;  %v850_v18 = vld [vmem:[%s8807_s25 + $0x5c0] sm:$0xff]  ;;  %v741_v13 = vld [vmem:[%s8807_s25 + $0x258] sm:$0xff]  ;;  %v748_v14 = vld [vmem:[%s8807_s25 + $0x290] sm:$0xff] }
  0xf4   : > { %2090 = vmatprep.subr.bf16.mxu0 %v8347_v19  ;;  %v857_v19 = vld [vmem:[%s8807_s25 + $0x5f8] sm:$0xff] }
  0xf7   : > { %2091 = vmatpush1.bf16.msra.mxu0 %v8345_v22  ;;  %v983_v22 = vpack.c.bf16 %v857_v19, %v850_v18  ;;  %v747_v18 = vld [vmem:[%s8807_s25 + $0x288] sm:$0xff] }
  0xf8   : > { %2092 = vmatprep.subr.bf16.mxu0 %v8350_v25  ;;  %v871_v25 = vld [vmem:[%s8807_s25 + $0x668] sm:$0xff] }
  0xf9   : > { %v755_v19 = vld [vmem:[%s8807_s25 + $0x2c8] sm:$0xff] }
  0xfa   : > { %1962 = vmatmul.mubr.bf16.gmra.mrb[20].mxu0 %v927_v26  ;;  %v879_v26 = vld [vmem:[%s8807_s25 + $0x6a8] sm:$0xff] }
  0xfb   : > { %1971 = vmatprep.mubr.bf16.mxu0 %v935_v27  ;;  %2093 = vmatpush1.bf16.msra.mxu0 %v8348_v28  ;;  %v886_v27 = vld [vmem:[%s8807_s25 + $0x6e0] sm:$0xff]  ;;  %v990_v28 = vpack.c.bf16 %v871_v25, %v864_v24  ;;  %v761_v24 = vld [vmem:[%s8807_s25 + $0x2f8] sm:$0xff] }
  0xfc   : > { %2094 = vmatprep.subr.bf16.mxu0 %v8353_v29  ;;  %v998_v29 = vpack.c.bf16 %v886_v27, %v879_v26  ;;  %v769_v25 = vld [vmem:[%s8807_s25 + $0x338] sm:$0xff]  ;;  %v776_v26 = vld [vmem:[%s8807_s25 + $0x370] sm:$0xff] }
  0xff   : > { %2095 = vmatpush1.bf16.msra.mxu0 %v8351_v32  ;;  %v671_v32 = vld [vmem:[%s8807_s25 + $0x28] sm:$0xff] }
 0x100   : > { %2096 = vmatprep.subr.bf16.mxu0 %v8356_v35  ;;  %v895_v35 = vpack.c.bf16 %v678_v33, %v671_v32  ;;  %v790_v32 = vld [vmem:[%s8807_s25 + $0x3e0] sm:$0xff] }
 0x102   : > { %1972 = vmatmul.mubr.bf16.gmra.mrb[24].mxu0 %v934_v36  ;;  %v670_v36 = vld [vmem:[%s8807_s25 + $0x20] sm:$0xff] }
 0x103   : > { %1981 = vmatprep.mubr.bf16.mxu0 %v942_v37  ;;  %2097 = vmatpush1.bf16.msra.mxu0 %v8354_v38  ;;  %v677_v37 = vld [vmem:[%s8807_s25 + $0x58] sm:$0xff] }
 0x104   : > { %2098 = vmatprep.subr.bf16.mxu0 %v8359_v39  ;;  %v685_v38 = vld [vmem:[%s8807_s25 + $0x98] sm:$0xff]  ;;  %v692_v39 = vld [vmem:[%s8807_s25 + $0xd0] sm:$0xff]  ;;  %v894_v40 = vpack.c.bf16 %v677_v37, %v670_v36 }
 0x105   : > { %v789_v36 = vld [vmem:[%s8807_s25 + $0x3d8] sm:$0xff] }
 0x106   : > { %v797_v37 = vld [vmem:[%s8807_s25 + $0x418] sm:$0xff] }
 0x107   : > { %2099 = vmatpush1.bf16.msra.mxu0 %v8357_v42  ;;  %v902_v42 = vpack.c.bf16 %v692_v39, %v685_v38  ;;  %v804_v38 = vld [vmem:[%s8807_s25 + $0x450] sm:$0xff] }
 0x108   : > { %2100 = vmatprep.subr.bf16.mxu0 %v8362_v45  ;;  %v691_v45 = vld [vmem:[%s8807_s25 + $0xc8] sm:$0xff] }
 0x109   : > { %v901_v50 = vpack.c.bf16 %v691_v45, %v684_v44  ;;  %v818_v44 = vld [vmem:[%s8807_s25 + $0x4c0] sm:$0xff] }
 0x10a   : > { %1982 = vmatmul.mubr.bf16.gmra.mrb[28].mxu0 %v941_v46  ;;  %v8369_v46 = vld [vmem:[%s11130_s3 + $0x310] ss:$8 sps:$4 sm:$0xff]  }
 0x10b   : > { %1991 = vmatprep.mubr.bf16.mxu0 %v949_v47  ;;  %2101 = vmatpush1.bf16.msra.mxu0 %v8360_v48  ;;  %v699_v47 = vld [vmem:[%s8807_s25 + $0x108] sm:$0xff]  ;;  %v706_v48 = vld [vmem:[%s8807_s25 + $0x140] sm:$0xff] }
 0x10c   : > { %2102 = vmatprep.subr.bf16.mxu0 %v8365_v49  ;;  %v8374_v49 = vld [vmem:[%s11130_s3 + $0x324] ss:$8 sps:$4 sm:$0xff]   ;;  %v909_v51 = vpack.c.bf16 %v706_v48, %v699_v47  ;;  %v817_v48 = vld [vmem:[%s8807_s25 + $0x4b8] sm:$0xff] }
 0x10d   : > { %v810_v47 = vld [vmem:[%s8807_s25 + $0x480] sm:$0xff] }
 0x10f   : > { %2103 = vmatpush1.bf16.msra.mxu0 %v8363_v52  ;;  %v8372_v52 = vld [vmem:[%s11130_s3 + $0x320] ss:$8 sps:$4 sm:$0xff]  }
 0x110   : > { %2265 = vmatprep.subr.bf16.mxu0 %v8368_v55  ;;  %v705_v55 = vld [vmem:[%s8807_s25 + $0x138] sm:$0xff] }
 0x111   : > { %v908_v60 = vpack.c.bf16 %v705_v55, %v698_v54  ;;  %v831_v54 = vld [vmem:[%s8807_s25 + $0x528] sm:$0xff] }
 0x112   : > { %1992 = vmatmul.mubr.bf16.gmra.mrb[32].mxu0 %v948_v56  ;;  %v8375_v56 = vld [vmem:[%s11130_s3 + $0x330] ss:$8 sps:$4 sm:$0xff]   ;;  %v839_v55 = vld [vmem:[%s8807_s25 + $0x568] sm:$0xff] }
 0x113   : > { %2001 = vmatprep.mubr.bf16.mxu0 %v956_v57  ;;  %v713_v57 = vld [vmem:[%s8807_s25 + $0x178] sm:$0xff] }
 0x114   : > { %v916_v61 = vpack.c.bf16 %v720_v58, %v713_v57 }
 0x11a   : > { %2002 = vmatmul.mubr.bf16.gmra.mrb[36].mxu0 %v955_v62  ;;  %v8378_v62 = vld [vmem:[%s11130_s3 + $0x340] ss:$8 sps:$4 sm:$0xff]  }
 0x11b   : > { %2011 = vmatprep.mubr.bf16.mxu0 %v963_v63  ;;  %v8383_v63 = vld [vmem:[%s11130_s3 + $0x354] ss:$8 sps:$4 sm:$0xff]  }
 0x122   : > { %2012 = vmatmul.mubr.bf16.gmra.mrb[40].mxu0 %v962_v4  ;;  %v734_v4 = vld [vmem:[%s8807_s25 + $0x220] sm:$0xff] }
 0x123   : > { %2021 = vmatprep.mubr.bf16.mxu0 %v970_v5  ;;  %v8386_v5 = vld [vmem:[%s11130_s3 + $0x364] ss:$8 sps:$4 sm:$0xff]   ;;  %v923_v7 = vpack.c.bf16 %v734_v4, %v727_v3 }
 0x124   : > { %v867_v3 = vld [vmem:[%s8807_s25 + $0x648] sm:$0xff]  ;;  %v874_v4 = vld [vmem:[%s8807_s25 + $0x680] sm:$0xff] }
 0x12a   : > { %2022 = vmatmul.mubr.bf16.gmra.mrb[44].mxu0 %v969_v10  ;;  %v726_v10 = vld [vmem:[%s8807_s25 + $0x1e0] sm:$0xff] }
 0x12b   : > { %2031 = vmatprep.mubr.bf16.mxu0 %v977_v11  ;;  %v733_v11 = vld [vmem:[%s8807_s25 + $0x218] sm:$0xff] }
 0x12c   : > { %v922_v15 = vpack.c.bf16 %v733_v11, %v726_v10  ;;  %v888_v10 = vld [vmem:[%s8807_s25 + $0x6f0] sm:$0xff] }
 0x132   : > { %2032 = vmatmul.mubr.bf16.gmra.mrb[48].mxu0 %v976_v16  ;;  %v930_v16 = vpack.c.bf16 %v748_v14, %v741_v13  ;;  %v880_v13 = vld [vmem:[%s8807_s25 + $0x6b0] sm:$0xff]  ;;  %v887_v14 = vld [vmem:[%s8807_s25 + $0x6e8] sm:$0xff] }
 0x133   : > { %2041 = vmatprep.mubr.bf16.mxu0 %v984_v17  ;;  %v740_v17 = vld [vmem:[%s8807_s25 + $0x250] sm:$0xff] }
 0x134   : > { %v929_v21 = vpack.c.bf16 %v747_v18, %v740_v17  ;;  %v8391_v17 = vld [vmem:[%s11132_s23] sm:$0xff]   ;;  %v8392_v18 = vld [vmem:[%s11132_s23 + $0x48] sm:$0xff]  }
 0x13a   : > { %2042 = vmatmul.mubr.bf16.gmra.mrb[52].mxu0 %v983_v22  ;;  %v937_v22 = vpack.c.bf16 %v762_v20, %v755_v19  ;;  %v8647_v19 = vmov 0   ;;  %v672_v20 = vld [vmem:[%s8807_s25 + $0x30] sm:$0xff] }
 0x13b   : > { %2051 = vmatprep.mubr.bf16.mxu0 %v991_v23  ;;  %v754_v23 = vld [vmem:[%s8807_s25 + $0x2c0] sm:$0xff] }
 0x13c   : > { %v936_v27 = vpack.c.bf16 %v761_v24, %v754_v23  ;;  %v8394_v24 = vld [vmem:[%s11132_s23 + $0x50] sm:$0xff]  }
 0x142   : > { %2052 = vmatmul.mubr.bf16.gmra.mrb[56].mxu0 %v990_v28  ;;  %v944_v28 = vpack.c.bf16 %v776_v26, %v769_v25  ;;  %v8395_v25 = vld [vmem:[%s11132_s23 + $0x10] sm:$0xff]   ;;  %v8396_v26 = vld [vmem:[%s11132_s23 + $0x58] sm:$0xff]  }
 0x143   : > { %2061 = vmatprep.mubr.bf16.mxu0 %v998_v29  ;;  %v768_v29 = vld [vmem:[%s8807_s25 + $0x330] sm:$0xff] }
 0x144   : > { %v943_v33 = vpack.c.bf16 %v775_v30, %v768_v29  ;;  %v8397_v29 = vld [vmem:[%s11132_s23 + $0x18] sm:$0xff]  }
 0x14a   : > { %2062 = vmatmul.mubr.bf16.gmra.mrb[60].mxu0 %v997_v34  ;;  %v951_v34 = vpack.c.bf16 %v790_v32, %v783_v31  ;;  %v8398_v31 = vld [vmem:[%s11132_s23 + $0x60] sm:$0xff]  }
 0x14b   : > { %2104 = vmatprep.mubr.bf16.mxu0 %v895_v35  ;;  %v782_v35 = vld [vmem:[%s8807_s25 + $0x3a0] sm:$0xff] }
 0x14c   : > { %v950_v39 = vpack.c.bf16 %v789_v36, %v782_v35  ;;  %v8399_v32 = vld [vmem:[%s11132_s23 + $0x20] sm:$0xff]   ;;  %v707_v35 = vld [vmem:[%s8807_s25 + $0x148] sm:$0xff] }
 0x152   : > { %2105 = vmatmul.mubr.bf16.vlgmr.msra.gmra.mrb[0].mxu0 %v894_v40  ;;  %v958_v40 = vpack.c.bf16 %v804_v38, %v797_v37  ;;  %v714_v37 = vld [vmem:[%s8807_s25 + $0x180] sm:$0xff]  ;;  %v721_v38 = vld [vmem:[%s8807_s25 + $0x1b8] sm:$0xff] }
 0x153   : > { %2266 = vmatpush1.bf16.msra.mxu0 %v8366_v41  ;;  %2114 = vmatprep.mubr.bf16.mxu0 %v902_v42  ;;  %v796_v41 = vld [vmem:[%s8807_s25 + $0x410] sm:$0xff]  ;;  %v803_v42 = vld [vmem:[%s8807_s25 + $0x448] sm:$0xff] }
 0x154   : > { %2267 = vmatprep.subr.bf16.mxu0 %v8371_v43  ;;  %v811_v43 = vld [vmem:[%s8807_s25 + $0x488] sm:$0xff]  ;;  %v957_v45 = vpack.c.bf16 %v803_v42, %v796_v41 }
 0x155   : > { %v735_v41 = vld [vmem:[%s8807_s25 + $0x228] sm:$0xff] }
 0x157   : > { %2268 = vmatpush1.bf16.msra.mxu0 %v8369_v46  ;;  %v965_v46 = vpack.c.bf16 %v818_v44, %v811_v43  ;;  %v742_v43 = vld [vmem:[%s8807_s25 + $0x260] sm:$0xff]  ;;  %v749_v44 = vld [vmem:[%s8807_s25 + $0x298] sm:$0xff] }
 0x158   : > { %2269 = vmatprep.subr.bf16.mxu0 %v8374_v49  ;;  %v825_v49 = vld [vmem:[%s8807_s25 + $0x4f8] sm:$0xff] }
 0x15a   : > { %2115 = vmatmul.mubr.bf16.gmra.mrb[4].mxu0 %v901_v50  ;;  %v832_v50 = vld [vmem:[%s8807_s25 + $0x530] sm:$0xff] }
 0x15b   : > { %2124 = vmatprep.mubr.bf16.mxu0 %v909_v51  ;;  %2270 = vmatpush1.bf16.msra.mxu0 %v8372_v52  ;;  %v964_v51 = vpack.c.bf16 %v817_v48, %v810_v47  ;;  %v972_v52 = vpack.c.bf16 %v832_v50, %v825_v49  ;;  %v763_v47 = vld [vmem:[%s8807_s25 + $0x308] sm:$0xff]  ;;  %v770_v49 = vld [vmem:[%s8807_s25 + $0x340] sm:$0xff]  ;;  %v777_v50 = vld [vmem:[%s8807_s25 + $0x378] sm:$0xff] }
 0x15c   : > { %2271 = vmatprep.subr.bf16.mxu0 %v8377_v53  ;;  %v824_v53 = vld [vmem:[%s8807_s25 + $0x4f0] sm:$0xff] }
 0x15d   : > { %v971_v57 = vpack.c.bf16 %v831_v54, %v824_v53  ;;  %v791_v53 = vld [vmem:[%s8807_s25 + $0x3e8] sm:$0xff] }
 0x15f   : > { %2272 = vmatpush1.bf16.msra.mxu0 %v8375_v56  ;;  %v846_v56 = vld [vmem:[%s8807_s25 + $0x5a0] sm:$0xff] }
 0x160   : > { %2273 = vmatprep.subr.bf16.mxu0 %v8380_v59  ;;  %v979_v58 = vpack.c.bf16 %v846_v56, %v839_v55  ;;  %v838_v59 = vld [vmem:[%s8807_s25 + $0x560] sm:$0xff]  ;;  %v805_v56 = vld [vmem:[%s8807_s25 + $0x458] sm:$0xff] }
 0x161   : > { %v798_v55 = vld [vmem:[%s8807_s25 + $0x420] sm:$0xff] }
 0x162   : > { %2125 = vmatmul.mubr.bf16.gmra.mrb[8].mxu0 %v908_v60  ;;  %v845_v60 = vld [vmem:[%s8807_s25 + $0x598] sm:$0xff] }
 0x163   : > { %2134 = vmatprep.mubr.bf16.mxu0 %v916_v61  ;;  %2274 = vmatpush1.bf16.msra.mxu0 %v8378_v62  ;;  %v853_v61 = vld [vmem:[%s8807_s25 + $0x5d8] sm:$0xff]  ;;  %v860_v62 = vld [vmem:[%s8807_s25 + $0x610] sm:$0xff] }
 0x164   : > { %2275 = vmatprep.subr.bf16.mxu0 %v8383_v63  ;;  %v978_v63 = vpack.c.bf16 %v845_v60, %v838_v59  ;;  %v986_v0 = vpack.c.bf16 %v860_v62, %v853_v61  ;;  %v819_v59 = vld [vmem:[%s8807_s25 + $0x4c8] sm:$0xff]  ;;  %v826_v61 = vld [vmem:[%s8807_s25 + $0x500] sm:$0xff]  ;;  %v833_v62 = vld [vmem:[%s8807_s25 + $0x538] sm:$0xff] }
 0x167   : > { %2276 = vmatpush1.bf16.msra.mxu0 %v8381_v2  ;;  %v859_v2 = vld [vmem:[%s8807_s25 + $0x608] sm:$0xff] }
 0x168   : > { %2277 = vmatprep.subr.bf16.mxu0 %v8386_v5  ;;  %v985_v5 = vpack.c.bf16 %v859_v2, %v852_v1  ;;  %v8402_v1 = vld [vmem:[%s11132_s23 + $0x70] sm:$0xff]  }
 0x169   : > { %v8403_v2 = vld [vmem:[%s11132_s23 + $0x30] sm:$0xff]  }
 0x16a   : > { %2135 = vmatmul.mubr.bf16.gmra.mrb[12].mxu0 %v915_v6  ;;  %v993_v6 = vpack.c.bf16 %v874_v4, %v867_v3  ;;  %v8404_v3 = vld [vmem:[%s11132_s23 + $0x78] sm:$0xff]   ;;  %v840_v4 = vld [vmem:[%s8807_s25 + $0x570] sm:$0xff] }
 0x16b   : > { %2144 = vmatprep.mubr.bf16.mxu0 %v923_v7  ;;  %2278 = vmatpush1.bf16.msra.mxu0 %v8384_v8  ;;  %v866_v7 = vld [vmem:[%s8807_s25 + $0x640] sm:$0xff]  ;;  %v873_v8 = vld [vmem:[%s8807_s25 + $0x678] sm:$0xff] }
 0x16c   : > { %2279 = vmatprep.subr.bf16.mxu0 %v8389_v9  ;;  %v881_v9 = vld [vmem:[%s8807_s25 + $0x6b8] sm:$0xff]  ;;  %v992_v11 = vpack.c.bf16 %v873_v8, %v866_v7  ;;  %v854_v8 = vld [vmem:[%s8807_s25 + $0x5e0] sm:$0xff] }
 0x16f   : > { %2280 = vmatpush1.bf16.msra.mxu0 %v8387_v12  ;;  %v1000_v12 = vpack.c.bf16 %v888_v10, %v881_v9  ;;  %v861_v9 = vld [vmem:[%s8807_s25 + $0x618] sm:$0xff] }
 0x170   : > { %v987_v10 = vpack.c.bf16 %v861_v9, %v854_v8 }
 0x172   : > { %2145 = vmatmul.mubr.bf16.gmra.mrb[16].mxu0 %v922_v15  ;;  %v999_v15 = vpack.c.bf16 %v887_v14, %v880_v13  ;;  %v882_v14 = vld [vmem:[%s8807_s25 + $0x6c0] sm:$0xff] }
 0x173   : > { %2154 = vmatprep.mubr.bf16.mxu0 %v930_v16  ;;  %v8390_v16 = vld [vmem:[%s11132_s23 + $0x40] sm:$0xff]  }
 0x174   : > { %7284 = vmatprep.subr.bf16.mxu1 %v8390_v16 }
 0x175   : > { %7285 = vmatpush3.bf16.msra.mxu1 %v8391_v17  ;;  %v1116_v17 = vlaneseq }
 0x176   : > { %7286 = vmatprep.subr.bf16.mxu1 %v8392_v18 }
 0x177   : > { %v9400_v18 = vshrl.u32 %v1116_v17, 7 }
 0x17a   : > { %2155 = vmatmul.mubr.bf16.gmra.mrb[20].mxu0 %v929_v21  ;;  %v679_v21 = vld [vmem:[%s8807_s25 + $0x68] sm:$0xff] }
 0x17b   : > { %2164 = vmatprep.mubr.bf16.mxu0 %v937_v22  ;;  %v8393_v22 = vld [vmem:[%s11132_s23 + $0x8] sm:$0xff]   ;;  %v896_v23 = vpack.c.bf16 %v679_v21, %v672_v20  ;;  %v8406_v20 = vld [vmem:[%s11133_s29] sm:$0xff]   ;;  %v9406_v21 = vsub.s32 0, %v9400_v18 }
 0x17c   : > { %7287 = vmatpush3.bf16.msra.mxu1 %v8393_v22  ;;  %v1114_v22 = vld [vmem:[%s11134_s5] sm:$0x3] }
 0x17d   : > { %7288 = vmatprep.subr.bf16.mxu1 %v8394_v24  ;;  %v9415_v24 = vrot.slane %v1114_v22, %v9406_v21 }
 0x180   : > { %7289 = vmatpush3.bf16.msra.mxu1 %v8395_v25 }
 0x181   : > { %7290 = vmatprep.subr.bf16.mxu1 %v8396_v26 }
 0x182   : > { %2165 = vmatmul.mubr.bf16.gmra.mrb[24].mxu0 %v936_v27  ;;  %v686_v27 = vld [vmem:[%s8807_s25 + $0xa0] sm:$0xff] }
 0x183   : > { %2174 = vmatprep.mubr.bf16.mxu0 %v944_v28  ;;  %v693_v28 = vld [vmem:[%s8807_s25 + $0xd8] sm:$0xff] }
 0x184   : > { %v903_v30 = vpack.c.bf16 %v693_v28, %v686_v27  ;;  %7291 = vmatpush3.bf16.msra.mxu1 %v8397_v29 }
 0x185   : > { %7292 = vmatprep.subr.bf16.mxu1 %v8398_v31 }
 0x188   : > { %7293 = vmatpush3.bf16.msra.mxu1 %v8399_v32 }
 0x18a   : > { %2175 = vmatmul.mubr.bf16.gmra.mrb[28].mxu0 %v943_v33  ;;  %v8400_v33 = vld [vmem:[%s11132_s23 + $0x68] sm:$0xff]  }
 0x18b   : > { %2184 = vmatprep.mubr.bf16.mxu0 %v951_v34  ;;  %v700_v34 = vld [vmem:[%s8807_s25 + $0x110] sm:$0xff]  ;;  %7294 = vmatprep.subr.bf16.mxu1 %v8400_v33 }
 0x18c   : > { %v910_v36 = vpack.c.bf16 %v707_v35, %v700_v34 }
 0x192   : > { %2185 = vmatmul.mubr.bf16.gmra.mrb[32].mxu0 %v950_v39  ;;  %v917_v39 = vpack.c.bf16 %v721_v38, %v714_v37 }
 0x193   : > { %2194 = vmatprep.mubr.bf16.mxu0 %v958_v40  ;;  %v728_v40 = vld [vmem:[%s8807_s25 + $0x1f0] sm:$0xff] }
 0x194   : > { %v924_v42 = vpack.c.bf16 %v735_v41, %v728_v40 }
 0x19a   : > { %2195 = vmatmul.mubr.bf16.gmra.mrb[36].mxu0 %v957_v45  ;;  %v931_v45 = vpack.c.bf16 %v749_v44, %v742_v43  ;;  %v8407_v43 = vld [vmem:[%s11133_s29 + $0x8] sm:$0xff]  }
 0x19b   : > { %2204 = vmatprep.mubr.bf16.mxu0 %v965_v46  ;;  %v756_v46 = vld [vmem:[%s8807_s25 + $0x2d0] sm:$0xff] }
 0x19c   : > { %v938_v48 = vpack.c.bf16 %v763_v47, %v756_v46 }
 0x1a2   : > { %2205 = vmatmul.mubr.bf16.gmra.mrb[40].mxu0 %v964_v51  ;;  %v945_v51 = vpack.c.bf16 %v777_v50, %v770_v49 }
 0x1a3   : > { %2214 = vmatprep.mubr.bf16.mxu0 %v972_v52  ;;  %v784_v52 = vld [vmem:[%s8807_s25 + $0x3b0] sm:$0xff] }
 0x1a4   : > { %v952_v54 = vpack.c.bf16 %v791_v53, %v784_v52 }
 0x1aa   : > { %2215 = vmatmul.mubr.bf16.gmra.mrb[44].mxu0 %v971_v57  ;;  %v959_v57 = vpack.c.bf16 %v805_v56, %v798_v55 }
 0x1ab   : > { %2224 = vmatprep.mubr.bf16.mxu0 %v979_v58  ;;  %v812_v58 = vld [vmem:[%s8807_s25 + $0x490] sm:$0xff] }
 0x1ac   : > { %v966_v60 = vpack.c.bf16 %v819_v59, %v812_v58  ;;  %v8409_v59 = vld [vmem:[%s11133_s29 + $0x18] sm:$0xff]  }
 0x1b2   : > { %2225 = vmatmul.mubr.bf16.gmra.mrb[48].mxu0 %v978_v63  ;;  %v8401_v63 = vld [vmem:[%s11132_s23 + $0x28] sm:$0xff]  }
 0x1b3   : > { %2234 = vmatprep.mubr.bf16.mxu0 %v986_v0  ;;  %7295 = vmatpush3.bf16.msra.mxu1 %v8401_v63  ;;  %v973_v0 = vpack.c.bf16 %v833_v62, %v826_v61 }
 0x1b4   : > { %7296 = vmatprep.subr.bf16.mxu1 %v8402_v1 }
 0x1b7   : > { %7297 = vmatpush3.bf16.msra.mxu1 %v8403_v2 }
 0x1b8   : > { %7298 = vmatprep.subr.bf16.mxu1 %v8404_v3  ;;  %v8410_v3 = vld [vmem:[%s11133_s29 + $0x20] sm:$0xff]  }
 0x1ba   : > { %2235 = vmatmul.mubr.bf16.gmra.mrb[52].mxu0 %v985_v5  ;;  %v847_v5 = vld [vmem:[%s8807_s25 + $0x5a8] sm:$0xff] }
 0x1bb   : > { %2244 = vmatprep.mubr.bf16.mxu0 %v993_v6  ;;  %v8405_v6 = vld [vmem:[%s11132_s23 + $0x38] sm:$0xff]   ;;  %v980_v7 = vpack.c.bf16 %v847_v5, %v840_v4 }
 0x1bc   : > { %7299 = vmatpush3.bf16.msra.mxu1 %v8405_v6 }
 0x1bd   : > { %7652 = vmatprep.subr.bf16.mxu1 %v8406_v20 }
 0x1c2   : > { %2245 = vmatmul.mubr.bf16.gmra.mrb[56].mxu0 %v992_v11  ;;  %v868_v11 = vld [vmem:[%s8807_s25 + $0x650] sm:$0xff] }
 0x1c3   : > { %2254 = vmatprep.mubr.bf16.mxu0 %v1000_v12  ;;  %v875_v12 = vld [vmem:[%s8807_s25 + $0x688] sm:$0xff] }
 0x1c4   : > { %v994_v13 = vpack.c.bf16 %v875_v12, %v868_v11  ;;  %v8411_v11 = vld [vmem:[%s11133_s29 + $0x28] sm:$0xff]  }
 0x1ca   : > { %2255 = vmatmul.mubr.bf16.gmra.mrb[60].mxu0 %v999_v15  ;;  %v889_v15 = vld [vmem:[%s8807_s25 + $0x6f8] sm:$0xff] }
 0x1cb   : > { %2297 = vmatprep.mubr.bf16.mxu0 %v8647_v19  ;;  %v1001_v16 = vpack.c.bf16 %v889_v15, %v882_v14 }
 0x1d2   : > { %2298 = vmatmul.mubr.bf16.vlgmr.msra.gmra.mrb[0].mxu0 %v896_v23  ;;  %v9412_v23 = vsub.s32 1, %v9400_v18 }
 0x1d3   : > { %2307 = vmatprep.mubr.bf16.mxu0 %v8647_v19 }
 0x1d4   : > { %v9418_v25 = vrot.slane %v1114_v22, %v9412_v23  ;;  %v8412_v22 = vld [vmem:[%s11133_s29 + $0x30] sm:$0xff]  }
 0x1da   : > { %2308 = vmatmul.mubr.bf16.gmra.mrb[4].mxu0 %v903_v30 }
 0x1db   : > { %2317 = vmatprep.mubr.bf16.mxu0 %v8647_v19 }
 0x1e2   : > { %2318 = vmatmul.mubr.bf16.gmra.mrb[8].mxu0 %v910_v36 }
 0x1e3   : > { %2327 = vmatprep.mubr.bf16.mxu0 %v8647_v19 }
 0x1ea   : > { %2328 = vmatmul.mubr.bf16.gmra.mrb[12].mxu0 %v917_v39 }
 0x1eb   : > { %2337 = vmatprep.mubr.bf16.mxu0 %v8647_v19 }
 0x1f2   : > { %2338 = vmatmul.mubr.bf16.gmra.mrb[16].mxu0 %v924_v42 }
 0x1f3   : > { %2347 = vmatprep.mubr.bf16.mxu0 %v8647_v19 }
 0x1fa   : > { %2348 = vmatmul.mubr.bf16.gmra.mrb[20].mxu0 %v931_v45 }
 0x1fb   : > { %2357 = vmatprep.mubr.bf16.mxu0 %v8647_v19 }
 0x202   : > { %2358 = vmatmul.mubr.bf16.gmra.mrb[24].mxu0 %v938_v48 }
 0x203   : > { %2367 = vmatprep.mubr.bf16.mxu0 %v8647_v19 }
 0x20a   : > { %2368 = vmatmul.mubr.bf16.gmra.mrb[28].mxu0 %v945_v51  ;;  %v8408_v51 = vld [vmem:[%s11133_s29 + $0x10] sm:$0xff]  }
 0x20b   : > { %2377 = vmatprep.mubr.bf16.mxu0 %v8647_v19 }
 0x212   : > { %2378 = vmatmul.mubr.bf16.gmra.mrb[32].mxu0 %v952_v54 }
 0x213   : > { %2387 = vmatprep.mubr.bf16.mxu0 %v8647_v19 }
 0x21a   : > { %2388 = vmatmul.mubr.bf16.gmra.mrb[36].mxu0 %v959_v57 }
 0x21b   : > { %2397 = vmatprep.mubr.bf16.mxu0 %v8647_v19 }
 0x222   : > { %2398 = vmatmul.mubr.bf16.gmra.mrb[40].mxu0 %v966_v60 }
 0x223   : > { %2407 = vmatprep.mubr.bf16.mxu0 %v8647_v19 }
 0x22a   : > { %2408 = vmatmul.mubr.bf16.gmra.mrb[44].mxu0 %v973_v0 }
 0x22b   : > { %2417 = vmatprep.mubr.bf16.mxu0 %v8647_v19 }
 0x232   : > { %2418 = vmatmul.mubr.bf16.gmra.mrb[48].mxu0 %v980_v7 }
 0x233   : > { %2427 = vmatprep.mubr.bf16.mxu0 %v8647_v19 }
 0x23a   : > { %2428 = vmatmul.mubr.bf16.gmra.mrb[52].mxu0 %v987_v10 }
 0x23b   : > { %2437 = vmatprep.mubr.bf16.mxu0 %v8647_v19 }
 0x242   : > { %2438 = vmatmul.mubr.bf16.gmra.mrb[56].mxu0 %v994_v13 }
 0x243   : > { %2447 = vmatprep.mubr.bf16.mxu0 %v8647_v19 }
 0x24a   : > { %2448 = vmatmul.mubr.bf16.gmra.mrb[60].mxu0 %v1001_v16 }
 0x2a5   : > { %v2299_v26 = vpop.f32.mrb[0].mxu0 }
 0x2a6   : > { %v7956_v27 = vadd.f32 %v2299_v26, %v9415_v24  ;;  %v2301_v28 = vpop.f32.mrb[1].mxu0 }
 0x2a7   : > { %v7957_v29 = vadd.f32 %v2301_v28, %v9418_v25  ;;  %v2303_v30 = vpop.f32.mrb[2].mxu0 }
 0x2a8   : > { %v7958_v31 = vadd.f32 %v2303_v30, %v9415_v24  ;;  %v2305_v32 = vpop.f32.mrb[3].mxu0  ;;  %v2458_v34 = vmax.f32 %v7956_v27, 0.0 }
 0x2a9   : > { %v7959_v33 = vadd.f32 %v2305_v32, %v9418_v25  ;;  %v2459_v36 = vmax.f32 %v7957_v29, 0.0 }
 0x2aa   : > { %v2460_v35 = vmax.f32 %v7958_v31, 0.0 }
 0x2ab   : > { %v2461_v37 = vmax.f32 %v7959_v33, 0.0 }
 0x2ac   : > { %v2522_v38 = vpack.c.bf16 %v2460_v35, %v2458_v34 }
 0x2ad   : > { %v2309_v39 = vpop.f32.mrb[4].mxu0  ;;  %v2523_v40 = vpack.c.bf16 %v2461_v37, %v2459_v36 }
 0x2ae   : > { %v7960_v41 = vadd.f32 %v2309_v39, %v9415_v24  ;;  %v2311_v42 = vpop.f32.mrb[5].mxu0 }
 0x2af   : > { %v7961_v44 = vadd.f32 %v2311_v42, %v9418_v25  ;;  %v2313_v45 = vpop.f32.mrb[6].mxu0  ;;  %2721 = vmatprep.mubr.bf16.mxu1 %v2523_v40 }
 0x2b0   : > { %v7962_v46 = vadd.f32 %v2313_v45, %v9415_v24  ;;  %v2315_v47 = vpop.f32.mrb[7].mxu0  ;;  %2722 = vmatmul.mubr.bf16.vlgmr.msra.gmra.mrb[0].mxu1 %v2522_v38  ;;  %v2462_v49 = vmax.f32 %v7960_v41, 0.0 }
 0x2b1   : > { %v7963_v48 = vadd.f32 %v2315_v47, %v9418_v25  ;;  %7653 = vmatpush3.bf16.msra.mxu1 %v8406_v20  ;;  %v2463_v52 = vmax.f32 %v7961_v44, 0.0 }
 0x2b2   : > { %v2464_v50 = vmax.f32 %v7962_v46, 0.0  ;;  %7654 = vmatprep.subr.bf16.mxu1 %v8407_v43 }
 0x2b3   : > { %v2465_v53 = vmax.f32 %v7963_v48, 0.0 }
 0x2b4   : > { %v2524_v54 = vpack.c.bf16 %v2464_v50, %v2462_v49 }
 0x2b5   : > { %v2525_v55 = vpack.c.bf16 %v2465_v53, %v2463_v52  ;;  %v2319_v56 = vpop.f32.mrb[8].mxu0  ;;  %7655 = vmatpush3.bf16.msra.mxu1 %v8407_v43 }
 0x2b6   : > { %v7964_v57 = vadd.f32 %v2319_v56, %v9415_v24  ;;  %v2321_v58 = vpop.f32.mrb[9].mxu0  ;;  %7656 = vmatprep.subr.bf16.mxu1 %v8408_v51 }
 0x2b7   : > { %v7965_v60 = vadd.f32 %v2321_v58, %v9418_v25  ;;  %v2323_v61 = vpop.f32.mrb[10].mxu0  ;;  %2729 = vmatprep.mubr.bf16.mxu1 %v2525_v55 }
 0x2b8   : > { %v7966_v62 = vadd.f32 %v2323_v61, %v9415_v24  ;;  %v2325_v63 = vpop.f32.mrb[11].mxu0  ;;  %2730 = vmatmul.mubr.bf16.gmra.mrb[4].mxu1 %v2524_v54  ;;  %v2466_v1 = vmax.f32 %v7964_v57, 0.0 }
 0x2b9   : > { %v7967_v0 = vadd.f32 %v2325_v63, %v9418_v25  ;;  %7657 = vmatpush3.bf16.msra.mxu1 %v8408_v51  ;;  %v2467_v4 = vmax.f32 %v7965_v60, 0.0 }
 0x2ba   : > { %v2468_v2 = vmax.f32 %v7966_v62, 0.0  ;;  %7658 = vmatprep.subr.bf16.mxu1 %v8409_v59 }
 0x2bb   : > { %v2469_v5 = vmax.f32 %v7967_v0, 0.0 }
 0x2bc   : > { %v2526_v6 = vpack.c.bf16 %v2468_v2, %v2466_v1 }
 0x2bd   : > { %v2527_v7 = vpack.c.bf16 %v2469_v5, %v2467_v4  ;;  %v2329_v8 = vpop.f32.mrb[12].mxu0  ;;  %7659 = vmatpush3.bf16.msra.mxu1 %v8409_v59 }
 0x2be   : > { %v7968_v9 = vadd.f32 %v2329_v8, %v9415_v24  ;;  %v2331_v10 = vpop.f32.mrb[13].mxu0  ;;  %7660 = vmatprep.subr.bf16.mxu1 %v8410_v3 }
 0x2bf   : > { %v7969_v12 = vadd.f32 %v2331_v10, %v9418_v25  ;;  %v2333_v13 = vpop.f32.mrb[14].mxu0  ;;  %2737 = vmatprep.mubr.bf16.mxu1 %v2527_v7 }
 0x2c0   : > { %v7970_v14 = vadd.f32 %v2333_v13, %v9415_v24  ;;  %v2335_v15 = vpop.f32.mrb[15].mxu0  ;;  %2738 = vmatmul.mubr.bf16.gmra.mrb[8].mxu1 %v2526_v6  ;;  %v2470_v17 = vmax.f32 %v7968_v9, 0.0 }
 0x2c1   : > { %v7971_v16 = vadd.f32 %v2335_v15, %v9418_v25  ;;  %7661 = vmatpush3.bf16.msra.mxu1 %v8410_v3  ;;  %v2471_v26 = vmax.f32 %v7969_v12, 0.0 }
 0x2c2   : > { %v2472_v20 = vmax.f32 %v7970_v14, 0.0  ;;  %7662 = vmatprep.subr.bf16.mxu1 %v8411_v11 }
 0x2c3   : > { %v2473_v27 = vmax.f32 %v7971_v16, 0.0 }
 0x2c4   : > { %v2528_v28 = vpack.c.bf16 %v2472_v20, %v2470_v17 }
 0x2c5   : > { %v2529_v29 = vpack.c.bf16 %v2473_v27, %v2471_v26  ;;  %v2339_v30 = vpop.f32.mrb[16].mxu0  ;;  %7663 = vmatpush3.bf16.msra.mxu1 %v8411_v11 }
 0x2c6   : > { %v7972_v31 = vadd.f32 %v2339_v30, %v9415_v24  ;;  %v2341_v32 = vpop.f32.mrb[17].mxu0  ;;  %7664 = vmatprep.subr.bf16.mxu1 %v8412_v22 }
 0x2c7   : > { %v7973_v33 = vadd.f32 %v2341_v32, %v9418_v25  ;;  %v2343_v34 = vpop.f32.mrb[18].mxu0  ;;  %2745 = vmatprep.mubr.bf16.mxu1 %v2529_v29 }
 0x2c8   : > { %v7974_v35 = vadd.f32 %v2343_v34, %v9415_v24  ;;  %v2345_v36 = vpop.f32.mrb[19].mxu0  ;;  %2746 = vmatmul.mubr.bf16.gmra.mrb[12].mxu1 %v2528_v28  ;;  %v2474_v38 = vmax.f32 %v7972_v31, 0.0 }
 0x2c9   : > { %v7975_v37 = vadd.f32 %v2345_v36, %v9418_v25  ;;  %7665 = vmatpush3.bf16.msra.mxu1 %v8412_v22  ;;  %v2475_v40 = vmax.f32 %v7973_v33, 0.0 }
 0x2ca   : > { %v2476_v39 = vmax.f32 %v7974_v35, 0.0 }
 0x2cb   : > { %v2477_v41 = vmax.f32 %v7975_v37, 0.0 }
 0x2cc   : > { %v2530_v42 = vpack.c.bf16 %v2476_v39, %v2474_v38 }
 0x2cd   : > { %v2531_v43 = vpack.c.bf16 %v2477_v41, %v2475_v40  ;;  %v2349_v44 = vpop.f32.mrb[20].mxu0 }
 0x2ce   : > { %v7976_v45 = vadd.f32 %v2349_v44, %v9415_v24  ;;  %v2351_v46 = vpop.f32.mrb[21].mxu0 }
 0x2cf   : > { %v7977_v47 = vadd.f32 %v2351_v46, %v9418_v25  ;;  %v2353_v48 = vpop.f32.mrb[22].mxu0  ;;  %2753 = vmatprep.mubr.bf16.mxu1 %v2531_v43 }
 0x2d0   : > { %v7978_v49 = vadd.f32 %v2353_v48, %v9415_v24  ;;  %v2355_v50 = vpop.f32.mrb[23].mxu0  ;;  %2754 = vmatmul.mubr.bf16.gmra.mrb[16].mxu1 %v2530_v42  ;;  %v2478_v52 = vmax.f32 %v7976_v45, 0.0 }
 0x2d1   : > { %v7979_v51 = vadd.f32 %v2355_v50, %v9418_v25  ;;  %v2479_v54 = vmax.f32 %v7977_v47, 0.0 }
 0x2d2   : > { %v2480_v53 = vmax.f32 %v7978_v49, 0.0 }
 0x2d3   : > { %v2481_v55 = vmax.f32 %v7979_v51, 0.0 }
 0x2d4   : > { %v2532_v56 = vpack.c.bf16 %v2480_v53, %v2478_v52 }
 0x2d5   : > { %v2533_v57 = vpack.c.bf16 %v2481_v55, %v2479_v54  ;;  %v2359_v58 = vpop.f32.mrb[24].mxu0 }
 0x2d6   : > { %v7980_v59 = vadd.f32 %v2359_v58, %v9415_v24  ;;  %v2361_v60 = vpop.f32.mrb[25].mxu0 }
 0x2d7   : > { %v7981_v61 = vadd.f32 %v2361_v60, %v9418_v25  ;;  %v2363_v62 = vpop.f32.mrb[26].mxu0  ;;  %2761 = vmatprep.mubr.bf16.mxu1 %v2533_v57 }
 0x2d8   : > { %v7982_v63 = vadd.f32 %v2363_v62, %v9415_v24  ;;  %v2365_v0 = vpop.f32.mrb[27].mxu0  ;;  %2762 = vmatmul.mubr.bf16.gmra.mrb[20].mxu1 %v2532_v56  ;;  %v2482_v2 = vmax.f32 %v7980_v59, 0.0 }
 0x2d9   : > { %v7983_v1 = vadd.f32 %v2365_v0, %v9418_v25  ;;  %v2483_v4 = vmax.f32 %v7981_v61, 0.0 }
 0x2da   : > { %v2484_v3 = vmax.f32 %v7982_v63, 0.0 }
 0x2db   : > { %v2485_v5 = vmax.f32 %v7983_v1, 0.0 }
 0x2dc   : > { %v2534_v6 = vpack.c.bf16 %v2484_v3, %v2482_v2 }
 0x2dd   : > { %v2535_v7 = vpack.c.bf16 %v2485_v5, %v2483_v4  ;;  %v2369_v8 = vpop.f32.mrb[28].mxu0 }
 0x2de   : > { %v7984_v9 = vadd.f32 %v2369_v8, %v9415_v24  ;;  %v2371_v10 = vpop.f32.mrb[29].mxu0 }
 0x2df   : > { %v7985_v11 = vadd.f32 %v2371_v10, %v9418_v25  ;;  %v2373_v12 = vpop.f32.mrb[30].mxu0  ;;  %2769 = vmatprep.mubr.bf16.mxu1 %v2535_v7 }
 0x2e0   : > { %v7986_v13 = vadd.f32 %v2373_v12, %v9415_v24  ;;  %v2375_v14 = vpop.f32.mrb[31].mxu0  ;;  %2770 = vmatmul.mubr.bf16.gmra.mrb[24].mxu1 %v2534_v6  ;;  %v2486_v16 = vmax.f32 %v7984_v9, 0.0 }
 0x2e1   : > { %v7987_v15 = vadd.f32 %v2375_v14, %v9418_v25  ;;  %v2487_v20 = vmax.f32 %v7985_v11, 0.0 }
 0x2e2   : > { %v2488_v17 = vmax.f32 %v7986_v13, 0.0 }
 0x2e3   : > { %v2489_v22 = vmax.f32 %v7987_v15, 0.0 }
 0x2e4   : > { %v2536_v26 = vpack.c.bf16 %v2488_v17, %v2486_v16 }
 0x2e5   : > { %v2537_v27 = vpack.c.bf16 %v2489_v22, %v2487_v20  ;;  %v2379_v28 = vpop.f32.mrb[32].mxu0 }
 0x2e6   : > { %v7988_v29 = vadd.f32 %v2379_v28, %v9415_v24  ;;  %v2381_v30 = vpop.f32.mrb[33].mxu0 }
 0x2e7   : > { %v7989_v31 = vadd.f32 %v2381_v30, %v9418_v25  ;;  %v2383_v32 = vpop.f32.mrb[34].mxu0  ;;  %2777 = vmatprep.mubr.bf16.mxu1 %v2537_v27 }
 0x2e8   : > { %v7990_v33 = vadd.f32 %v2383_v32, %v9415_v24  ;;  %v2385_v34 = vpop.f32.mrb[35].mxu0  ;;  %2778 = vmatmul.mubr.bf16.gmra.mrb[28].mxu1 %v2536_v26  ;;  %v2490_v36 = vmax.f32 %v7988_v29, 0.0 }
 0x2e9   : > { %v7991_v35 = vadd.f32 %v2385_v34, %v9418_v25  ;;  %v2491_v38 = vmax.f32 %v7989_v31, 0.0  ;;  %v8413_v34 = vld [vmem:[%s11133_s29 + $0x38] sm:$0xff]  }
 0x2ea   : > { %v2492_v37 = vmax.f32 %v7990_v33, 0.0  ;;  %7666 = vmatprep.subr.bf16.mxu1 %v8413_v34 }
 0x2eb   : > { %v2493_v39 = vmax.f32 %v7991_v35, 0.0  ;;  %7667 = vmatpush3.bf16.msra.mxu1 %v8413_v34 }
 0x2ec   : > { %v2538_v40 = vpack.c.bf16 %v2492_v37, %v2490_v36 }
 0x2ed   : > { %v2539_v41 = vpack.c.bf16 %v2493_v39, %v2491_v38  ;;  %v2389_v42 = vpop.f32.mrb[36].mxu0 }
 0x2ee   : > { %v7992_v43 = vadd.f32 %v2389_v42, %v9415_v24  ;;  %v2391_v44 = vpop.f32.mrb[37].mxu0 }
 0x2ef   : > { %v7993_v45 = vadd.f32 %v2391_v44, %v9418_v25  ;;  %v2393_v46 = vpop.f32.mrb[38].mxu0  ;;  %2785 = vmatprep.mubr.bf16.mxu1 %v2539_v41 }
 0x2f0   : > { %v7994_v47 = vadd.f32 %v2393_v46, %v9415_v24  ;;  %v2395_v48 = vpop.f32.mrb[39].mxu0  ;;  %2786 = vmatmul.mubr.bf16.gmra.mrb[32].mxu1 %v2538_v40  ;;  %v2494_v50 = vmax.f32 %v7992_v43, 0.0 }
 0x2f1   : > { %v7995_v49 = vadd.f32 %v2395_v48, %v9418_v25  ;;  %v2495_v52 = vmax.f32 %v7993_v45, 0.0 }
 0x2f2   : > { %v2496_v51 = vmax.f32 %v7994_v47, 0.0 }
 0x2f3   : > { %v2497_v53 = vmax.f32 %v7995_v49, 0.0 }
 0x2f4   : > { %v2540_v54 = vpack.c.bf16 %v2496_v51, %v2494_v50 }
 0x2f5   : > { %v2541_v55 = vpack.c.bf16 %v2497_v53, %v2495_v52  ;;  %v2399_v56 = vpop.f32.mrb[40].mxu0 }
 0x2f6   : > { %v7996_v57 = vadd.f32 %v2399_v56, %v9415_v24  ;;  %v2401_v58 = vpop.f32.mrb[41].mxu0 }
 0x2f7   : > { %v7997_v59 = vadd.f32 %v2401_v58, %v9418_v25  ;;  %v2403_v60 = vpop.f32.mrb[42].mxu0  ;;  %2793 = vmatprep.mubr.bf16.mxu1 %v2541_v55 }
 0x2f8   : > { %v7998_v61 = vadd.f32 %v2403_v60, %v9415_v24  ;;  %v2405_v62 = vpop.f32.mrb[43].mxu0  ;;  %2794 = vmatmul.mubr.bf16.gmra.mrb[36].mxu1 %v2540_v54  ;;  %v2498_v0 = vmax.f32 %v7996_v57, 0.0 }
 0x2f9   : > { %v7999_v63 = vadd.f32 %v2405_v62, %v9418_v25  ;;  %v2499_v2 = vmax.f32 %v7997_v59, 0.0 }
 0x2fa   : > { %v2500_v1 = vmax.f32 %v7998_v61, 0.0 }
 0x2fb   : > { %v2501_v3 = vmax.f32 %v7999_v63, 0.0 }
 0x2fc   : > { %v2542_v4 = vpack.c.bf16 %v2500_v1, %v2498_v0 }
 0x2fd   : > { %v2543_v5 = vpack.c.bf16 %v2501_v3, %v2499_v2  ;;  %v2409_v6 = vpop.f32.mrb[44].mxu0 }
 0x2fe   : > { %v8000_v7 = vadd.f32 %v2409_v6, %v9415_v24  ;;  %v2411_v8 = vpop.f32.mrb[45].mxu0 }
 0x2ff   : > { %v8001_v9 = vadd.f32 %v2411_v8, %v9418_v25  ;;  %v2413_v10 = vpop.f32.mrb[46].mxu0  ;;  %2801 = vmatprep.mubr.bf16.mxu1 %v2543_v5 }
 0x300   : > { %v8002_v11 = vadd.f32 %v2413_v10, %v9415_v24  ;;  %v2415_v12 = vpop.f32.mrb[47].mxu0  ;;  %2802 = vmatmul.mubr.bf16.gmra.mrb[40].mxu1 %v2542_v4  ;;  %v2502_v14 = vmax.f32 %v8000_v7, 0.0 }
 0x301   : > { %v8003_v13 = vadd.f32 %v2415_v12, %v9418_v25  ;;  %v2503_v16 = vmax.f32 %v8001_v9, 0.0 }
 0x302   : > { %v2504_v15 = vmax.f32 %v8002_v11, 0.0 }
 0x303   : > { %v2505_v17 = vmax.f32 %v8003_v13, 0.0 }
 0x304   : > { %v2544_v20 = vpack.c.bf16 %v2504_v15, %v2502_v14 }
 0x305   : > { %v2545_v22 = vpack.c.bf16 %v2505_v17, %v2503_v16  ;;  %v2419_v26 = vpop.f32.mrb[48].mxu0 }
 0x306   : > { %v8004_v27 = vadd.f32 %v2419_v26, %v9415_v24  ;;  %v2421_v28 = vpop.f32.mrb[49].mxu0  ;;  %v9508_v26 = vld [vmem:[%s11135_s4] ss:$0 sm:$0xff]  ;;  %s10614_s4 = scalar_lea.vmem %s11119_s21, %s11136_s27 }
 0x307   : > { %v8005_v29 = vadd.f32 %v2421_v28, %v9418_v25  ;;  %v2423_v30 = vpop.f32.mrb[50].mxu0  ;;  %2809 = vmatprep.mubr.bf16.mxu1 %v2545_v22 }
 0x308   : > { %v8006_v31 = vadd.f32 %v2423_v30, %v9415_v24  ;;  %v2425_v32 = vpop.f32.mrb[51].mxu0  ;;  %2810 = vmatmul.mubr.bf16.gmra.mrb[44].mxu1 %v2544_v20  ;;  %v2506_v35 = vmax.f32 %v8004_v27, 0.0 }
 0x309   : > { %v8007_v33 = vadd.f32 %v2425_v32, %v9418_v25  ;;  %v2507_v37 = vmax.f32 %v8005_v29, 0.0 }
 0x30a   : > { %v2508_v36 = vmax.f32 %v8006_v31, 0.0  ;;  %v8414_v31 = vld [vmem:[%s11105_s7] sm:$0xff]  }
 0x30b   : > { %v2509_v38 = vmax.f32 %v8007_v33, 0.0  ;;  %7700 = vmatprep.subr.bf16.mxu1 %v8414_v31 }
 0x30c   : > { %v2546_v39 = vpack.c.bf16 %v2508_v36, %v2506_v35 }
 0x30d   : > { %v2547_v40 = vpack.c.bf16 %v2509_v38, %v2507_v37  ;;  %v2429_v41 = vpop.f32.mrb[52].mxu0 }
 0x30e   : > { %v8008_v42 = vadd.f32 %v2429_v41, %v9415_v24  ;;  %v2431_v43 = vpop.f32.mrb[53].mxu0 }
 0x30f   : > { %v8009_v44 = vadd.f32 %v2431_v43, %v9418_v25  ;;  %v2433_v45 = vpop.f32.mrb[54].mxu0  ;;  %2817 = vmatprep.mubr.bf16.mxu1 %v2547_v40 }
 0x310   : > { %v8010_v46 = vadd.f32 %v2433_v45, %v9415_v24  ;;  %v2435_v47 = vpop.f32.mrb[55].mxu0  ;;  %2818 = vmatmul.mubr.bf16.gmra.mrb[48].mxu1 %v2546_v39  ;;  %v2510_v49 = vmax.f32 %v8008_v42, 0.0 }
 0x311   : > { %v8011_v48 = vadd.f32 %v2435_v47, %v9418_v25  ;;  %v2511_v51 = vmax.f32 %v8009_v44, 0.0 }
 0x312   : > { %v2512_v50 = vmax.f32 %v8010_v46, 0.0 }
 0x313   : > { %v2513_v52 = vmax.f32 %v8011_v48, 0.0 }
 0x314   : > { %v2548_v53 = vpack.c.bf16 %v2512_v50, %v2510_v49 }
 0x315   : > { %v2549_v54 = vpack.c.bf16 %v2513_v52, %v2511_v51  ;;  %v2439_v55 = vpop.f32.mrb[56].mxu0  ;;  %v8415_v51 = vld [vmem:[%s11105_s7 + $0x8] sm:$0xff]  }
 0x316   : > { %v8012_v56 = vadd.f32 %v2439_v55, %v9415_v24  ;;  %v2441_v57 = vpop.f32.mrb[57].mxu0 }
 0x317   : > { %v8013_v58 = vadd.f32 %v2441_v57, %v9418_v25  ;;  %v2443_v59 = vpop.f32.mrb[58].mxu0  ;;  %2825 = vmatprep.mubr.bf16.mxu1 %v2549_v54 }
 0x318   : > { %v8014_v60 = vadd.f32 %v2443_v59, %v9415_v24  ;;  %v2445_v61 = vpop.f32.mrb[59].mxu0  ;;  %2826 = vmatmul.mubr.bf16.gmra.mrb[52].mxu1 %v2548_v53  ;;  %v2514_v63 = vmax.f32 %v8012_v56, 0.0  ;;  %v8416_v56 = vld [vmem:[%s11105_s7 + $0x10] sm:$0xff]  }
 0x319   : > { %v8015_v62 = vadd.f32 %v2445_v61, %v9418_v25  ;;  %v2515_v1 = vmax.f32 %v8013_v58, 0.0 }
 0x31a   : > { %v2516_v0 = vmax.f32 %v8014_v60, 0.0 }
 0x31b   : > { %v2517_v2 = vmax.f32 %v8015_v62, 0.0 }
 0x31c   : > { %v2550_v3 = vpack.c.bf16 %v2516_v0, %v2514_v63  ;;  %v8417_v0 = vld [vmem:[%s11105_s7 + $0x18] sm:$0xff]  }
 0x31d   : > { %v2551_v4 = vpack.c.bf16 %v2517_v2, %v2515_v1  ;;  %v2449_v5 = vpop.f32.mrb[60].mxu0 }
 0x31e   : > { %v8016_v6 = vadd.f32 %v2449_v5, %v9415_v24  ;;  %v2451_v7 = vpop.f32.mrb[61].mxu0  ;;  %v8418_v5 = vld [vmem:[%s11105_s7 + $0x20] sm:$0xff]  }
 0x31f   : > { %v8017_v8 = vadd.f32 %v2451_v7, %v9418_v25  ;;  %v2453_v9 = vpop.f32.mrb[62].mxu0  ;;  %2833 = vmatprep.mubr.bf16.mxu1 %v2551_v4 }
 0x320   : > { %v8018_v10 = vadd.f32 %v2453_v9, %v9415_v24  ;;  %v2455_v11 = vpop.f32.mrb[63].mxu0  ;;  %2834 = vmatmul.mubr.bf16.gmra.mrb[56].mxu1 %v2550_v3  ;;  %v2518_v13 = vmax.f32 %v8016_v6, 0.0 }
 0x321   : > { %v8019_v12 = vadd.f32 %v2455_v11, %v9418_v25  ;;  %v2519_v15 = vmax.f32 %v8017_v8, 0.0 }
 0x322   : > { %v2520_v14 = vmax.f32 %v8018_v10, 0.0 }
 0x323   : > { %v2521_v16 = vmax.f32 %v8019_v12, 0.0 }
 0x324   : > { %v2552_v17 = vpack.c.bf16 %v2520_v14, %v2518_v13  ;;  %v8419_v13 = vld [vmem:[%s11105_s7 + $0x28] sm:$0xff]  }
 0x325   : > { %v2553_v20 = vpack.c.bf16 %v2521_v16, %v2519_v15 }
 0x327   : > { %2841 = vmatprep.mubr.bf16.mxu1 %v2553_v20  ;;  %v8420_v20 = vld [vmem:[%s11105_s7 + $0x30] sm:$0xff]  }
 0x328   : > { %2842 = vmatmul.mubr.bf16.gmra.mrb[60].mxu1 %v2552_v17 }
 0x383   : > { %v7300_v22 = vpop.f32.mrb[0].mxu1 }
 0x384   : > { %v7301_v27 = vpop.f32.mrb[1].mxu1 }
 0x385   : > { %v7302_v24 = vadd.f32 %v7301_v27, %v7300_v22  ;;  %v7303_v28 = vpop.f32.mrb[2].mxu1 }
 0x386   : > { %v7304_v29 = vpop.f32.mrb[3].mxu1 }
 0x387   : > { %v2724_v25 = vadd.f32 %v7302_v24, %v9508_v26  ;;  %v7305_v30 = vadd.f32 %v7304_v29, %v7303_v28 }
 0x389   : > { %v2727_v32 = vadd.f32 %v7305_v30, %v9508_v26  ;;  %v2850_v34 = vmax.f32 %v2724_v25, 0.0 }
 0x38b   : > { %v7306_v33 = vpop.f32.mrb[4].mxu1  ;;  %v2851_v35 = vmax.f32 %v2727_v32, 0.0 }
 0x38c   : > { %v7307_v36 = vpop.f32.mrb[5].mxu1 }
 0x38d   : > { %v7308_v37 = vadd.f32 %v7307_v36, %v7306_v33  ;;  %v7309_v38 = vpop.f32.mrb[6].mxu1  ;;  %v2882_v39 = vpack.c.bf16 %v2851_v35, %v2850_v34 }
 0x38e   : > { %v7310_v40 = vpop.f32.mrb[7].mxu1 }
 0x38f   : > { %v2732_v41 = vadd.f32 %v7308_v37, %v9508_v26  ;;  %v7311_v42 = vadd.f32 %v7310_v40, %v7309_v38  ;;  %7668 = vmatprep.mubr.bf16.mxu1 %v2882_v39 }
 0x391   : > { %v2735_v43 = vadd.f32 %v7311_v42, %v9508_v26  ;;  %v2852_v44 = vmax.f32 %v2732_v41, 0.0 }
 0x393   : > { %v2853_v45 = vmax.f32 %v2735_v43, 0.0  ;;  %v7312_v46 = vpop.f32.mrb[8].mxu1 }
 0x394   : > { %v7313_v47 = vpop.f32.mrb[9].mxu1 }
 0x395   : > { %v2883_v48 = vpack.c.bf16 %v2853_v45, %v2852_v44  ;;  %v7314_v49 = vadd.f32 %v7313_v47, %v7312_v46  ;;  %v7315_v50 = vpop.f32.mrb[10].mxu1 }
 0x396   : > { %v7316_v52 = vpop.f32.mrb[11].mxu1 }
 0x397   : > { %v2740_v53 = vadd.f32 %v7314_v49, %v9508_v26  ;;  %v7317_v54 = vadd.f32 %v7316_v52, %v7315_v50  ;;  %7669 = vmatmul.mubr.bf16.vlgmr.msra.gmra.mrb[64].mxu1 %v2883_v48 }
 0x398   : > { %7701 = vmatpush3.bf16.msra.mxu1 %v8414_v31 }
 0x399   : > { %v2743_v55 = vadd.f32 %v7317_v54, %v9508_v26  ;;  %7702 = vmatprep.subr.bf16.mxu1 %v8415_v51  ;;  %v2854_v58 = vmax.f32 %v2740_v53, 0.0 }
 0x39b   : > { %v7318_v57 = vpop.f32.mrb[12].mxu1  ;;  %v2855_v59 = vmax.f32 %v2743_v55, 0.0 }
 0x39c   : > { %v7319_v60 = vpop.f32.mrb[13].mxu1  ;;  %7703 = vmatpush3.bf16.msra.mxu1 %v8415_v51 }
 0x39d   : > { %v7320_v61 = vadd.f32 %v7319_v60, %v7318_v57  ;;  %v7321_v62 = vpop.f32.mrb[14].mxu1  ;;  %v2884_v63 = vpack.c.bf16 %v2855_v59, %v2854_v58  ;;  %7704 = vmatprep.subr.bf16.mxu1 %v8416_v56 }
 0x39e   : > { %v7322_v1 = vpop.f32.mrb[15].mxu1 }
 0x39f   : > { %v2748_v2 = vadd.f32 %v7320_v61, %v9508_v26  ;;  %v7323_v3 = vadd.f32 %v7322_v1, %v7321_v62  ;;  %7672 = vmatprep.mubr.bf16.mxu1 %v2884_v63 }
 0x3a0   : > { %7705 = vmatpush3.bf16.msra.mxu1 %v8416_v56 }
 0x3a1   : > { %v2751_v4 = vadd.f32 %v7323_v3, %v9508_v26  ;;  %7706 = vmatprep.subr.bf16.mxu1 %v8417_v0  ;;  %v2856_v7 = vmax.f32 %v2748_v2, 0.0 }
 0x3a3   : > { %v7324_v6 = vpop.f32.mrb[16].mxu1  ;;  %v2857_v8 = vmax.f32 %v2751_v4, 0.0 }
 0x3a4   : > { %v7325_v9 = vpop.f32.mrb[17].mxu1  ;;  %7707 = vmatpush3.bf16.msra.mxu1 %v8417_v0 }
 0x3a5   : > { %v7326_v10 = vadd.f32 %v7325_v9, %v7324_v6  ;;  %v7327_v11 = vpop.f32.mrb[18].mxu1  ;;  %v2885_v12 = vpack.c.bf16 %v2857_v8, %v2856_v7  ;;  %7708 = vmatprep.subr.bf16.mxu1 %v8418_v5 }
 0x3a6   : > { %v7328_v14 = vpop.f32.mrb[19].mxu1 }
 0x3a7   : > { %v2756_v15 = vadd.f32 %v7326_v10, %v9508_v26  ;;  %v7329_v16 = vadd.f32 %v7328_v14, %v7327_v11  ;;  %7673 = vmatmul.mubr.bf16.gmra.mrb[68].mxu1 %v2885_v12 }
 0x3a8   : > { %7709 = vmatpush3.bf16.msra.mxu1 %v8418_v5 }
 0x3a9   : > { %v2759_v17 = vadd.f32 %v7329_v16, %v9508_v26  ;;  %7710 = vmatprep.subr.bf16.mxu1 %v8419_v13  ;;  %v2858_v27 = vmax.f32 %v2756_v15, 0.0 }
 0x3ab   : > { %v7330_v22 = vpop.f32.mrb[20].mxu1  ;;  %v2859_v24 = vmax.f32 %v2759_v17, 0.0 }
 0x3ac   : > { %v7331_v28 = vpop.f32.mrb[21].mxu1  ;;  %7711 = vmatpush3.bf16.msra.mxu1 %v8419_v13 }
 0x3ad   : > { %v7332_v29 = vadd.f32 %v7331_v28, %v7330_v22  ;;  %v7333_v25 = vpop.f32.mrb[22].mxu1  ;;  %v2886_v30 = vpack.c.bf16 %v2859_v24, %v2858_v27  ;;  %7712 = vmatprep.subr.bf16.mxu1 %v8420_v20 }
 0x3ae   : > { %v7334_v31 = vpop.f32.mrb[23].mxu1 }
 0x3af   : > { %v2764_v32 = vadd.f32 %v7332_v29, %v9508_v26  ;;  %v7335_v33 = vadd.f32 %v7334_v31, %v7333_v25  ;;  %7676 = vmatprep.mubr.bf16.mxu1 %v2886_v30 }
 0x3b0   : > { %7713 = vmatpush3.bf16.msra.mxu1 %v8420_v20 }
 0x3b1   : > { %v2767_v34 = vadd.f32 %v7335_v33, %v9508_v26  ;;  %v2860_v36 = vmax.f32 %v2764_v32, 0.0 }
 0x3b3   : > { %v7336_v35 = vpop.f32.mrb[24].mxu1  ;;  %v2861_v37 = vmax.f32 %v2767_v34, 0.0 }
 0x3b4   : > { %v7337_v38 = vpop.f32.mrb[25].mxu1 }
 0x3b5   : > { %v7338_v39 = vadd.f32 %v7337_v38, %v7336_v35  ;;  %v7339_v40 = vpop.f32.mrb[26].mxu1  ;;  %v2887_v41 = vpack.c.bf16 %v2861_v37, %v2860_v36 }
 0x3b6   : > { %v7340_v42 = vpop.f32.mrb[27].mxu1 }
 0x3b7   : > { %v2772_v43 = vadd.f32 %v7338_v39, %v9508_v26  ;;  %v7341_v44 = vadd.f32 %v7340_v42, %v7339_v40  ;;  %7677 = vmatmul.mubr.bf16.gmra.mrb[72].mxu1 %v2887_v41 }
 0x3b9   : > { %v2775_v45 = vadd.f32 %v7341_v44, %v9508_v26  ;;  %v2862_v47 = vmax.f32 %v2772_v43, 0.0 }
 0x3bb   : > { %v7342_v46 = vpop.f32.mrb[28].mxu1  ;;  %v2863_v48 = vmax.f32 %v2775_v45, 0.0 }
 0x3bc   : > { %v7343_v49 = vpop.f32.mrb[29].mxu1 }
 0x3bd   : > { %v7344_v50 = vadd.f32 %v7343_v49, %v7342_v46  ;;  %v7345_v51 = vpop.f32.mrb[30].mxu1  ;;  %v2888_v52 = vpack.c.bf16 %v2863_v48, %v2862_v47 }
 0x3be   : > { %v7346_v53 = vpop.f32.mrb[31].mxu1 }
 0x3bf   : > { %v2780_v54 = vadd.f32 %v7344_v50, %v9508_v26  ;;  %v7347_v55 = vadd.f32 %v7346_v53, %v7345_v51  ;;  %7680 = vmatprep.mubr.bf16.mxu1 %v2888_v52 }
 0x3c1   : > { %v2783_v56 = vadd.f32 %v7347_v55, %v9508_v26  ;;  %v2864_v58 = vmax.f32 %v2780_v54, 0.0 }
 0x3c3   : > { %v7348_v57 = vpop.f32.mrb[32].mxu1  ;;  %v2865_v59 = vmax.f32 %v2783_v56, 0.0 }
 0x3c4   : > { %v7349_v60 = vpop.f32.mrb[33].mxu1 }
 0x3c5   : > { %v7350_v61 = vadd.f32 %v7349_v60, %v7348_v57  ;;  %v7351_v62 = vpop.f32.mrb[34].mxu1  ;;  %v2889_v63 = vpack.c.bf16 %v2865_v59, %v2864_v58 }
 0x3c6   : > { %v7352_v0 = vpop.f32.mrb[35].mxu1 }
 0x3c7   : > { %v2788_v1 = vadd.f32 %v7350_v61, %v9508_v26  ;;  %v7353_v2 = vadd.f32 %v7352_v0, %v7351_v62  ;;  %7681 = vmatmul.mubr.bf16.gmra.mrb[76].mxu1 %v2889_v63  ;;  %v8421_v63 = vld [vmem:[%s11105_s7 + $0x38] sm:$0xff]  }
 0x3c8   : > { %7714 = vmatprep.subr.bf16.mxu1 %v8421_v63 }
 0x3c9   : > { %v2791_v3 = vadd.f32 %v7353_v2, %v9508_v26  ;;  %v2866_v5 = vmax.f32 %v2788_v1, 0.0  ;;  %7715 = vmatpush3.bf16.msra.mxu1 %v8421_v63 }
 0x3cb   : > { %v7354_v4 = vpop.f32.mrb[36].mxu1  ;;  %v2867_v6 = vmax.f32 %v2791_v3, 0.0 }
 0x3cc   : > { %v7355_v7 = vpop.f32.mrb[37].mxu1 }
 0x3cd   : > { %v7356_v8 = vadd.f32 %v7355_v7, %v7354_v4  ;;  %v7357_v9 = vpop.f32.mrb[38].mxu1  ;;  %v2890_v10 = vpack.c.bf16 %v2867_v6, %v2866_v5 }
 0x3ce   : > { %v7358_v11 = vpop.f32.mrb[39].mxu1 }
 0x3cf   : > { %v2796_v12 = vadd.f32 %v7356_v8, %v9508_v26  ;;  %v7359_v13 = vadd.f32 %v7358_v11, %v7357_v9  ;;  %7684 = vmatprep.mubr.bf16.mxu1 %v2890_v10 }
 0x3d1   : > { %v2799_v14 = vadd.f32 %v7359_v13, %v9508_v26  ;;  %v2868_v16 = vmax.f32 %v2796_v12, 0.0 }
 0x3d3   : > { %v7360_v15 = vpop.f32.mrb[40].mxu1  ;;  %v2869_v17 = vmax.f32 %v2799_v14, 0.0 }
 0x3d4   : > { %v7361_v20 = vpop.f32.mrb[41].mxu1 }
 0x3d5   : > { %v7362_v22 = vadd.f32 %v7361_v20, %v7360_v15  ;;  %v7363_v27 = vpop.f32.mrb[42].mxu1  ;;  %v2891_v24 = vpack.c.bf16 %v2869_v17, %v2868_v16 }
 0x3d6   : > { %v7364_v28 = vpop.f32.mrb[43].mxu1 }
 0x3d7   : > { %v2804_v29 = vadd.f32 %v7362_v22, %v9508_v26  ;;  %v7365_v25 = vadd.f32 %v7364_v28, %v7363_v27  ;;  %7685 = vmatmul.mubr.bf16.gmra.mrb[80].mxu1 %v2891_v24 }
 0x3d9   : > { %v2807_v30 = vadd.f32 %v7365_v25, %v9508_v26  ;;  %v2870_v32 = vmax.f32 %v2804_v29, 0.0 }
 0x3db   : > { %v7366_v31 = vpop.f32.mrb[44].mxu1  ;;  %v2871_v33 = vmax.f32 %v2807_v30, 0.0 }
 0x3dc   : > { %v7367_v34 = vpop.f32.mrb[45].mxu1 }
 0x3dd   : > { %v7368_v35 = vadd.f32 %v7367_v34, %v7366_v31  ;;  %v7369_v36 = vpop.f32.mrb[46].mxu1  ;;  %v2892_v37 = vpack.c.bf16 %v2871_v33, %v2870_v32  ;;  %v8422_v31 = vld [vmem:[%s11107_s9] sm:$0xff]  }
 0x3de   : > { %v7370_v38 = vpop.f32.mrb[47].mxu1  ;;  %7748 = vmatprep.subr.bf16.mxu1 %v8422_v31  ;;  %v9572_v32 = vld [vmem:[%s11104_s6] ss:$0 sm:$0xff] }
 0x3df   : > { %v2812_v39 = vadd.f32 %v7368_v35, %v9508_v26  ;;  %v7371_v40 = vadd.f32 %v7370_v38, %v7369_v36  ;;  %7688 = vmatprep.mubr.bf16.mxu1 %v2892_v37 }
 0x3e1   : > { %v2815_v41 = vadd.f32 %v7371_v40, %v9508_v26  ;;  %v2872_v43 = vmax.f32 %v2812_v39, 0.0 }
 0x3e3   : > { %v7372_v42 = vpop.f32.mrb[48].mxu1  ;;  %v2873_v44 = vmax.f32 %v2815_v41, 0.0 }
 0x3e4   : > { %v7373_v45 = vpop.f32.mrb[49].mxu1 }
 0x3e5   : > { %v7374_v46 = vadd.f32 %v7373_v45, %v7372_v42  ;;  %v7375_v47 = vpop.f32.mrb[50].mxu1  ;;  %v2893_v48 = vpack.c.bf16 %v2873_v44, %v2872_v43 }
 0x3e6   : > { %v7376_v49 = vpop.f32.mrb[51].mxu1 }
 0x3e7   : > { %v2820_v50 = vadd.f32 %v7374_v46, %v9508_v26  ;;  %v7377_v51 = vadd.f32 %v7376_v49, %v7375_v47  ;;  %7689 = vmatmul.mubr.bf16.gmra.mrb[84].mxu1 %v2893_v48  ;;  %v8423_v46 = vld [vmem:[%s11107_s9 + $0x8] sm:$0xff]   ;;  %v8424_v47 = vld [vmem:[%s11107_s9 + $0x10] sm:$0xff]  }
 0x3e9   : > { %v2823_v52 = vadd.f32 %v7377_v51, %v9508_v26  ;;  %v2874_v54 = vmax.f32 %v2820_v50, 0.0  ;;  %v8425_v51 = vld [vmem:[%s11107_s9 + $0x18] sm:$0xff]  }
 0x3eb   : > { %v7378_v53 = vpop.f32.mrb[52].mxu1  ;;  %v2875_v55 = vmax.f32 %v2823_v52, 0.0 }
 0x3ec   : > { %v7379_v56 = vpop.f32.mrb[53].mxu1 }
 0x3ed   : > { %v7380_v57 = vadd.f32 %v7379_v56, %v7378_v53  ;;  %v7381_v58 = vpop.f32.mrb[54].mxu1  ;;  %v2894_v59 = vpack.c.bf16 %v2875_v55, %v2874_v54 }
 0x3ee   : > { %v7382_v60 = vpop.f32.mrb[55].mxu1 }
 0x3ef   : > { %v2828_v61 = vadd.f32 %v7380_v57, %v9508_v26  ;;  %v7383_v62 = vadd.f32 %v7382_v60, %v7381_v58  ;;  %7692 = vmatprep.mubr.bf16.mxu1 %v2894_v59  ;;  %v8426_v59 = vld [vmem:[%s11107_s9 + $0x20] sm:$0xff]  }
 0x3f1   : > { %v2831_v0 = vadd.f32 %v7383_v62, %v9508_v26  ;;  %v2876_v2 = vmax.f32 %v2828_v61, 0.0 }
 0x3f3   : > { %v7384_v1 = vpop.f32.mrb[56].mxu1  ;;  %v2877_v3 = vmax.f32 %v2831_v0, 0.0  ;;  %v8427_v0 = vld [vmem:[%s11107_s9 + $0x28] sm:$0xff]  }
 0x3f4   : > { %v7385_v4 = vpop.f32.mrb[57].mxu1 }
 0x3f5   : > { %v7386_v5 = vadd.f32 %v7385_v4, %v7384_v1  ;;  %v7387_v6 = vpop.f32.mrb[58].mxu1  ;;  %v2895_v7 = vpack.c.bf16 %v2877_v3, %v2876_v2  ;;  %v8428_v1 = vld [vmem:[%s11107_s9 + $0x30] sm:$0xff]  }
 0x3f6   : > { %v7388_v8 = vpop.f32.mrb[59].mxu1 }
 0x3f7   : > { %v2836_v9 = vadd.f32 %v7386_v5, %v9508_v26  ;;  %v7389_v10 = vadd.f32 %v7388_v8, %v7387_v6  ;;  %7693 = vmatmul.mubr.bf16.gmra.mrb[88].mxu1 %v2895_v7 }
 0x3f9   : > { %v2839_v11 = vadd.f32 %v7389_v10, %v9508_v26  ;;  %v2878_v13 = vmax.f32 %v2836_v9, 0.0 }
 0x3fb   : > { %v7390_v12 = vpop.f32.mrb[60].mxu1  ;;  %v2879_v14 = vmax.f32 %v2839_v11, 0.0 }
 0x3fc   : > { %v7391_v15 = vpop.f32.mrb[61].mxu1 }
 0x3fd   : > { %v7392_v16 = vadd.f32 %v7391_v15, %v7390_v12  ;;  %v7393_v17 = vpop.f32.mrb[62].mxu1  ;;  %v2896_v20 = vpack.c.bf16 %v2879_v14, %v2878_v13 }
 0x3fe   : > { %v7394_v22 = vpop.f32.mrb[63].mxu1 }
 0x3ff   : > { %v2844_v27 = vadd.f32 %v7392_v16, %v9508_v26  ;;  %v7395_v24 = vadd.f32 %v7394_v22, %v7393_v17  ;;  %7696 = vmatprep.mubr.bf16.mxu1 %v2896_v20 }
 0x401   : > { %v2847_v28 = vadd.f32 %v7395_v24, %v9508_v26  ;;  %v2880_v29 = vmax.f32 %v2844_v27, 0.0 }
 0x403   : > { %v2881_v25 = vmax.f32 %v2847_v28, 0.0 }
 0x405   : > { %v2897_v30 = vpack.c.bf16 %v2881_v25, %v2880_v29 }
 0x407   : > { %7697 = vmatmul.mubr.bf16.gmra.mrb[92].mxu1 %v2897_v30 }
 0x46a   : > { %v7670_v33 = vpop.f32.mrb[64].mxu1 }
 0x46b   : > { %v3012_v34 = vadd.f32 %v7670_v33, %v9572_v32  ;;  %v3003_v35 = vpop.f32.mrb[65].mxu1 }
 0x46c   : > { %v3004_v26 = vadd.f32 %v9572_v32, %v3003_v35  ;;  %v7671_v36 = vpop.f32.mrb[66].mxu1 }
 0x46d   : > { %v3015_v37 = vadd.f32 %v7671_v36, %v9572_v32  ;;  %v3006_v38 = vpop.f32.mrb[67].mxu1  ;;  %v3132_v40 = vmax.f32 %v3012_v34, 0.0 }
 0x46e   : > { %v3007_v39 = vadd.f32 %v9572_v32, %v3006_v38  ;;  %v3130_v42 = vmax.f32 %v3004_v26, 0.0 }
 0x46f   : > { %v3133_v41 = vmax.f32 %v3015_v37, 0.0 }
 0x470   : > { %v3131_v43 = vmax.f32 %v3007_v39, 0.0 }
 0x471   : > { %v3163_v44 = vpack.c.bf16 %v3133_v41, %v3132_v40 }
 0x472   : > { %v3162_v45 = vpack.c.bf16 %v3131_v43, %v3130_v42 }
 0x474   : > { %7716 = vmatprep.mubr.bf16.mxu1 %v3162_v45 }
 0x475   : > { %7717 = vmatmul.mubr.bf16.vlgmr.msra.gmra.mrb[96].mxu1 %v3163_v44 }
 0x476   : > { %7749 = vmatpush3.bf16.msra.mxu1 %v8422_v31 }
 0x477   : > { %7750 = vmatprep.subr.bf16.mxu1 %v8423_v46 }
 0x47a   : > { %v7674_v48 = vpop.f32.mrb[68].mxu1  ;;  %7751 = vmatpush3.bf16.msra.mxu1 %v8423_v46 }
 0x47b   : > { %v3028_v49 = vadd.f32 %v7674_v48, %v9572_v32  ;;  %v3019_v50 = vpop.f32.mrb[69].mxu1  ;;  %7752 = vmatprep.subr.bf16.mxu1 %v8424_v47 }
 0x47c   : > { %v3020_v52 = vadd.f32 %v9572_v32, %v3019_v50  ;;  %v7675_v53 = vpop.f32.mrb[70].mxu1 }
 0x47d   : > { %v3031_v54 = vadd.f32 %v7675_v53, %v9572_v32  ;;  %v3022_v55 = vpop.f32.mrb[71].mxu1  ;;  %v3136_v57 = vmax.f32 %v3028_v49, 0.0 }
 0x47e   : > { %v3023_v56 = vadd.f32 %v9572_v32, %v3022_v55  ;;  %7753 = vmatpush3.bf16.msra.mxu1 %v8424_v47  ;;  %v3134_v60 = vmax.f32 %v3020_v52, 0.0 }
 0x47f   : > { %v3137_v58 = vmax.f32 %v3031_v54, 0.0  ;;  %7754 = vmatprep.subr.bf16.mxu1 %v8425_v51 }
 0x480   : > { %v3135_v61 = vmax.f32 %v3023_v56, 0.0 }
 0x481   : > { %v3165_v62 = vpack.c.bf16 %v3137_v58, %v3136_v57 }
 0x482   : > { %v3164_v63 = vpack.c.bf16 %v3135_v61, %v3134_v60  ;;  %7755 = vmatpush3.bf16.msra.mxu1 %v8425_v51 }
 0x483   : > { %7756 = vmatprep.subr.bf16.mxu1 %v8426_v59 }
 0x484   : > { %7720 = vmatprep.mubr.bf16.mxu1 %v3164_v63 }
 0x485   : > { %7721 = vmatmul.mubr.bf16.gmra.mrb[100].mxu1 %v3165_v62 }
 0x486   : > { %7757 = vmatpush3.bf16.msra.mxu1 %v8426_v59 }
 0x487   : > { %7758 = vmatprep.subr.bf16.mxu1 %v8427_v0 }
 0x48a   : > { %v7678_v2 = vpop.f32.mrb[72].mxu1  ;;  %7759 = vmatpush3.bf16.msra.mxu1 %v8427_v0 }
 0x48b   : > { %v3044_v3 = vadd.f32 %v7678_v2, %v9572_v32  ;;  %v3035_v4 = vpop.f32.mrb[73].mxu1  ;;  %7760 = vmatprep.subr.bf16.mxu1 %v8428_v1 }
 0x48c   : > { %v3036_v5 = vadd.f32 %v9572_v32, %v3035_v4  ;;  %v7679_v6 = vpop.f32.mrb[74].mxu1 }
 0x48d   : > { %v3047_v7 = vadd.f32 %v7679_v6, %v9572_v32  ;;  %v3038_v8 = vpop.f32.mrb[75].mxu1  ;;  %v3140_v10 = vmax.f32 %v3044_v3, 0.0  ;;  %v8429_v6 = vld [vmem:[%s11107_s9 + $0x38] sm:$0xff]  }
 0x48e   : > { %v3039_v9 = vadd.f32 %v9572_v32, %v3038_v8  ;;  %7761 = vmatpush3.bf16.msra.mxu1 %v8428_v1  ;;  %v3138_v12 = vmax.f32 %v3036_v5, 0.0 }
 0x48f   : > { %v3141_v11 = vmax.f32 %v3047_v7, 0.0  ;;  %7762 = vmatprep.subr.bf16.mxu1 %v8429_v6 }
 0x490   : > { %v3139_v13 = vmax.f32 %v3039_v9, 0.0 }
 0x491   : > { %v3167_v14 = vpack.c.bf16 %v3141_v11, %v3140_v10 }
 0x492   : > { %v3166_v15 = vpack.c.bf16 %v3139_v13, %v3138_v12  ;;  %7763 = vmatpush3.bf16.msra.mxu1 %v8429_v6 }
 0x494   : > { %7724 = vmatprep.mubr.bf16.mxu1 %v3166_v15 }
 0x495   : > { %7725 = vmatmul.mubr.bf16.gmra.mrb[104].mxu1 %v3167_v14 }
 0x49a   : > { %v7682_v16 = vpop.f32.mrb[76].mxu1 }
 0x49b   : > { %v3060_v17 = vadd.f32 %v7682_v16, %v9572_v32  ;;  %v3051_v20 = vpop.f32.mrb[77].mxu1 }
 0x49c   : > { %v3052_v22 = vadd.f32 %v9572_v32, %v3051_v20  ;;  %v7683_v27 = vpop.f32.mrb[78].mxu1 }
 0x49d   : > { %v3063_v24 = vadd.f32 %v7683_v27, %v9572_v32  ;;  %v3054_v28 = vpop.f32.mrb[79].mxu1  ;;  %v3144_v25 = vmax.f32 %v3060_v17, 0.0 }
 0x49e   : > { %v3055_v29 = vadd.f32 %v9572_v32, %v3054_v28  ;;  %v3142_v31 = vmax.f32 %v3052_v22, 0.0 }
 0x49f   : > { %v3145_v30 = vmax.f32 %v3063_v24, 0.0 }
 0x4a0   : > { %v3143_v33 = vmax.f32 %v3055_v29, 0.0 }
 0x4a1   : > { %v3169_v34 = vpack.c.bf16 %v3145_v30, %v3144_v25 }
 0x4a2   : > { %v3168_v35 = vpack.c.bf16 %v3143_v33, %v3142_v31 }
 0x4a4   : > { %7728 = vmatprep.mubr.bf16.mxu1 %v3168_v35  ;;  %v9633_v35 = vld [vmem:[%s11106_s8] ss:$0 sm:$0xff] }
 0x4a5   : > { %7729 = vmatmul.mubr.bf16.gmra.mrb[108].mxu1 %v3169_v34  ;;  %v8430_v34 = vld [vmem:[%s11109_s11] sm:$0xff]  }
 0x4a6   : > { %7796 = vmatprep.subr.bf16.mxu1 %v8430_v34 }
 0x4aa   : > { %v7686_v26 = vpop.f32.mrb[80].mxu1 }
 0x4ab   : > { %v3076_v36 = vadd.f32 %v7686_v26, %v9572_v32  ;;  %v3067_v37 = vpop.f32.mrb[81].mxu1 }
 0x4ac   : > { %v3068_v38 = vadd.f32 %v9572_v32, %v3067_v37  ;;  %v7687_v39 = vpop.f32.mrb[82].mxu1 }
 0x4ad   : > { %v3079_v40 = vadd.f32 %v7687_v39, %v9572_v32  ;;  %v3070_v41 = vpop.f32.mrb[83].mxu1  ;;  %v3148_v43 = vmax.f32 %v3076_v36, 0.0 }
 0x4ae   : > { %v3071_v42 = vadd.f32 %v9572_v32, %v3070_v41  ;;  %v3146_v45 = vmax.f32 %v3068_v38, 0.0 }
 0x4af   : > { %v3149_v44 = vmax.f32 %v3079_v40, 0.0 }
 0x4b0   : > { %v3147_v46 = vmax.f32 %v3071_v42, 0.0 }
 0x4b1   : > { %v3171_v47 = vpack.c.bf16 %v3149_v44, %v3148_v43 }
 0x4b2   : > { %v3170_v48 = vpack.c.bf16 %v3147_v46, %v3146_v45 }
 0x4b4   : > { %7732 = vmatprep.mubr.bf16.mxu1 %v3170_v48  ;;  %v8431_v48 = vld [vmem:[%s11109_s11 + $0x8] sm:$0xff]  }
 0x4b5   : > { %7733 = vmatmul.mubr.bf16.gmra.mrb[112].mxu1 %v3171_v47 }
 0x4ba   : > { %v7690_v49 = vpop.f32.mrb[84].mxu1 }
 0x4bb   : > { %v3092_v50 = vadd.f32 %v7690_v49, %v9572_v32  ;;  %v3083_v51 = vpop.f32.mrb[85].mxu1  ;;  %v8432_v49 = vld [vmem:[%s11109_s11 + $0x10] sm:$0xff]  }
 0x4bc   : > { %v3084_v52 = vadd.f32 %v9572_v32, %v3083_v51  ;;  %v7691_v53 = vpop.f32.mrb[86].mxu1 }
 0x4bd   : > { %v3095_v54 = vadd.f32 %v7691_v53, %v9572_v32  ;;  %v3086_v55 = vpop.f32.mrb[87].mxu1  ;;  %v3152_v57 = vmax.f32 %v3092_v50, 0.0  ;;  %v8433_v53 = vld [vmem:[%s11109_s11 + $0x18] sm:$0xff]  }
 0x4be   : > { %v3087_v56 = vadd.f32 %v9572_v32, %v3086_v55  ;;  %v3150_v59 = vmax.f32 %v3084_v52, 0.0 }
 0x4bf   : > { %v3153_v58 = vmax.f32 %v3095_v54, 0.0 }
 0x4c0   : > { %v3151_v60 = vmax.f32 %v3087_v56, 0.0 }
 0x4c1   : > { %v3173_v61 = vpack.c.bf16 %v3153_v58, %v3152_v57 }
 0x4c2   : > { %v3172_v62 = vpack.c.bf16 %v3151_v60, %v3150_v59 }
 0x4c4   : > { %7736 = vmatprep.mubr.bf16.mxu1 %v3172_v62 }
 0x4c5   : > { %7737 = vmatmul.mubr.bf16.gmra.mrb[116].mxu1 %v3173_v61  ;;  %v8434_v61 = vld [vmem:[%s11109_s11 + $0x20] sm:$0xff]  }
 0x4ca   : > { %v7694_v63 = vpop.f32.mrb[88].mxu1 }
 0x4cb   : > { %v3108_v0 = vadd.f32 %v7694_v63, %v9572_v32  ;;  %v3099_v1 = vpop.f32.mrb[89].mxu1 }
 0x4cc   : > { %v3100_v2 = vadd.f32 %v9572_v32, %v3099_v1  ;;  %v7695_v3 = vpop.f32.mrb[90].mxu1 }
 0x4cd   : > { %v3111_v4 = vadd.f32 %v7695_v3, %v9572_v32  ;;  %v3102_v5 = vpop.f32.mrb[91].mxu1  ;;  %v3156_v8 = vmax.f32 %v3108_v0, 0.0  ;;  %v8436_v3 = vld [vmem:[%s11109_s11 + $0x30] sm:$0xff]  }
 0x4ce   : > { %v3103_v7 = vadd.f32 %v9572_v32, %v3102_v5  ;;  %v3154_v10 = vmax.f32 %v3100_v2, 0.0  ;;  %v8435_v2 = vld [vmem:[%s11109_s11 + $0x28] sm:$0xff]  }
 0x4cf   : > { %v3157_v9 = vmax.f32 %v3111_v4, 0.0 }
 0x4d0   : > { %v3155_v11 = vmax.f32 %v3103_v7, 0.0 }
 0x4d1   : > { %v3175_v12 = vpack.c.bf16 %v3157_v9, %v3156_v8 }
 0x4d2   : > { %v3174_v13 = vpack.c.bf16 %v3155_v11, %v3154_v10 }
 0x4d4   : > { %7740 = vmatprep.mubr.bf16.mxu1 %v3174_v13 }
 0x4d5   : > { %7741 = vmatmul.mubr.bf16.gmra.mrb[120].mxu1 %v3175_v12 }
 0x4da   : > { %v7698_v14 = vpop.f32.mrb[92].mxu1 }
 0x4db   : > { %v3124_v15 = vadd.f32 %v7698_v14, %v9572_v32  ;;  %v3115_v16 = vpop.f32.mrb[93].mxu1 }
 0x4dc   : > { %v3116_v17 = vadd.f32 %v9572_v32, %v3115_v16  ;;  %v7699_v20 = vpop.f32.mrb[94].mxu1 }
 0x4dd   : > { %v3127_v22 = vadd.f32 %v7699_v20, %v9572_v32  ;;  %v3118_v27 = vpop.f32.mrb[95].mxu1  ;;  %v3160_v28 = vmax.f32 %v3124_v15, 0.0 }
 0x4de   : > { %v3119_v24 = vadd.f32 %v9572_v32, %v3118_v27  ;;  %v3158_v25 = vmax.f32 %v3116_v17, 0.0 }
 0x4df   : > { %v3161_v29 = vmax.f32 %v3127_v22, 0.0 }
 0x4e0   : > { %v3159_v30 = vmax.f32 %v3119_v24, 0.0 }
 0x4e1   : > { %v3177_v31 = vpack.c.bf16 %v3161_v29, %v3160_v28 }
 0x4e2   : > { %v3176_v33 = vpack.c.bf16 %v3159_v30, %v3158_v25 }
 0x4e4   : > { %7744 = vmatprep.mubr.bf16.mxu1 %v3176_v33 }
 0x4e5   : > { %7745 = vmatmul.mubr.bf16.gmra.mrb[124].mxu1 %v3177_v31 }
 0x548   : > { %v7718_v26 = vpop.f32.mrb[96].mxu1 }
 0x549   : > { %v3292_v32 = vadd.f32 %v7718_v26, %v9633_v35  ;;  %v3283_v36 = vpop.f32.mrb[97].mxu1 }
 0x54a   : > { %v3284_v37 = vadd.f32 %v9633_v35, %v3283_v36  ;;  %v7719_v38 = vpop.f32.mrb[98].mxu1 }
 0x54b   : > { %v3295_v39 = vadd.f32 %v7719_v38, %v9633_v35  ;;  %v3286_v40 = vpop.f32.mrb[99].mxu1  ;;  %v3412_v42 = vmax.f32 %v3292_v32, 0.0 }
 0x54c   : > { %v3287_v41 = vadd.f32 %v9633_v35, %v3286_v40  ;;  %v3410_v44 = vmax.f32 %v3284_v37, 0.0 }
 0x54d   : > { %v3413_v43 = vmax.f32 %v3295_v39, 0.0 }
 0x54e   : > { %v3411_v45 = vmax.f32 %v3287_v41, 0.0 }
 0x54f   : > { %v3443_v46 = vpack.c.bf16 %v3413_v43, %v3412_v42 }
 0x550   : > { %v3442_v47 = vpack.c.bf16 %v3411_v45, %v3410_v44 }
 0x552   : > { %7764 = vmatprep.mubr.bf16.mxu1 %v3442_v47 }
 0x553   : > { %7765 = vmatmul.mubr.bf16.vlgmr.msra.gmra.mrb[128].mxu1 %v3443_v46 }
 0x554   : > { %7797 = vmatpush3.bf16.msra.mxu1 %v8430_v34 }
 0x555   : > { %7798 = vmatprep.subr.bf16.mxu1 %v8431_v48 }
 0x558   : > { %v7722_v50 = vpop.f32.mrb[100].mxu1  ;;  %7799 = vmatpush3.bf16.msra.mxu1 %v8431_v48 }
 0x559   : > { %v3308_v51 = vadd.f32 %v7722_v50, %v9633_v35  ;;  %v3299_v52 = vpop.f32.mrb[101].mxu1  ;;  %7800 = vmatprep.subr.bf16.mxu1 %v8432_v49 }
 0x55a   : > { %v3300_v54 = vadd.f32 %v9633_v35, %v3299_v52  ;;  %v7723_v55 = vpop.f32.mrb[102].mxu1 }
 0x55b   : > { %v3311_v56 = vadd.f32 %v7723_v55, %v9633_v35  ;;  %v3302_v57 = vpop.f32.mrb[103].mxu1  ;;  %v3416_v59 = vmax.f32 %v3308_v51, 0.0 }
 0x55c   : > { %v3303_v58 = vadd.f32 %v9633_v35, %v3302_v57  ;;  %7801 = vmatpush3.bf16.msra.mxu1 %v8432_v49  ;;  %v3414_v62 = vmax.f32 %v3300_v54, 0.0 }
 0x55d   : > { %v3417_v60 = vmax.f32 %v3311_v56, 0.0  ;;  %7802 = vmatprep.subr.bf16.mxu1 %v8433_v53 }
 0x55e   : > { %v3415_v63 = vmax.f32 %v3303_v58, 0.0 }
 0x55f   : > { %v3445_v0 = vpack.c.bf16 %v3417_v60, %v3416_v59 }
 0x560   : > { %v3444_v1 = vpack.c.bf16 %v3415_v63, %v3414_v62  ;;  %7803 = vmatpush3.bf16.msra.mxu1 %v8433_v53 }
 0x561   : > { %7804 = vmatprep.subr.bf16.mxu1 %v8434_v61 }
 0x562   : > { %7768 = vmatprep.mubr.bf16.mxu1 %v3444_v1 }
 0x563   : > { %7769 = vmatmul.mubr.bf16.gmra.mrb[132].mxu1 %v3445_v0 }
 0x564   : > { %7805 = vmatpush3.bf16.msra.mxu1 %v8434_v61 }
 0x565   : > { %7806 = vmatprep.subr.bf16.mxu1 %v8435_v2 }
 0x568   : > { %v7726_v4 = vpop.f32.mrb[104].mxu1  ;;  %7807 = vmatpush3.bf16.msra.mxu1 %v8435_v2 }
 0x569   : > { %v3324_v5 = vadd.f32 %v7726_v4, %v9633_v35  ;;  %v3315_v6 = vpop.f32.mrb[105].mxu1  ;;  %7808 = vmatprep.subr.bf16.mxu1 %v8436_v3 }
 0x56a   : > { %v3316_v7 = vadd.f32 %v9633_v35, %v3315_v6  ;;  %v7727_v8 = vpop.f32.mrb[106].mxu1 }
 0x56b   : > { %v3327_v9 = vadd.f32 %v7727_v8, %v9633_v35  ;;  %v3318_v10 = vpop.f32.mrb[107].mxu1  ;;  %v3420_v12 = vmax.f32 %v3324_v5, 0.0  ;;  %v8437_v8 = vld [vmem:[%s11109_s11 + $0x38] sm:$0xff]  }
 0x56c   : > { %v3319_v11 = vadd.f32 %v9633_v35, %v3318_v10  ;;  %7809 = vmatpush3.bf16.msra.mxu1 %v8436_v3  ;;  %v3418_v14 = vmax.f32 %v3316_v7, 0.0 }
 0x56d   : > { %v3421_v13 = vmax.f32 %v3327_v9, 0.0  ;;  %7810 = vmatprep.subr.bf16.mxu1 %v8437_v8 }
 0x56e   : > { %v3419_v15 = vmax.f32 %v3319_v11, 0.0 }
 0x56f   : > { %v3447_v16 = vpack.c.bf16 %v3421_v13, %v3420_v12 }
 0x570   : > { %v3446_v17 = vpack.c.bf16 %v3419_v15, %v3418_v14  ;;  %7811 = vmatpush3.bf16.msra.mxu1 %v8437_v8 }
 0x572   : > { %7772 = vmatprep.mubr.bf16.mxu1 %v3446_v17 }
 0x573   : > { %7773 = vmatmul.mubr.bf16.gmra.mrb[136].mxu1 %v3447_v16 }
 0x578   : > { %v7730_v20 = vpop.f32.mrb[108].mxu1 }
 0x579   : > { %v3340_v22 = vadd.f32 %v7730_v20, %v9633_v35  ;;  %v3331_v27 = vpop.f32.mrb[109].mxu1 }
 0x57a   : > { %v3332_v24 = vadd.f32 %v9633_v35, %v3331_v27  ;;  %v7731_v28 = vpop.f32.mrb[110].mxu1 }
 0x57b   : > { %v3343_v29 = vadd.f32 %v7731_v28, %v9633_v35  ;;  %v3334_v25 = vpop.f32.mrb[111].mxu1  ;;  %v3424_v31 = vmax.f32 %v3340_v22, 0.0 }
 0x57c   : > { %v3335_v30 = vadd.f32 %v9633_v35, %v3334_v25  ;;  %v3422_v34 = vmax.f32 %v3332_v24, 0.0 }
 0x57d   : > { %v3425_v33 = vmax.f32 %v3343_v29, 0.0 }
 0x57e   : > { %v3423_v26 = vmax.f32 %v3335_v30, 0.0 }
 0x57f   : > { %v3449_v32 = vpack.c.bf16 %v3425_v33, %v3424_v31 }
 0x580   : > { %v3448_v36 = vpack.c.bf16 %v3423_v26, %v3422_v34 }
 0x582   : > { %7776 = vmatprep.mubr.bf16.mxu1 %v3448_v36  ;;  %v9694_v36 = vld [vmem:[%s11108_s10] ss:$0 sm:$0xff] }
 0x583   : > { %7777 = vmatmul.mubr.bf16.gmra.mrb[140].mxu1 %v3449_v32  ;;  %v8438_v32 = vld [vmem:[%s11111_s13] sm:$0xff]  }
 0x584   : > { %7844 = vmatprep.subr.bf16.mxu1 %v8438_v32 }
 0x588   : > { %v7734_v37 = vpop.f32.mrb[112].mxu1 }
 0x589   : > { %v3356_v38 = vadd.f32 %v7734_v37, %v9633_v35  ;;  %v3347_v39 = vpop.f32.mrb[113].mxu1 }
 0x58a   : > { %v3348_v40 = vadd.f32 %v9633_v35, %v3347_v39  ;;  %v7735_v41 = vpop.f32.mrb[114].mxu1 }
 0x58b   : > { %v3359_v42 = vadd.f32 %v7735_v41, %v9633_v35  ;;  %v3350_v43 = vpop.f32.mrb[115].mxu1  ;;  %v3428_v45 = vmax.f32 %v3356_v38, 0.0 }
 0x58c   : > { %v3351_v44 = vadd.f32 %v9633_v35, %v3350_v43  ;;  %v3426_v47 = vmax.f32 %v3348_v40, 0.0 }
 0x58d   : > { %v3429_v46 = vmax.f32 %v3359_v42, 0.0 }
 0x58e   : > { %v3427_v48 = vmax.f32 %v3351_v44, 0.0 }
 0x58f   : > { %v3451_v49 = vpack.c.bf16 %v3429_v46, %v3428_v45 }
 0x590   : > { %v3450_v50 = vpack.c.bf16 %v3427_v48, %v3426_v47 }
 0x592   : > { %7780 = vmatprep.mubr.bf16.mxu1 %v3450_v50  ;;  %v8439_v50 = vld [vmem:[%s11111_s13 + $0x8] sm:$0xff]  }
 0x593   : > { %7781 = vmatmul.mubr.bf16.gmra.mrb[144].mxu1 %v3451_v49 }
 0x598   : > { %v7738_v51 = vpop.f32.mrb[116].mxu1 }
 0x599   : > { %v3372_v52 = vadd.f32 %v7738_v51, %v9633_v35  ;;  %v3363_v53 = vpop.f32.mrb[117].mxu1  ;;  %v8440_v51 = vld [vmem:[%s11111_s13 + $0x10] sm:$0xff]  }
 0x59a   : > { %v3364_v54 = vadd.f32 %v9633_v35, %v3363_v53  ;;  %v7739_v55 = vpop.f32.mrb[118].mxu1 }
 0x59b   : > { %v3375_v56 = vadd.f32 %v7739_v55, %v9633_v35  ;;  %v3366_v57 = vpop.f32.mrb[119].mxu1  ;;  %v3432_v59 = vmax.f32 %v3372_v52, 0.0  ;;  %v8441_v55 = vld [vmem:[%s11111_s13 + $0x18] sm:$0xff]  }
 0x59c   : > { %v3367_v58 = vadd.f32 %v9633_v35, %v3366_v57  ;;  %v3430_v61 = vmax.f32 %v3364_v54, 0.0 }
 0x59d   : > { %v3433_v60 = vmax.f32 %v3375_v56, 0.0 }
 0x59e   : > { %v3431_v62 = vmax.f32 %v3367_v58, 0.0 }
 0x59f   : > { %v3453_v63 = vpack.c.bf16 %v3433_v60, %v3432_v59 }
 0x5a0   : > { %v3452_v0 = vpack.c.bf16 %v3431_v62, %v3430_v61 }
 0x5a2   : > { %7784 = vmatprep.mubr.bf16.mxu1 %v3452_v0 }
 0x5a3   : > { %7785 = vmatmul.mubr.bf16.gmra.mrb[148].mxu1 %v3453_v63  ;;  %v8442_v63 = vld [vmem:[%s11111_s13 + $0x20] sm:$0xff]  }
 0x5a8   : > { %v7742_v1 = vpop.f32.mrb[120].mxu1 }
 0x5a9   : > { %v3388_v2 = vadd.f32 %v7742_v1, %v9633_v35  ;;  %v3379_v3 = vpop.f32.mrb[121].mxu1 }
 0x5aa   : > { %v3380_v4 = vadd.f32 %v9633_v35, %v3379_v3  ;;  %v7743_v5 = vpop.f32.mrb[122].mxu1 }
 0x5ab   : > { %v3391_v6 = vadd.f32 %v7743_v5, %v9633_v35  ;;  %v3382_v7 = vpop.f32.mrb[123].mxu1  ;;  %v3436_v10 = vmax.f32 %v3388_v2, 0.0  ;;  %v8444_v5 = vld [vmem:[%s11111_s13 + $0x30] sm:$0xff]  }
 0x5ac   : > { %v3383_v9 = vadd.f32 %v9633_v35, %v3382_v7  ;;  %v3434_v12 = vmax.f32 %v3380_v4, 0.0  ;;  %v8443_v4 = vld [vmem:[%s11111_s13 + $0x28] sm:$0xff]  }
 0x5ad   : > { %v3437_v11 = vmax.f32 %v3391_v6, 0.0 }
 0x5ae   : > { %v3435_v13 = vmax.f32 %v3383_v9, 0.0 }
 0x5af   : > { %v3455_v14 = vpack.c.bf16 %v3437_v11, %v3436_v10 }
 0x5b0   : > { %v3454_v15 = vpack.c.bf16 %v3435_v13, %v3434_v12 }
 0x5b2   : > { %7788 = vmatprep.mubr.bf16.mxu1 %v3454_v15 }
 0x5b3   : > { %7789 = vmatmul.mubr.bf16.gmra.mrb[152].mxu1 %v3455_v14 }
 0x5b8   : > { %v7746_v16 = vpop.f32.mrb[124].mxu1 }
 0x5b9   : > { %v3404_v17 = vadd.f32 %v7746_v16, %v9633_v35  ;;  %v3395_v20 = vpop.f32.mrb[125].mxu1 }
 0x5ba   : > { %v3396_v22 = vadd.f32 %v9633_v35, %v3395_v20  ;;  %v7747_v27 = vpop.f32.mrb[126].mxu1 }
 0x5bb   : > { %v3407_v24 = vadd.f32 %v7747_v27, %v9633_v35  ;;  %v3398_v28 = vpop.f32.mrb[127].mxu1  ;;  %v3440_v25 = vmax.f32 %v3404_v17, 0.0 }
 0x5bc   : > { %v3399_v29 = vadd.f32 %v9633_v35, %v3398_v28  ;;  %v3438_v31 = vmax.f32 %v3396_v22, 0.0 }
 0x5bd   : > { %v3441_v30 = vmax.f32 %v3407_v24, 0.0 }
 0x5be   : > { %v3439_v33 = vmax.f32 %v3399_v29, 0.0 }
 0x5bf   : > { %v3457_v34 = vpack.c.bf16 %v3441_v30, %v3440_v25 }
 0x5c0   : > { %v3456_v26 = vpack.c.bf16 %v3439_v33, %v3438_v31 }
 0x5c2   : > { %7792 = vmatprep.mubr.bf16.mxu1 %v3456_v26 }
 0x5c3   : > { %7793 = vmatmul.mubr.bf16.gmra.mrb[156].mxu1 %v3457_v34 }
 0x626   : > { %v7766_v37 = vpop.f32.mrb[128].mxu1 }
 0x627   : > { %v3572_v35 = vadd.f32 %v7766_v37, %v9694_v36  ;;  %v3563_v38 = vpop.f32.mrb[129].mxu1 }
 0x628   : > { %v3564_v39 = vadd.f32 %v9694_v36, %v3563_v38  ;;  %v7767_v40 = vpop.f32.mrb[130].mxu1 }
 0x629   : > { %v3575_v41 = vadd.f32 %v7767_v40, %v9694_v36  ;;  %v3566_v42 = vpop.f32.mrb[131].mxu1  ;;  %v3692_v44 = vmax.f32 %v3572_v35, 0.0 }
 0x62a   : > { %v3567_v43 = vadd.f32 %v9694_v36, %v3566_v42  ;;  %v3690_v46 = vmax.f32 %v3564_v39, 0.0 }
 0x62b   : > { %v3693_v45 = vmax.f32 %v3575_v41, 0.0 }
 0x62c   : > { %v3691_v47 = vmax.f32 %v3567_v43, 0.0 }
 0x62d   : > { %v3723_v48 = vpack.c.bf16 %v3693_v45, %v3692_v44 }
 0x62e   : > { %v3722_v49 = vpack.c.bf16 %v3691_v47, %v3690_v46 }
 0x630   : > { %7812 = vmatprep.mubr.bf16.mxu1 %v3722_v49 }
 0x631   : > { %7813 = vmatmul.mubr.bf16.vlgmr.msra.gmra.mrb[160].mxu1 %v3723_v48 }
 0x632   : > { %7845 = vmatpush3.bf16.msra.mxu1 %v8438_v32 }
 0x633   : > { %7846 = vmatprep.subr.bf16.mxu1 %v8439_v50 }
 0x636   : > { %v7770_v52 = vpop.f32.mrb[132].mxu1  ;;  %7847 = vmatpush3.bf16.msra.mxu1 %v8439_v50 }
 0x637   : > { %v3588_v53 = vadd.f32 %v7770_v52, %v9694_v36  ;;  %v3579_v54 = vpop.f32.mrb[133].mxu1  ;;  %7848 = vmatprep.subr.bf16.mxu1 %v8440_v51 }
 0x638   : > { %v3580_v56 = vadd.f32 %v9694_v36, %v3579_v54  ;;  %v7771_v57 = vpop.f32.mrb[134].mxu1 }
 0x639   : > { %v3591_v58 = vadd.f32 %v7771_v57, %v9694_v36  ;;  %v3582_v59 = vpop.f32.mrb[135].mxu1  ;;  %v3696_v61 = vmax.f32 %v3588_v53, 0.0 }
 0x63a   : > { %v3583_v60 = vadd.f32 %v9694_v36, %v3582_v59  ;;  %7849 = vmatpush3.bf16.msra.mxu1 %v8440_v51  ;;  %v3694_v0 = vmax.f32 %v3580_v56, 0.0 }
 0x63b   : > { %v3697_v62 = vmax.f32 %v3591_v58, 0.0  ;;  %7850 = vmatprep.subr.bf16.mxu1 %v8441_v55 }
 0x63c   : > { %v3695_v1 = vmax.f32 %v3583_v60, 0.0 }
 0x63d   : > { %v3725_v2 = vpack.c.bf16 %v3697_v62, %v3696_v61 }
 0x63e   : > { %v3724_v3 = vpack.c.bf16 %v3695_v1, %v3694_v0  ;;  %7851 = vmatpush3.bf16.msra.mxu1 %v8441_v55 }
 0x63f   : > { %7852 = vmatprep.subr.bf16.mxu1 %v8442_v63 }
 0x640   : > { %7816 = vmatprep.mubr.bf16.mxu1 %v3724_v3 }
 0x641   : > { %7817 = vmatmul.mubr.bf16.gmra.mrb[164].mxu1 %v3725_v2 }
 0x642   : > { %7853 = vmatpush3.bf16.msra.mxu1 %v8442_v63 }
 0x643   : > { %7854 = vmatprep.subr.bf16.mxu1 %v8443_v4 }
 0x646   : > { %v7774_v6 = vpop.f32.mrb[136].mxu1  ;;  %7855 = vmatpush3.bf16.msra.mxu1 %v8443_v4 }
 0x647   : > { %v3604_v7 = vadd.f32 %v7774_v6, %v9694_v36  ;;  %v3595_v8 = vpop.f32.mrb[137].mxu1  ;;  %7856 = vmatprep.subr.bf16.mxu1 %v8444_v5 }
 0x648   : > { %v3596_v9 = vadd.f32 %v9694_v36, %v3595_v8  ;;  %v7775_v10 = vpop.f32.mrb[138].mxu1 }
 0x649   : > { %v3607_v11 = vadd.f32 %v7775_v10, %v9694_v36  ;;  %v3598_v12 = vpop.f32.mrb[139].mxu1  ;;  %v3700_v14 = vmax.f32 %v3604_v7, 0.0  ;;  %v8445_v10 = vld [vmem:[%s11111_s13 + $0x38] sm:$0xff]  }
 0x64a   : > { %v3599_v13 = vadd.f32 %v9694_v36, %v3598_v12  ;;  %7857 = vmatpush3.bf16.msra.mxu1 %v8444_v5  ;;  %v3698_v16 = vmax.f32 %v3596_v9, 0.0 }
 0x64b   : > { %v3701_v15 = vmax.f32 %v3607_v11, 0.0  ;;  %7858 = vmatprep.subr.bf16.mxu1 %v8445_v10 }
 0x64c   : > { %v3699_v17 = vmax.f32 %v3599_v13, 0.0 }
 0x64d   : > { %v3727_v20 = vpack.c.bf16 %v3701_v15, %v3700_v14 }
 0x64e   : > { %v3726_v22 = vpack.c.bf16 %v3699_v17, %v3698_v16  ;;  %7859 = vmatpush3.bf16.msra.mxu1 %v8445_v10 }
 0x650   : > { %7820 = vmatprep.mubr.bf16.mxu1 %v3726_v22 }
 0x651   : > { %7821 = vmatmul.mubr.bf16.gmra.mrb[168].mxu1 %v3727_v20 }
 0x656   : > { %v7778_v27 = vpop.f32.mrb[140].mxu1 }
 0x657   : > { %v3620_v24 = vadd.f32 %v7778_v27, %v9694_v36  ;;  %v3611_v28 = vpop.f32.mrb[141].mxu1 }
 0x658   : > { %v3612_v29 = vadd.f32 %v9694_v36, %v3611_v28  ;;  %v7779_v25 = vpop.f32.mrb[142].mxu1 }
 0x659   : > { %v3623_v30 = vadd.f32 %v7779_v25, %v9694_v36  ;;  %v3614_v31 = vpop.f32.mrb[143].mxu1  ;;  %v3704_v34 = vmax.f32 %v3620_v24, 0.0 }
 0x65a   : > { %v3615_v33 = vadd.f32 %v9694_v36, %v3614_v31  ;;  %v3702_v32 = vmax.f32 %v3612_v29, 0.0 }
 0x65b   : > { %v3705_v26 = vmax.f32 %v3623_v30, 0.0 }
 0x65c   : > { %v3703_v37 = vmax.f32 %v3615_v33, 0.0 }
 0x65d   : > { %v3729_v35 = vpack.c.bf16 %v3705_v26, %v3704_v34 }
 0x65e   : > { %v3728_v38 = vpack.c.bf16 %v3703_v37, %v3702_v32 }
 0x660   : > { %7824 = vmatprep.mubr.bf16.mxu1 %v3728_v38  ;;  %v9755_v38 = vld [vmem:[%s11110_s12] ss:$0 sm:$0xff] }
 0x661   : > { %7825 = vmatmul.mubr.bf16.gmra.mrb[172].mxu1 %v3729_v35  ;;  %v8446_v35 = vld [vmem:[%s11113_s15] sm:$0xff]  }
 0x662   : > { %7892 = vmatprep.subr.bf16.mxu1 %v8446_v35 }
 0x666   : > { %v7782_v39 = vpop.f32.mrb[144].mxu1 }
 0x667   : > { %v3636_v40 = vadd.f32 %v7782_v39, %v9694_v36  ;;  %v3627_v41 = vpop.f32.mrb[145].mxu1 }
 0x668   : > { %v3628_v42 = vadd.f32 %v9694_v36, %v3627_v41  ;;  %v7783_v43 = vpop.f32.mrb[146].mxu1 }
 0x669   : > { %v3639_v44 = vadd.f32 %v7783_v43, %v9694_v36  ;;  %v3630_v45 = vpop.f32.mrb[147].mxu1  ;;  %v3708_v47 = vmax.f32 %v3636_v40, 0.0 }
 0x66a   : > { %v3631_v46 = vadd.f32 %v9694_v36, %v3630_v45  ;;  %v3706_v49 = vmax.f32 %v3628_v42, 0.0 }
 0x66b   : > { %v3709_v48 = vmax.f32 %v3639_v44, 0.0 }
 0x66c   : > { %v3707_v50 = vmax.f32 %v3631_v46, 0.0 }
 0x66d   : > { %v3731_v51 = vpack.c.bf16 %v3709_v48, %v3708_v47 }
 0x66e   : > { %v3730_v52 = vpack.c.bf16 %v3707_v50, %v3706_v49 }
 0x670   : > { %7828 = vmatprep.mubr.bf16.mxu1 %v3730_v52  ;;  %v8447_v52 = vld [vmem:[%s11113_s15 + $0x8] sm:$0xff]  }
 0x671   : > { %7829 = vmatmul.mubr.bf16.gmra.mrb[176].mxu1 %v3731_v51 }
 0x676   : > { %v7786_v53 = vpop.f32.mrb[148].mxu1 }
 0x677   : > { %v3652_v54 = vadd.f32 %v7786_v53, %v9694_v36  ;;  %v3643_v55 = vpop.f32.mrb[149].mxu1  ;;  %v8448_v53 = vld [vmem:[%s11113_s15 + $0x10] sm:$0xff]  }
 0x678   : > { %v3644_v56 = vadd.f32 %v9694_v36, %v3643_v55  ;;  %v7787_v57 = vpop.f32.mrb[150].mxu1 }
 0x679   : > { %v3655_v58 = vadd.f32 %v7787_v57, %v9694_v36  ;;  %v3646_v59 = vpop.f32.mrb[151].mxu1  ;;  %v3712_v61 = vmax.f32 %v3652_v54, 0.0  ;;  %v8449_v57 = vld [vmem:[%s11113_s15 + $0x18] sm:$0xff]  }
 0x67a   : > { %v3647_v60 = vadd.f32 %v9694_v36, %v3646_v59  ;;  %v3710_v63 = vmax.f32 %v3644_v56, 0.0 }
 0x67b   : > { %v3713_v62 = vmax.f32 %v3655_v58, 0.0 }
 0x67c   : > { %v3711_v0 = vmax.f32 %v3647_v60, 0.0 }
 0x67d   : > { %v3733_v1 = vpack.c.bf16 %v3713_v62, %v3712_v61 }
 0x67e   : > { %v3732_v2 = vpack.c.bf16 %v3711_v0, %v3710_v63 }
 0x680   : > { %7832 = vmatprep.mubr.bf16.mxu1 %v3732_v2 }
 0x681   : > { %7833 = vmatmul.mubr.bf16.gmra.mrb[180].mxu1 %v3733_v1  ;;  %v8450_v1 = vld [vmem:[%s11113_s15 + $0x20] sm:$0xff]  }
 0x686   : > { %v7790_v3 = vpop.f32.mrb[152].mxu1 }
 0x687   : > { %v3668_v4 = vadd.f32 %v7790_v3, %v9694_v36  ;;  %v3659_v5 = vpop.f32.mrb[153].mxu1 }
 0x688   : > { %v3660_v6 = vadd.f32 %v9694_v36, %v3659_v5  ;;  %v7791_v7 = vpop.f32.mrb[154].mxu1 }
 0x689   : > { %v3671_v8 = vadd.f32 %v7791_v7, %v9694_v36  ;;  %v3662_v9 = vpop.f32.mrb[155].mxu1  ;;  %v3716_v12 = vmax.f32 %v3668_v4, 0.0  ;;  %v8452_v7 = vld [vmem:[%s11113_s15 + $0x30] sm:$0xff]  }
 0x68a   : > { %v3663_v11 = vadd.f32 %v9694_v36, %v3662_v9  ;;  %v3714_v14 = vmax.f32 %v3660_v6, 0.0  ;;  %v8451_v6 = vld [vmem:[%s11113_s15 + $0x28] sm:$0xff]  }
 0x68b   : > { %v3717_v13 = vmax.f32 %v3671_v8, 0.0 }
 0x68c   : > { %v3715_v15 = vmax.f32 %v3663_v11, 0.0 }
 0x68d   : > { %v3735_v16 = vpack.c.bf16 %v3717_v13, %v3716_v12 }
 0x68e   : > { %v3734_v17 = vpack.c.bf16 %v3715_v15, %v3714_v14 }
 0x690   : > { %7836 = vmatprep.mubr.bf16.mxu1 %v3734_v17 }
 0x691   : > { %7837 = vmatmul.mubr.bf16.gmra.mrb[184].mxu1 %v3735_v16 }
 0x696   : > { %v7794_v20 = vpop.f32.mrb[156].mxu1 }
 0x697   : > { %v3684_v22 = vadd.f32 %v7794_v20, %v9694_v36  ;;  %v3675_v27 = vpop.f32.mrb[157].mxu1 }
 0x698   : > { %v3676_v24 = vadd.f32 %v9694_v36, %v3675_v27  ;;  %v7795_v28 = vpop.f32.mrb[158].mxu1 }
 0x699   : > { %v3687_v29 = vadd.f32 %v7795_v28, %v9694_v36  ;;  %v3678_v25 = vpop.f32.mrb[159].mxu1  ;;  %v3720_v31 = vmax.f32 %v3684_v22, 0.0 }
 0x69a   : > { %v3679_v30 = vadd.f32 %v9694_v36, %v3678_v25  ;;  %v3718_v34 = vmax.f32 %v3676_v24, 0.0 }
 0x69b   : > { %v3721_v33 = vmax.f32 %v3687_v29, 0.0 }
 0x69c   : > { %v3719_v26 = vmax.f32 %v3679_v30, 0.0 }
 0x69d   : > { %v3737_v32 = vpack.c.bf16 %v3721_v33, %v3720_v31 }
 0x69e   : > { %v3736_v37 = vpack.c.bf16 %v3719_v26, %v3718_v34 }
 0x6a0   : > { %7840 = vmatprep.mubr.bf16.mxu1 %v3736_v37 }
 0x6a1   : > { %7841 = vmatmul.mubr.bf16.gmra.mrb[188].mxu1 %v3737_v32 }
 0x704   : > { %v7814_v39 = vpop.f32.mrb[160].mxu1 }
 0x705   : > { %v3852_v36 = vadd.f32 %v7814_v39, %v9755_v38  ;;  %v3843_v40 = vpop.f32.mrb[161].mxu1 }
 0x706   : > { %v3844_v41 = vadd.f32 %v9755_v38, %v3843_v40  ;;  %v7815_v42 = vpop.f32.mrb[162].mxu1 }
 0x707   : > { %v3855_v43 = vadd.f32 %v7815_v42, %v9755_v38  ;;  %v3846_v44 = vpop.f32.mrb[163].mxu1  ;;  %v3972_v46 = vmax.f32 %v3852_v36, 0.0 }
 0x708   : > { %v3847_v45 = vadd.f32 %v9755_v38, %v3846_v44  ;;  %v3970_v48 = vmax.f32 %v3844_v41, 0.0 }
 0x709   : > { %v3973_v47 = vmax.f32 %v3855_v43, 0.0 }
 0x70a   : > { %v3971_v49 = vmax.f32 %v3847_v45, 0.0 }
 0x70b   : > { %v4003_v50 = vpack.c.bf16 %v3973_v47, %v3972_v46 }
 0x70c   : > { %v4002_v51 = vpack.c.bf16 %v3971_v49, %v3970_v48 }
 0x70e   : > { %7860 = vmatprep.mubr.bf16.mxu1 %v4002_v51 }
 0x70f   : > { %7861 = vmatmul.mubr.bf16.vlgmr.msra.gmra.mrb[192].mxu1 %v4003_v50 }
 0x710   : > { %7893 = vmatpush3.bf16.msra.mxu1 %v8446_v35 }
 0x711   : > { %7894 = vmatprep.subr.bf16.mxu1 %v8447_v52 }
 0x714   : > { %v7818_v54 = vpop.f32.mrb[164].mxu1  ;;  %7895 = vmatpush3.bf16.msra.mxu1 %v8447_v52 }
 0x715   : > { %v3868_v55 = vadd.f32 %v7818_v54, %v9755_v38  ;;  %v3859_v56 = vpop.f32.mrb[165].mxu1  ;;  %7896 = vmatprep.subr.bf16.mxu1 %v8448_v53 }
 0x716   : > { %v3860_v58 = vadd.f32 %v9755_v38, %v3859_v56  ;;  %v7819_v59 = vpop.f32.mrb[166].mxu1 }
 0x717   : > { %v3871_v60 = vadd.f32 %v7819_v59, %v9755_v38  ;;  %v3862_v61 = vpop.f32.mrb[167].mxu1  ;;  %v3976_v63 = vmax.f32 %v3868_v55, 0.0 }
 0x718   : > { %v3863_v62 = vadd.f32 %v9755_v38, %v3862_v61  ;;  %7897 = vmatpush3.bf16.msra.mxu1 %v8448_v53  ;;  %v3974_v2 = vmax.f32 %v3860_v58, 0.0 }
 0x719   : > { %v3977_v0 = vmax.f32 %v3871_v60, 0.0  ;;  %7898 = vmatprep.subr.bf16.mxu1 %v8449_v57 }
 0x71a   : > { %v3975_v3 = vmax.f32 %v3863_v62, 0.0 }
 0x71b   : > { %v4005_v4 = vpack.c.bf16 %v3977_v0, %v3976_v63 }
 0x71c   : > { %v4004_v5 = vpack.c.bf16 %v3975_v3, %v3974_v2  ;;  %7899 = vmatpush3.bf16.msra.mxu1 %v8449_v57 }
 0x71d   : > { %7900 = vmatprep.subr.bf16.mxu1 %v8450_v1 }
 0x71e   : > { %7864 = vmatprep.mubr.bf16.mxu1 %v4004_v5 }
 0x71f   : > { %7865 = vmatmul.mubr.bf16.gmra.mrb[196].mxu1 %v4005_v4 }
 0x720   : > { %7901 = vmatpush3.bf16.msra.mxu1 %v8450_v1 }
 0x721   : > { %7902 = vmatprep.subr.bf16.mxu1 %v8451_v6 }
 0x724   : > { %v7822_v8 = vpop.f32.mrb[168].mxu1  ;;  %7903 = vmatpush3.bf16.msra.mxu1 %v8451_v6 }
 0x725   : > { %v3884_v9 = vadd.f32 %v7822_v8, %v9755_v38  ;;  %v3875_v10 = vpop.f32.mrb[169].mxu1  ;;  %7904 = vmatprep.subr.bf16.mxu1 %v8452_v7 }
 0x726   : > { %v3876_v11 = vadd.f32 %v9755_v38, %v3875_v10  ;;  %v7823_v12 = vpop.f32.mrb[170].mxu1 }
 0x727   : > { %v3887_v13 = vadd.f32 %v7823_v12, %v9755_v38  ;;  %v3878_v14 = vpop.f32.mrb[171].mxu1  ;;  %v3980_v16 = vmax.f32 %v3884_v9, 0.0  ;;  %v8453_v12 = vld [vmem:[%s11113_s15 + $0x38] sm:$0xff]  }
 0x728   : > { %v3879_v15 = vadd.f32 %v9755_v38, %v3878_v14  ;;  %7905 = vmatpush3.bf16.msra.mxu1 %v8452_v7  ;;  %v3978_v20 = vmax.f32 %v3876_v11, 0.0 }
 0x729   : > { %v3981_v17 = vmax.f32 %v3887_v13, 0.0  ;;  %7906 = vmatprep.subr.bf16.mxu1 %v8453_v12 }
 0x72a   : > { %v3979_v22 = vmax.f32 %v3879_v15, 0.0 }
 0x72b   : > { %v4007_v27 = vpack.c.bf16 %v3981_v17, %v3980_v16 }
 0x72c   : > { %v4006_v24 = vpack.c.bf16 %v3979_v22, %v3978_v20  ;;  %7907 = vmatpush3.bf16.msra.mxu1 %v8453_v12  ;;  %v8466_v12 = vld [vmem:[%s11115_s17 + $0x40] ss:$8 sps:$4 sm:$0xff]  }
 0x72e   : > { %7868 = vmatprep.mubr.bf16.mxu1 %v4006_v24 }
 0x72f   : > { %7869 = vmatmul.mubr.bf16.gmra.mrb[200].mxu1 %v4007_v27 }
 0x734   : > { %v7826_v28 = vpop.f32.mrb[172].mxu1 }
 0x735   : > { %v3900_v29 = vadd.f32 %v7826_v28, %v9755_v38  ;;  %v3891_v25 = vpop.f32.mrb[173].mxu1 }
 0x736   : > { %v3892_v30 = vadd.f32 %v9755_v38, %v3891_v25  ;;  %v7827_v31 = vpop.f32.mrb[174].mxu1 }
 0x737   : > { %v3903_v33 = vadd.f32 %v7827_v31, %v9755_v38  ;;  %v3894_v34 = vpop.f32.mrb[175].mxu1  ;;  %v3984_v32 = vmax.f32 %v3900_v29, 0.0 }
 0x738   : > { %v3895_v26 = vadd.f32 %v9755_v38, %v3894_v34  ;;  %v3982_v35 = vmax.f32 %v3892_v30, 0.0 }
 0x739   : > { %v3985_v37 = vmax.f32 %v3903_v33, 0.0 }
 0x73a   : > { %v3983_v39 = vmax.f32 %v3895_v26, 0.0 }
 0x73b   : > { %v4009_v36 = vpack.c.bf16 %v3985_v37, %v3984_v32 }
 0x73c   : > { %v4008_v40 = vpack.c.bf16 %v3983_v39, %v3982_v35 }
 0x73e   : > { %7872 = vmatprep.mubr.bf16.mxu1 %v4008_v40  ;;  %v9816_v40 = vld [vmem:[%s11112_s14] ss:$0 sm:$0xff] }
 0x73f   : > { %7873 = vmatmul.mubr.bf16.gmra.mrb[204].mxu1 %v4009_v36  ;;  %v8456_v36 = vld [vmem:[%s11115_s17 + $0x4] ss:$8 sps:$4 sm:$0xff]  }
 0x740   : > { %4686 = vmatprep.subr.bf16.mxu1 %v8456_v36 }
 0x744   : > { %v7830_v41 = vpop.f32.mrb[176].mxu1 }
 0x745   : > { %v3916_v42 = vadd.f32 %v7830_v41, %v9755_v38  ;;  %v3907_v43 = vpop.f32.mrb[177].mxu1 }
 0x746   : > { %v3908_v44 = vadd.f32 %v9755_v38, %v3907_v43  ;;  %v7831_v45 = vpop.f32.mrb[178].mxu1 }
 0x747   : > { %v3919_v46 = vadd.f32 %v7831_v45, %v9755_v38  ;;  %v3910_v47 = vpop.f32.mrb[179].mxu1  ;;  %v3988_v49 = vmax.f32 %v3916_v42, 0.0 }
 0x748   : > { %v3911_v48 = vadd.f32 %v9755_v38, %v3910_v47  ;;  %v3986_v51 = vmax.f32 %v3908_v44, 0.0 }
 0x749   : > { %v3989_v50 = vmax.f32 %v3919_v46, 0.0 }
 0x74a   : > { %v3987_v52 = vmax.f32 %v3911_v48, 0.0 }
 0x74b   : > { %v4011_v53 = vpack.c.bf16 %v3989_v50, %v3988_v49 }
 0x74c   : > { %v4010_v54 = vpack.c.bf16 %v3987_v52, %v3986_v51 }
 0x74e   : > { %7876 = vmatprep.mubr.bf16.mxu1 %v4010_v54  ;;  %v8454_v54 = vld [vmem:[%s11115_s17] ss:$8 sps:$4 sm:$0xff]  }
 0x74f   : > { %7877 = vmatmul.mubr.bf16.gmra.mrb[208].mxu1 %v4011_v53 }
 0x754   : > { %v7834_v55 = vpop.f32.mrb[180].mxu1 }
 0x755   : > { %v3932_v56 = vadd.f32 %v7834_v55, %v9755_v38  ;;  %v3923_v57 = vpop.f32.mrb[181].mxu1  ;;  %v8459_v55 = vld [vmem:[%s11115_s17 + $0x14] ss:$8 sps:$4 sm:$0xff]  }
 0x756   : > { %v3924_v58 = vadd.f32 %v9755_v38, %v3923_v57  ;;  %v7835_v59 = vpop.f32.mrb[182].mxu1  ;;  %v8462_v57 = vld [vmem:[%s11115_s17 + $0x24] ss:$8 sps:$4 sm:$0xff]  }
 0x757   : > { %v3935_v60 = vadd.f32 %v7835_v59, %v9755_v38  ;;  %v3926_v61 = vpop.f32.mrb[183].mxu1  ;;  %v3992_v63 = vmax.f32 %v3932_v56, 0.0  ;;  %v8457_v56 = vld [vmem:[%s11115_s17 + $0x10] ss:$8 sps:$4 sm:$0xff]   ;;  %v8460_v59 = vld [vmem:[%s11115_s17 + $0x20] ss:$8 sps:$4 sm:$0xff]  }
 0x758   : > { %v3927_v62 = vadd.f32 %v9755_v38, %v3926_v61  ;;  %v3990_v1 = vmax.f32 %v3924_v58, 0.0 }
 0x759   : > { %v3993_v0 = vmax.f32 %v3935_v60, 0.0 }
 0x75a   : > { %v3991_v2 = vmax.f32 %v3927_v62, 0.0  ;;  %v8465_v62 = vld [vmem:[%s11115_s17 + $0x34] ss:$8 sps:$4 sm:$0xff]  }
 0x75b   : > { %v4013_v3 = vpack.c.bf16 %v3993_v0, %v3992_v63 }
 0x75c   : > { %v4012_v4 = vpack.c.bf16 %v3991_v2, %v3990_v1 }
 0x75e   : > { %7880 = vmatprep.mubr.bf16.mxu1 %v4012_v4  ;;  %v8463_v4 = vld [vmem:[%s11115_s17 + $0x30] ss:$8 sps:$4 sm:$0xff]  }
 0x75f   : > { %7881 = vmatmul.mubr.bf16.gmra.mrb[212].mxu1 %v4013_v3 }
 0x764   : > { %v7838_v5 = vpop.f32.mrb[184].mxu1 }
 0x765   : > { %v3948_v6 = vadd.f32 %v7838_v5, %v9755_v38  ;;  %v3939_v7 = vpop.f32.mrb[185].mxu1 }
 0x766   : > { %v3940_v8 = vadd.f32 %v9755_v38, %v3939_v7  ;;  %v7839_v9 = vpop.f32.mrb[186].mxu1  ;;  %v8468_v7 = vld [vmem:[%s11115_s17 + $0x44] ss:$8 sps:$4 sm:$0xff]  }
 0x767   : > { %v3951_v10 = vadd.f32 %v7839_v9, %v9755_v38  ;;  %v3942_v11 = vpop.f32.mrb[187].mxu1  ;;  %v3996_v14 = vmax.f32 %v3948_v6, 0.0 }
 0x768   : > { %v3943_v13 = vadd.f32 %v9755_v38, %v3942_v11  ;;  %v3994_v16 = vmax.f32 %v3940_v8, 0.0 }
 0x769   : > { %v3997_v15 = vmax.f32 %v3951_v10, 0.0 }
 0x76a   : > { %v3995_v17 = vmax.f32 %v3943_v13, 0.0  ;;  %v8471_v13 = vld [vmem:[%s11115_s17 + $0x54] ss:$8 sps:$4 sm:$0xff]  }
 0x76b   : > { %v4015_v20 = vpack.c.bf16 %v3997_v15, %v3996_v14  ;;  %v8469_v14 = vld [vmem:[%s11115_s17 + $0x50] ss:$8 sps:$4 sm:$0xff]   ;;  %v8474_v15 = vld [vmem:[%s11115_s17 + $0x64] ss:$8 sps:$4 sm:$0xff]  }
 0x76c   : > { %v4014_v22 = vpack.c.bf16 %v3995_v17, %v3994_v16  ;;  %v8472_v17 = vld [vmem:[%s11115_s17 + $0x60] ss:$8 sps:$4 sm:$0xff]  }
 0x76e   : > { %7884 = vmatprep.mubr.bf16.mxu1 %v4014_v22 }
 0x76f   : > { %7885 = vmatmul.mubr.bf16.gmra.mrb[216].mxu1 %v4015_v20 }
 0x774   : > { %v7842_v27 = vpop.f32.mrb[188].mxu1 }
 0x775   : > { %v3964_v24 = vadd.f32 %v7842_v27, %v9755_v38  ;;  %v3955_v28 = vpop.f32.mrb[189].mxu1 }
 0x776   : > { %v3956_v29 = vadd.f32 %v9755_v38, %v3955_v28  ;;  %v7843_v25 = vpop.f32.mrb[190].mxu1 }
 0x777   : > { %v3967_v30 = vadd.f32 %v7843_v25, %v9755_v38  ;;  %v3958_v31 = vpop.f32.mrb[191].mxu1  ;;  %v4000_v34 = vmax.f32 %v3964_v24, 0.0 }
 0x778   : > { %v3959_v33 = vadd.f32 %v9755_v38, %v3958_v31  ;;  %v3998_v32 = vmax.f32 %v3956_v29, 0.0 }
 0x779   : > { %v4001_v26 = vmax.f32 %v3967_v30, 0.0 }
 0x77a   : > { %v3999_v37 = vmax.f32 %v3959_v33, 0.0 }
 0x77b   : > { %v4017_v35 = vpack.c.bf16 %v4001_v26, %v4000_v34 }
 0x77c   : > { %v4016_v39 = vpack.c.bf16 %v3999_v37, %v3998_v32 }
 0x77e   : > { %7888 = vmatprep.mubr.bf16.mxu1 %v4016_v39 }
 0x77f   : > { %7889 = vmatmul.mubr.bf16.gmra.mrb[220].mxu1 %v4017_v35 }
 0x7e2   : > { %v7862_v41 = vpop.f32.mrb[192].mxu1 }
 0x7e3   : > { %v4132_v38 = vadd.f32 %v7862_v41, %v9816_v40  ;;  %v4123_v42 = vpop.f32.mrb[193].mxu1 }
 0x7e4   : > { %v4124_v43 = vadd.f32 %v9816_v40, %v4123_v42  ;;  %v7863_v44 = vpop.f32.mrb[194].mxu1 }
 0x7e5   : > { %v4135_v45 = vadd.f32 %v7863_v44, %v9816_v40  ;;  %v4126_v46 = vpop.f32.mrb[195].mxu1  ;;  %v4252_v48 = vmax.f32 %v4132_v38, 0.0 }
 0x7e6   : > { %v4127_v47 = vadd.f32 %v9816_v40, %v4126_v46  ;;  %v4250_v50 = vmax.f32 %v4124_v43, 0.0 }
 0x7e7   : > { %v4253_v49 = vmax.f32 %v4135_v45, 0.0 }
 0x7e8   : > { %v4251_v51 = vmax.f32 %v4127_v47, 0.0 }
 0x7e9   : > { %v4283_v52 = vpack.c.bf16 %v4253_v49, %v4252_v48 }
 0x7ea   : > { %v4282_v53 = vpack.c.bf16 %v4251_v51, %v4250_v50 }
 0x7ec   : > { %7908 = vmatprep.mubr.bf16.mxu1 %v4282_v53 }
 0x7ed   : > { %7909 = vmatmul.mubr.bf16.vlgmr.msra.gmra.mrb[224].mxu1 %v4283_v52 }
 0x7ee   : > { %4687 = vmatpush1.bf16.msra.mxu1 %v8454_v54 }
 0x7ef   : > { %4688 = vmatprep.subr.bf16.mxu1 %v8459_v55 }
 0x7f2   : > { %v7866_v58 = vpop.f32.mrb[196].mxu1  ;;  %4689 = vmatpush1.bf16.msra.mxu1 %v8457_v56 }
 0x7f3   : > { %v4148_v60 = vadd.f32 %v7866_v58, %v9816_v40  ;;  %v4139_v61 = vpop.f32.mrb[197].mxu1  ;;  %4690 = vmatprep.subr.bf16.mxu1 %v8462_v57 }
 0x7f4   : > { %v4140_v63 = vadd.f32 %v9816_v40, %v4139_v61  ;;  %v7867_v0 = vpop.f32.mrb[198].mxu1 }
 0x7f5   : > { %v4151_v1 = vadd.f32 %v7867_v0, %v9816_v40  ;;  %v4142_v2 = vpop.f32.mrb[199].mxu1  ;;  %v4256_v5 = vmax.f32 %v4148_v60, 0.0 }
 0x7f6   : > { %v4143_v3 = vadd.f32 %v9816_v40, %v4142_v2  ;;  %4691 = vmatpush1.bf16.msra.mxu1 %v8460_v59  ;;  %v4254_v8 = vmax.f32 %v4140_v63, 0.0 }
 0x7f7   : > { %v4257_v6 = vmax.f32 %v4151_v1, 0.0  ;;  %4692 = vmatprep.subr.bf16.mxu1 %v8465_v62 }
 0x7f8   : > { %v4255_v9 = vmax.f32 %v4143_v3, 0.0 }
 0x7f9   : > { %v4285_v10 = vpack.c.bf16 %v4257_v6, %v4256_v5 }
 0x7fa   : > { %v4284_v11 = vpack.c.bf16 %v4255_v9, %v4254_v8  ;;  %4693 = vmatpush1.bf16.msra.mxu1 %v8463_v4 }
 0x7fb   : > { %4694 = vmatprep.subr.bf16.mxu1 %v8468_v7 }
 0x7fc   : > { %7912 = vmatprep.mubr.bf16.mxu1 %v4284_v11 }
 0x7fd   : > { %7913 = vmatmul.mubr.bf16.gmra.mrb[228].mxu1 %v4285_v10 }
 0x7fe   : > { %4695 = vmatpush1.bf16.msra.mxu1 %v8466_v12 }
 0x7ff   : > { %4696 = vmatprep.subr.bf16.mxu1 %v8471_v13 }
 0x802   : > { %v7870_v16 = vpop.f32.mrb[200].mxu1  ;;  %4697 = vmatpush1.bf16.msra.mxu1 %v8469_v14 }
 0x803   : > { %v4164_v20 = vadd.f32 %v7870_v16, %v9816_v40  ;;  %v4155_v22 = vpop.f32.mrb[201].mxu1  ;;  %4698 = vmatprep.subr.bf16.mxu1 %v8474_v15 }
 0x804   : > { %v4156_v27 = vadd.f32 %v9816_v40, %v4155_v22  ;;  %v7871_v24 = vpop.f32.mrb[202].mxu1  ;;  %v8477_v22 = vld [vmem:[%s11115_s17 + $0x74] ss:$8 sps:$4 sm:$0xff]  }
 0x805   : > { %v4167_v28 = vadd.f32 %v7871_v24, %v9816_v40  ;;  %v4158_v29 = vpop.f32.mrb[203].mxu1  ;;  %v4260_v30 = vmax.f32 %v4164_v20, 0.0 }
 0x806   : > { %v4159_v25 = vadd.f32 %v9816_v40, %v4158_v29  ;;  %4699 = vmatpush1.bf16.msra.mxu1 %v8472_v17  ;;  %v4258_v33 = vmax.f32 %v4156_v27, 0.0 }
 0x807   : > { %v4261_v31 = vmax.f32 %v4167_v28, 0.0  ;;  %v8475_v28 = vld [vmem:[%s11115_s17 + $0x70] ss:$8 sps:$4 sm:$0xff]   ;;  %4700 = vmatprep.subr.bf16.mxu1 %v8477_v22  ;;  %v8499_v22 = vld [vmem:[%s11117_s19 + $0x188] ss:$28 sps:$4 sm:$0xff]  }
 0x808   : > { %v4259_v34 = vmax.f32 %v4159_v25, 0.0 }
 0x809   : > { %v4287_v26 = vpack.c.bf16 %v4261_v31, %v4260_v30 }
 0x80a   : > { %v4286_v32 = vpack.c.bf16 %v4259_v34, %v4258_v33  ;;  %4701 = vmatpush1.bf16.msra.mxu1 %v8475_v28 }
 0x80c   : > { %7916 = vmatprep.mubr.bf16.mxu1 %v4286_v32 }
 0x80d   : > { %7917 = vmatmul.mubr.bf16.gmra.mrb[232].mxu1 %v4287_v26 }
 0x812   : > { %v7874_v37 = vpop.f32.mrb[204].mxu1 }
 0x813   : > { %v4180_v35 = vadd.f32 %v7874_v37, %v9816_v40  ;;  %v4171_v39 = vpop.f32.mrb[205].mxu1 }
 0x814   : > { %v4172_v36 = vadd.f32 %v9816_v40, %v4171_v39  ;;  %v7875_v41 = vpop.f32.mrb[206].mxu1 }
 0x815   : > { %v4183_v38 = vadd.f32 %v7875_v41, %v9816_v40  ;;  %v4174_v42 = vpop.f32.mrb[207].mxu1  ;;  %v4264_v44 = vmax.f32 %v4180_v35, 0.0 }
 0x816   : > { %v4175_v43 = vadd.f32 %v9816_v40, %v4174_v42  ;;  %v4262_v46 = vmax.f32 %v4172_v36, 0.0 }
 0x817   : > { %v4265_v45 = vmax.f32 %v4183_v38, 0.0 }
 0x818   : > { %v4263_v47 = vmax.f32 %v4175_v43, 0.0 }
 0x819   : > { %v4289_v48 = vpack.c.bf16 %v4265_v45, %v4264_v44 }
 0x81a   : > { %v4288_v49 = vpack.c.bf16 %v4263_v47, %v4262_v46 }
 0x81c   : > { %7920 = vmatprep.mubr.bf16.mxu1 %v4288_v49  ;;  %v8478_v49 = vld [vmem:[%s11117_s19] ss:$28 sps:$4 sm:$0xff]  }
 0x81d   : > { %7921 = vmatmul.mubr.bf16.gmra.mrb[236].mxu1 %v4289_v48 }
 0x822   : > { %v7878_v50 = vpop.f32.mrb[208].mxu1 }
 0x823   : > { %v4196_v51 = vadd.f32 %v7878_v50, %v9816_v40  ;;  %v4187_v52 = vpop.f32.mrb[209].mxu1  ;;  %v8480_v50 = vld [vmem:[%s11117_s19 + $0x4] ss:$28 sps:$4 sm:$0xff]  }
 0x824   : > { %v4188_v53 = vadd.f32 %v9816_v40, %v4187_v52  ;;  %v7879_v54 = vpop.f32.mrb[210].mxu1  ;;  %5716 = vmatprep.subr.bf16.mxu0 %v8480_v50  ;;  %v8484_v52 = vld [vmem:[%s11117_s19 + $0x70] ss:$28 sps:$4 sm:$0xff]  }
 0x825   : > { %v4199_v55 = vadd.f32 %v7879_v54, %v9816_v40  ;;  %v4190_v56 = vpop.f32.mrb[211].mxu1  ;;  %v4268_v58 = vmax.f32 %v4196_v51, 0.0  ;;  %5717 = vmatpush1.bf16.msra.mxu0 %v8478_v49  ;;  %v8483_v51 = vld [vmem:[%s11117_s19 + $0x3c] ss:$28 sps:$4 sm:$0xff]   ;;  %v8489_v54 = vld [vmem:[%s11117_s19 + $0xac] ss:$28 sps:$4 sm:$0xff]  }
 0x826   : > { %v4191_v57 = vadd.f32 %v9816_v40, %v4190_v56  ;;  %v4266_v60 = vmax.f32 %v4188_v53, 0.0  ;;  %5718 = vmatprep.subr.bf16.mxu0 %v8483_v51  ;;  %v8486_v53 = vld [vmem:[%s11117_s19 + $0x74] ss:$28 sps:$4 sm:$0xff]   ;;  %v9923_v56 = vld [vmem:[%s11114_s16] ss:$0 sm:$0xff] }
 0x827   : > { %v4269_v59 = vmax.f32 %v4199_v55, 0.0  ;;  %v8487_v55 = vld [vmem:[%s11117_s19 + $0xa8] ss:$28 sps:$4 sm:$0xff]   ;;  %v8520_v50 = vld [vmem:[%s11117_s19 + $0x230] ss:$28 sps:$4 sm:$0xff]  }
 0x828   : > { %v4267_v61 = vmax.f32 %v4191_v57, 0.0  ;;  %v8528_v49 = vld [vmem:[%s11117_s19 + $0x124] ss:$28 sps:$4 sm:$0xff]  }
 0x829   : > { %v4291_v62 = vpack.c.bf16 %v4269_v59, %v4268_v58  ;;  %v8526_v51 = vld [vmem:[%s11117_s19 + $0x120] ss:$28 sps:$4 sm:$0xff]  }
 0x82a   : > { %v4290_v63 = vpack.c.bf16 %v4267_v61, %v4266_v60 }
 0x82c   : > { %7924 = vmatprep.mubr.bf16.mxu1 %v4290_v63  ;;  %v8492_v63 = vld [vmem:[%s11117_s19 + $0xe4] ss:$28 sps:$4 sm:$0xff]  }
 0x82d   : > { %7925 = vmatmul.mubr.bf16.gmra.mrb[240].mxu1 %v4291_v62  ;;  %v8490_v62 = vld [vmem:[%s11117_s19 + $0xe0] ss:$28 sps:$4 sm:$0xff]  }
 0x832   : > { %v7882_v0 = vpop.f32.mrb[212].mxu1 }
 0x833   : > { %v4212_v1 = vadd.f32 %v7882_v0, %v9816_v40  ;;  %v4203_v2 = vpop.f32.mrb[213].mxu1 }
 0x834   : > { %v4204_v3 = vadd.f32 %v9816_v40, %v4203_v2  ;;  %v7883_v4 = vpop.f32.mrb[214].mxu1  ;;  %v8495_v2 = vld [vmem:[%s11117_s19 + $0x11c] ss:$28 sps:$4 sm:$0xff]  }
 0x835   : > { %v4215_v5 = vadd.f32 %v7883_v4, %v9816_v40  ;;  %v4206_v6 = vpop.f32.mrb[215].mxu1  ;;  %v4272_v8 = vmax.f32 %v4212_v1, 0.0 }
 0x836   : > { %v4207_v7 = vadd.f32 %v9816_v40, %v4206_v6  ;;  %v4270_v10 = vmax.f32 %v4204_v3, 0.0  ;;  %v8493_v6 = vld [vmem:[%s11117_s19 + $0x118] ss:$28 sps:$4 sm:$0xff]  }
 0x837   : > { %v4273_v9 = vmax.f32 %v4215_v5, 0.0 }
 0x838   : > { %v4271_v11 = vmax.f32 %v4207_v7, 0.0 }
 0x839   : > { %v4293_v12 = vpack.c.bf16 %v4273_v9, %v4272_v8  ;;  %v8498_v9 = vld [vmem:[%s11117_s19 + $0x154] ss:$28 sps:$4 sm:$0xff]  }
 0x83a   : > { %v4292_v13 = vpack.c.bf16 %v4271_v11, %v4270_v10  ;;  %v8505_v11 = vld [vmem:[%s11117_s19 + $0x8] ss:$28 sps:$4 sm:$0xff]  }
 0x83c   : > { %7928 = vmatprep.mubr.bf16.mxu1 %v4292_v13 }
 0x83d   : > { %7929 = vmatmul.mubr.bf16.gmra.mrb[244].mxu1 %v4293_v12  ;;  %v8507_v12 = vld [vmem:[%s11117_s19 + $0xc] ss:$28 sps:$4 sm:$0xff]  }
 0x83e   : > { %5909 = vmatprep.subr.bf16.mxu1 %v8507_v12 }
 0x842   : > { %v7886_v14 = vpop.f32.mrb[216].mxu1 }
 0x843   : > { %v4228_v15 = vadd.f32 %v7886_v14, %v9816_v40  ;;  %v4219_v16 = vpop.f32.mrb[217].mxu1  ;;  %v8510_v14 = vld [vmem:[%s11117_s19 + $0x44] ss:$28 sps:$4 sm:$0xff]  }
 0x844   : > { %v4220_v17 = vadd.f32 %v9816_v40, %v4219_v16  ;;  %v7887_v20 = vpop.f32.mrb[218].mxu1  ;;  %v8501_v16 = vld [vmem:[%s11117_s19 + $0x18c] ss:$28 sps:$4 sm:$0xff]  }
 0x845   : > { %v4231_v27 = vadd.f32 %v7887_v20, %v9816_v40  ;;  %v4222_v24 = vpop.f32.mrb[219].mxu1  ;;  %v4276_v25 = vmax.f32 %v4228_v15, 0.0  ;;  %v8496_v15 = vld [vmem:[%s11117_s19 + $0x150] ss:$28 sps:$4 sm:$0xff]   ;;  %v8516_v20 = vld [vmem:[%s11117_s19 + $0x7c] ss:$28 sps:$4 sm:$0xff]  }
 0x846   : > { %v4223_v29 = vadd.f32 %v9816_v40, %v4222_v24  ;;  %v4274_v31 = vmax.f32 %v4220_v17, 0.0  ;;  %v8508_v17 = vld [vmem:[%s11117_s19 + $0x40] ss:$28 sps:$4 sm:$0xff]   ;;  %v8514_v24 = vld [vmem:[%s11117_s19 + $0x78] ss:$28 sps:$4 sm:$0xff]  }
 0x847   : > { %v4277_v30 = vmax.f32 %v4231_v27, 0.0  ;;  %v8504_v27 = vld [vmem:[%s11117_s19 + $0x1c4] ss:$28 sps:$4 sm:$0xff]  }
 0x848   : > { %v4275_v33 = vmax.f32 %v4223_v29, 0.0  ;;  %v8519_v29 = vld [vmem:[%s11117_s19 + $0xb4] ss:$28 sps:$4 sm:$0xff]  }
 0x849   : > { %v4295_v34 = vpack.c.bf16 %v4277_v30, %v4276_v25 }
 0x84a   : > { %v4294_v26 = vpack.c.bf16 %v4275_v33, %v4274_v31  ;;  %v8502_v31 = vld [vmem:[%s11117_s19 + $0x1c0] ss:$28 sps:$4 sm:$0xff]  }
 0x84c   : > { %7932 = vmatprep.mubr.bf16.mxu1 %v4294_v26  ;;  %v8513_v26 = vld [vmem:[%s11117_s19 + $0x1fc] ss:$28 sps:$4 sm:$0xff]  }
 0x84d   : > { %7933 = vmatmul.mubr.bf16.gmra.mrb[248].mxu1 %v4295_v34 }
 0x852   : > { %v7890_v32 = vpop.f32.mrb[220].mxu1 }
 0x853   : > { %v4244_v37 = vadd.f32 %v7890_v32, %v9816_v40  ;;  %v4235_v35 = vpop.f32.mrb[221].mxu1 }
 0x854   : > { %v4236_v39 = vadd.f32 %v9816_v40, %v4235_v35  ;;  %v7891_v36 = vpop.f32.mrb[222].mxu1  ;;  %v8517_v35 = vld [vmem:[%s11117_s19 + $0xb0] ss:$28 sps:$4 sm:$0xff]  }
 0x855   : > { %v4247_v41 = vadd.f32 %v7891_v36, %v9816_v40  ;;  %v4238_v38 = vpop.f32.mrb[223].mxu1  ;;  %v4280_v43 = vmax.f32 %v4244_v37, 0.0  ;;  %v8525_v36 = vld [vmem:[%s11117_s19 + $0xec] ss:$28 sps:$4 sm:$0xff]  }
 0x856   : > { %v4239_v42 = vadd.f32 %v9816_v40, %v4238_v38  ;;  %v4278_v45 = vmax.f32 %v4236_v39, 0.0  ;;  %v8481_v40 = vld [vmem:[%s11117_s19 + $0x38] ss:$28 sps:$4 sm:$0xff]  }
 0x857   : > { %v4281_v44 = vmax.f32 %v4247_v41, 0.0  ;;  %5719 = vmatpush1.bf16.msra.mxu0 %v8481_v40  ;;  %v8531_v40 = vld [vmem:[%s11117_s19 + $0x26c] ss:$28 sps:$4 sm:$0xff]  }
 0x858   : > { %v4279_v46 = vmax.f32 %v4239_v42, 0.0  ;;  %5720 = vmatprep.subr.bf16.mxu0 %v8486_v53  ;;  %v8511_v42 = vld [vmem:[%s11117_s19 + $0x1f8] ss:$28 sps:$4 sm:$0xff]   ;;  %v8529_v53 = vld [vmem:[%s11117_s19 + $0x268] ss:$28 sps:$4 sm:$0xff]  }
 0x859   : > { %v4297_v47 = vpack.c.bf16 %v4281_v44, %v4280_v43 }
 0x85a   : > { %v4296_v48 = vpack.c.bf16 %v4279_v46, %v4278_v45  ;;  %v8522_v45 = vld [vmem:[%s11117_s19 + $0x234] ss:$28 sps:$4 sm:$0xff]  }
 0x85b   : > { %5721 = vmatpush1.bf16.msra.mxu0 %v8484_v52  ;;  %v8534_v52 = vld [vmem:[%s11117_s19 + $0x15c] ss:$28 sps:$4 sm:$0xff]  }
 0x85c   : > { %7936 = vmatprep.mubr.bf16.mxu1 %v4296_v48  ;;  %5722 = vmatprep.subr.bf16.mxu0 %v8489_v54  ;;  %v8540_v54 = vld [vmem:[%s11117_s19 + $0x2a4] ss:$28 sps:$4 sm:$0xff]  }
 0x85d   : > { %7937 = vmatmul.mubr.bf16.gmra.mrb[252].mxu1 %v4297_v47  ;;  %v8523_v47 = vld [vmem:[%s11117_s19 + $0xe8] ss:$28 sps:$4 sm:$0xff]  }
 0x85e   : > { %4718 = vmatprep.mubr.bf16.mxu1 %v8647_v19 }
 0x85f   : > { %5723 = vmatpush1.bf16.msra.mxu0 %v8487_v55  ;;  %v8532_v55 = vld [vmem:[%s11117_s19 + $0x158] ss:$28 sps:$4 sm:$0xff]  }
 0x860   : > { %5724 = vmatprep.subr.bf16.mxu0 %v8492_v63 }
 0x863   : > { %5725 = vmatpush1.bf16.msra.mxu0 %v8490_v62 }
 0x864   : > { %5726 = vmatprep.subr.bf16.mxu0 %v8495_v2 }
 0x867   : > { %5727 = vmatpush1.bf16.msra.mxu0 %v8493_v6 }
 0x868   : > { %5728 = vmatprep.subr.bf16.mxu0 %v8498_v9 }
 0x86b   : > { %5729 = vmatpush1.bf16.msra.mxu0 %v8496_v15  ;;  %v8546_v15 = vld [vmem:[%s11117_s19 + $0x204] ss:$28 sps:$4 sm:$0xff]  }
 0x86c   : > { %5730 = vmatprep.subr.bf16.mxu0 %v8501_v16  ;;  %v8556_v16 = vld [vmem:[%s11117_s19 + $0x310] ss:$28 sps:$4 sm:$0xff]  }
 0x86f   : > { %5731 = vmatpush1.bf16.msra.mxu0 %v8499_v22  ;;  %v8550_v22 = vld [vmem:[%s11117_s19 + $0x238] ss:$28 sps:$4 sm:$0xff]  }
 0x870   : > { %5732 = vmatprep.subr.bf16.mxu0 %v8504_v27 }
 0x873   : > { %5733 = vmatpush1.bf16.msra.mxu0 %v8502_v31 }
 0x874   : > { %5734 = vmatprep.subr.bf16.mxu0 %v8513_v26 }
 0x877   : > { %5735 = vmatpush1.bf16.msra.mxu0 %v8511_v42 }
 0x878   : > { %5736 = vmatprep.subr.bf16.mxu0 %v8522_v45 }
 0x87b   : > { %5737 = vmatpush1.bf16.msra.mxu0 %v8520_v50 }
 0x87c   : > { %5738 = vmatprep.subr.bf16.mxu0 %v8531_v40 }
 0x87f   : > { %5739 = vmatpush1.bf16.msra.mxu0 %v8529_v53 }
 0x880   : > { %5740 = vmatprep.subr.bf16.mxu0 %v8540_v54 }
 0x8c0   : > { %v7910_v57 = vpop.f32.mrb[224].mxu1 }
 0x8c1   : > { %v4412_v58 = vadd.f32 %v7910_v57, %v9923_v56  ;;  %v4403_v59 = vpop.f32.mrb[225].mxu1 }
 0x8c2   : > { %v4404_v60 = vadd.f32 %v9923_v56, %v4403_v59  ;;  %v7911_v61 = vpop.f32.mrb[226].mxu1 }
 0x8c3   : > { %v4415_v0 = vadd.f32 %v7911_v61, %v9923_v56  ;;  %v4406_v1 = vpop.f32.mrb[227].mxu1  ;;  %v4532_v4 = vmax.f32 %v4412_v58, 0.0  ;;  %v8537_v58 = vld [vmem:[%s11117_s19 + $0x194] ss:$28 sps:$4 sm:$0xff]   ;;  %v8538_v61 = vld [vmem:[%s11117_s19 + $0x2a0] ss:$28 sps:$4 sm:$0xff]  }
 0x8c4   : > { %v4407_v3 = vadd.f32 %v9923_v56, %v4406_v1  ;;  %v4530_v7 = vmax.f32 %v4404_v60, 0.0  ;;  %5741 = vmatpush1.bf16.msra.mxu0 %v8538_v61 }
 0x8c5   : > { %v4533_v5 = vmax.f32 %v4415_v0, 0.0  ;;  %v8549_v0 = vld [vmem:[%s11117_s19 + $0x2dc] ss:$28 sps:$4 sm:$0xff]  }
 0x8c6   : > { %v4531_v8 = vmax.f32 %v4407_v3, 0.0  ;;  %v8535_v3 = vld [vmem:[%s11117_s19 + $0x190] ss:$28 sps:$4 sm:$0xff]   ;;  %5742 = vmatprep.subr.bf16.mxu0 %v8549_v0 }
 0x8c7   : > { %v4563_v10 = vpack.c.bf16 %v4533_v5, %v4532_v4  ;;  %v8543_v5 = vld [vmem:[%s11117_s19 + $0x1cc] ss:$28 sps:$4 sm:$0xff]  }
 0x8c8   : > { %v4562_v13 = vpack.c.bf16 %v4531_v8, %v4530_v7  ;;  %v8547_v8 = vld [vmem:[%s11117_s19 + $0x2d8] ss:$28 sps:$4 sm:$0xff]  }
 0x8c9   : > { %5743 = vmatpush1.bf16.msra.mxu0 %v8547_v8 }
 0x8ca   : > { %4719 = vmatmul.mubr.bf16.vlgmr.msra.gmra.mrb[0].mxu1 %v4562_v13  ;;  %v8541_v13 = vld [vmem:[%s11117_s19 + $0x1c8] ss:$28 sps:$4 sm:$0xff]  }
 0x8cb   : > { %4728 = vmatprep.mubr.bf16.mxu1 %v8647_v19  ;;  %5910 = vmatpush1.bf16.msra.mxu1 %v8505_v11  ;;  %v8558_v11 = vld [vmem:[%s11117_s19 + $0x314] ss:$28 sps:$4 sm:$0xff]  }
 0x8cc   : > { %5911 = vmatprep.subr.bf16.mxu1 %v8510_v14  ;;  %5744 = vmatprep.subr.bf16.mxu0 %v8558_v11 }
 0x8cd   : > { %5745 = vmatpush1.bf16.msra.mxu0 %v8556_v16  ;;  %v8567_v16 = vld [vmem:[%s11117_s19 + $0x34c] ss:$28 sps:$4 sm:$0xff]  }
 0x8ce   : > { %5746 = vmatprep.subr.bf16.mxu0 %v8567_v16 }
 0x8cf   : > { %5912 = vmatpush1.bf16.msra.mxu1 %v8508_v17  ;;  %v8544_v17 = vld [vmem:[%s11117_s19 + $0x200] ss:$28 sps:$4 sm:$0xff]  }
 0x8d0   : > { %v7914_v28 = vpop.f32.mrb[228].mxu1  ;;  %5913 = vmatprep.subr.bf16.mxu1 %v8516_v20  ;;  %v8552_v20 = vld [vmem:[%s11117_s19 + $0x23c] ss:$28 sps:$4 sm:$0xff]  }
 0x8d1   : > { %v4428_v25 = vadd.f32 %v7914_v28, %v9923_v56  ;;  %v4419_v30 = vpop.f32.mrb[229].mxu1 }
 0x8d2   : > { %v4420_v33 = vadd.f32 %v9923_v56, %v4419_v30  ;;  %v7915_v34 = vpop.f32.mrb[230].mxu1  ;;  %4729 = vmatmul.mubr.bf16.gmra.mrb[4].mxu1 %v4563_v10 }
 0x8d3   : > { %v4431_v32 = vadd.f32 %v7915_v34, %v9923_v56  ;;  %v4422_v37 = vpop.f32.mrb[231].mxu1  ;;  %4738 = vmatprep.mubr.bf16.mxu1 %v8647_v19  ;;  %5914 = vmatpush1.bf16.msra.mxu1 %v8514_v24  ;;  %v4536_v41 = vmax.f32 %v4428_v25, 0.0  ;;  %v8555_v24 = vld [vmem:[%s11117_s19 + $0x274] ss:$28 sps:$4 sm:$0xff]  }
 0x8d4   : > { %v4423_v39 = vadd.f32 %v9923_v56, %v4422_v37  ;;  %5915 = vmatprep.subr.bf16.mxu1 %v8519_v29  ;;  %v4534_v43 = vmax.f32 %v4420_v33, 0.0  ;;  %v8553_v34 = vld [vmem:[%s11117_s19 + $0x270] ss:$28 sps:$4 sm:$0xff]  }
 0x8d5   : > { %v4537_v38 = vmax.f32 %v4431_v32, 0.0  ;;  %v8561_v32 = vld [vmem:[%s11117_s19 + $0x2ac] ss:$28 sps:$4 sm:$0xff]  }
 0x8d6   : > { %v4535_v44 = vmax.f32 %v4423_v39, 0.0 }
 0x8d7   : > { %v4565_v46 = vpack.c.bf16 %v4537_v38, %v4536_v41  ;;  %5916 = vmatpush1.bf16.msra.mxu1 %v8517_v35  ;;  %v8559_v38 = vld [vmem:[%s11117_s19 + $0x2a8] ss:$28 sps:$4 sm:$0xff]  }
 0x8d8   : > { %v4564_v48 = vpack.c.bf16 %v4535_v44, %v4534_v43  ;;  %5917 = vmatprep.subr.bf16.mxu1 %v8525_v36  ;;  %v8564_v43 = vld [vmem:[%s11117_s19 + $0x2e4] ss:$28 sps:$4 sm:$0xff]  }
 0x8d9   : > { %v8562_v44 = vld [vmem:[%s11117_s19 + $0x2e0] ss:$28 sps:$4 sm:$0xff]  }
 0x8da   : > { %4739 = vmatmul.mubr.bf16.gmra.mrb[8].mxu1 %v4564_v48 }
 0x8db   : > { %4748 = vmatprep.mubr.bf16.mxu1 %v8647_v19  ;;  %5918 = vmatpush1.bf16.msra.mxu1 %v8523_v47 }
 0x8dc   : > { %5919 = vmatprep.subr.bf16.mxu1 %v8528_v49 }
 0x8df   : > { %5920 = vmatpush1.bf16.msra.mxu1 %v8526_v51 }
 0x8e0   : > { %v7918_v57 = vpop.f32.mrb[232].mxu1  ;;  %5921 = vmatprep.subr.bf16.mxu1 %v8534_v52 }
 0x8e1   : > { %v4444_v59 = vadd.f32 %v7918_v57, %v9923_v56  ;;  %v4435_v60 = vpop.f32.mrb[233].mxu1 }
 0x8e2   : > { %v4436_v62 = vadd.f32 %v9923_v56, %v4435_v60  ;;  %v7919_v63 = vpop.f32.mrb[234].mxu1  ;;  %4749 = vmatmul.mubr.bf16.gmra.mrb[12].mxu1 %v4565_v46 }
 0x8e3   : > { %v4447_v1 = vadd.f32 %v7919_v63, %v9923_v56  ;;  %v4438_v2 = vpop.f32.mrb[235].mxu1  ;;  %4758 = vmatprep.mubr.bf16.mxu1 %v8647_v19  ;;  %5922 = vmatpush1.bf16.msra.mxu1 %v8532_v55  ;;  %v4540_v6 = vmax.f32 %v4444_v59, 0.0 }
 0x8e4   : > { %v4439_v4 = vadd.f32 %v9923_v56, %v4438_v2  ;;  %5923 = vmatprep.subr.bf16.mxu1 %v8537_v58  ;;  %v4538_v9 = vmax.f32 %v4436_v62, 0.0 }
 0x8e5   : > { %v4541_v7 = vmax.f32 %v4447_v1, 0.0 }
 0x8e6   : > { %v4539_v10 = vmax.f32 %v4439_v4, 0.0 }
 0x8e7   : > { %v4567_v12 = vpack.c.bf16 %v4541_v7, %v4540_v6  ;;  %5924 = vmatpush1.bf16.msra.mxu1 %v8535_v3 }
 0x8e8   : > { %v4566_v14 = vpack.c.bf16 %v4539_v10, %v4538_v9  ;;  %5925 = vmatprep.subr.bf16.mxu1 %v8543_v5  ;;  %v8570_v9 = vld [vmem:[%s11117_s19 + $0x31c] ss:$28 sps:$4 sm:$0xff]  }
 0x8e9   : > { %v8568_v10 = vld [vmem:[%s11117_s19 + $0x318] ss:$28 sps:$4 sm:$0xff]  }
 0x8ea   : > { %4759 = vmatmul.mubr.bf16.gmra.mrb[16].mxu1 %v4566_v14 }
 0x8eb   : > { %4768 = vmatprep.mubr.bf16.mxu1 %v8647_v19  ;;  %5926 = vmatpush1.bf16.msra.mxu1 %v8541_v13 }
 0x8ec   : > { %5927 = vmatprep.subr.bf16.mxu1 %v8546_v15 }
 0x8ef   : > { %5928 = vmatpush1.bf16.msra.mxu1 %v8544_v17  ;;  %v8573_v17 = vld [vmem:[%s11117_s19 + $0x354] ss:$28 sps:$4 sm:$0xff]  }
 0x8f0   : > { %v7922_v27 = vpop.f32.mrb[236].mxu1  ;;  %5929 = vmatprep.subr.bf16.mxu1 %v8552_v20 }
 0x8f1   : > { %v4460_v28 = vadd.f32 %v7922_v27, %v9923_v56  ;;  %v4451_v29 = vpop.f32.mrb[237].mxu1  ;;  %v8565_v27 = vld [vmem:[%s11117_s19 + $0x348] ss:$28 sps:$4 sm:$0xff]  }
 0x8f2   : > { %v4452_v25 = vadd.f32 %v9923_v56, %v4451_v29  ;;  %v7923_v30 = vpop.f32.mrb[238].mxu1  ;;  %4769 = vmatmul.mubr.bf16.gmra.mrb[20].mxu1 %v4567_v12  ;;  %5747 = vmatpush1.bf16.msra.mxu0 %v8565_v27 }
 0x8f3   : > { %v4463_v31 = vadd.f32 %v7923_v30, %v9923_v56  ;;  %v4454_v33 = vpop.f32.mrb[239].mxu1  ;;  %4778 = vmatprep.mubr.bf16.mxu1 %v8647_v19  ;;  %5930 = vmatpush1.bf16.msra.mxu1 %v8550_v22  ;;  %v4544_v37 = vmax.f32 %v4460_v28, 0.0 }
 0x8f4   : > { %v4455_v26 = vadd.f32 %v9923_v56, %v4454_v33  ;;  %5931 = vmatprep.subr.bf16.mxu1 %v8555_v24  ;;  %v4542_v39 = vmax.f32 %v4452_v25, 0.0  ;;  %v8571_v24 = vld [vmem:[%s11117_s19 + $0x350] ss:$28 sps:$4 sm:$0xff]  }
 0x8f5   : > { %v4545_v35 = vmax.f32 %v4463_v31, 0.0 }
 0x8f6   : > { %v4543_v36 = vmax.f32 %v4455_v26, 0.0  ;;  %v8576_v26 = vld [vmem:[%s11117_s19 + $0x14] ss:$28 sps:$4 sm:$0xff]  }
 0x8f7   : > { %v4569_v41 = vpack.c.bf16 %v4545_v35, %v4544_v37  ;;  %5932 = vmatpush1.bf16.msra.mxu1 %v8553_v34  ;;  %6102 = vmatprep.subr.bf16.mxu0 %v8576_v26  ;;  %v10229_v26 = vld [vmem:[%s11117_s19 + $0x280] ss:$28 sps:$4 sm:$0xff]  }
 0x8f8   : > { %v4568_v42 = vpack.c.bf16 %v4543_v36, %v4542_v39  ;;  %5933 = vmatprep.subr.bf16.mxu1 %v8561_v32 }
 0x8fa   : > { %4779 = vmatmul.mubr.bf16.gmra.mrb[24].mxu1 %v4568_v42 }
 0x8fb   : > { %4788 = vmatprep.mubr.bf16.mxu1 %v8647_v19  ;;  %5934 = vmatpush1.bf16.msra.mxu1 %v8559_v38 }
 0x8fc   : > { %5935 = vmatprep.subr.bf16.mxu1 %v8564_v43 }
 0x8ff   : > { %5936 = vmatpush1.bf16.msra.mxu1 %v8562_v44 }
 0x900   : > { %v7926_v45 = vpop.f32.mrb[240].mxu1  ;;  %5937 = vmatprep.subr.bf16.mxu1 %v8570_v9 }
 0x901   : > { %v4476_v46 = vadd.f32 %v7926_v45, %v9923_v56  ;;  %v4467_v47 = vpop.f32.mrb[241].mxu1 }
 0x902   : > { %v4468_v48 = vadd.f32 %v9923_v56, %v4467_v47  ;;  %v7927_v49 = vpop.f32.mrb[242].mxu1  ;;  %4789 = vmatmul.mubr.bf16.gmra.mrb[28].mxu1 %v4569_v41 }
 0x903   : > { %v4479_v50 = vadd.f32 %v7927_v49, %v9923_v56  ;;  %v4470_v40 = vpop.f32.mrb[243].mxu1  ;;  %4798 = vmatprep.mubr.bf16.mxu1 %v8647_v19  ;;  %v4548_v52 = vmax.f32 %v4476_v46, 0.0  ;;  %5938 = vmatpush1.bf16.msra.mxu1 %v8568_v10  ;;  %v10146_v49 = vld [vmem:[%s11117_s19 + $0x1d8] ss:$28 sps:$4 sm:$0xff]  }
 0x904   : > { %v4471_v51 = vadd.f32 %v9923_v56, %v4470_v40  ;;  %v4546_v54 = vmax.f32 %v4468_v48, 0.0  ;;  %5939 = vmatprep.subr.bf16.mxu1 %v8573_v17  ;;  %v8582_v17 = vld [vmem:[%s11117_s19 + $0x84] ss:$28 sps:$4 sm:$0xff]  }
 0x905   : > { %v4549_v53 = vmax.f32 %v4479_v50, 0.0 }
 0x906   : > { %v4547_v55 = vmax.f32 %v4471_v51, 0.0 }
 0x907   : > { %v4571_v57 = vpack.c.bf16 %v4549_v53, %v4548_v52  ;;  %5940 = vmatpush1.bf16.msra.mxu1 %v8571_v24 }
 0x908   : > { %v4570_v58 = vpack.c.bf16 %v4547_v55, %v4546_v54  ;;  %7940 = vmatprep.subr.bf16.mxu1 %v10146_v49 }
 0x90a   : > { %4799 = vmatmul.mubr.bf16.gmra.mrb[32].mxu1 %v4570_v58 }
 0x90b   : > { %4808 = vmatprep.mubr.bf16.mxu1 %v8647_v19 }
 0x910   : > { %v7930_v59 = vpop.f32.mrb[244].mxu1 }
 0x911   : > { %v4492_v60 = vadd.f32 %v7930_v59, %v9923_v56  ;;  %v4483_v61 = vpop.f32.mrb[245].mxu1 }
 0x912   : > { %v4484_v62 = vadd.f32 %v9923_v56, %v4483_v61  ;;  %v7931_v63 = vpop.f32.mrb[246].mxu1  ;;  %4809 = vmatmul.mubr.bf16.gmra.mrb[36].mxu1 %v4571_v57 }
 0x913   : > { %v4495_v0 = vadd.f32 %v7931_v63, %v9923_v56  ;;  %v4486_v1 = vpop.f32.mrb[247].mxu1  ;;  %4818 = vmatprep.mubr.bf16.mxu1 %v8647_v19  ;;  %v4552_v3 = vmax.f32 %v4492_v60, 0.0 }
 0x914   : > { %v4487_v2 = vadd.f32 %v9923_v56, %v4486_v1  ;;  %v4550_v5 = vmax.f32 %v4484_v62, 0.0 }
 0x915   : > { %v4553_v4 = vmax.f32 %v4495_v0, 0.0 }
 0x916   : > { %v4551_v6 = vmax.f32 %v4487_v2, 0.0  ;;  %v8574_v2 = vld [vmem:[%s11117_s19 + $0x10] ss:$28 sps:$4 sm:$0xff]  }
 0x917   : > { %v4573_v7 = vpack.c.bf16 %v4553_v4, %v4552_v3  ;;  %v10172_v3 = vld [vmem:[%s11117_s19 + $0x18] ss:$28 sps:$4 sm:$0xff]  }
 0x918   : > { %v4572_v8 = vpack.c.bf16 %v4551_v6, %v4550_v5  ;;  %v8579_v6 = vld [vmem:[%s11117_s19 + $0x4c] ss:$28 sps:$4 sm:$0xff]  }
 0x91a   : > { %4819 = vmatmul.mubr.bf16.gmra.mrb[40].mxu1 %v4572_v8 }
 0x91b   : > { %4828 = vmatprep.mubr.bf16.mxu1 %v8647_v19 }
 0x920   : > { %v7934_v11 = vpop.f32.mrb[248].mxu1 }
 0x921   : > { %v4508_v12 = vadd.f32 %v7934_v11, %v9923_v56  ;;  %v4499_v13 = vpop.f32.mrb[249].mxu1 }
 0x922   : > { %v4500_v14 = vadd.f32 %v9923_v56, %v4499_v13  ;;  %v7935_v15 = vpop.f32.mrb[250].mxu1  ;;  %4829 = vmatmul.mubr.bf16.gmra.mrb[44].mxu1 %v4573_v7  ;;  %v10181_v7 = vld [vmem:[%s11117_s19 + $0x210] ss:$28 sps:$4 sm:$0xff]   ;;  %v8577_v13 = vld [vmem:[%s11117_s19 + $0x48] ss:$28 sps:$4 sm:$0xff]  }
 0x923   : > { %v4511_v20 = vadd.f32 %v7935_v15, %v9923_v56  ;;  %v4502_v22 = vpop.f32.mrb[251].mxu1  ;;  %4838 = vmatprep.mubr.bf16.mxu1 %v8647_v19  ;;  %v4556_v29 = vmax.f32 %v4508_v12, 0.0 }
 0x924   : > { %v4503_v28 = vadd.f32 %v9923_v56, %v4502_v22  ;;  %v4554_v30 = vmax.f32 %v4500_v14, 0.0  ;;  %v10197_v14 = vld [vmem:[%s11117_s19 + $0x50] ss:$28 sps:$4 sm:$0xff]  }
 0x925   : > { %v4557_v25 = vmax.f32 %v4511_v20, 0.0  ;;  %v10206_v20 = vld [vmem:[%s11117_s19 + $0x248] ss:$28 sps:$4 sm:$0xff]  }
 0x926   : > { %v4555_v31 = vmax.f32 %v4503_v28, 0.0 }
 0x927   : > { %v4575_v33 = vpack.c.bf16 %v4557_v25, %v4556_v29  ;;  %v8580_v25 = vld [vmem:[%s11117_s19 + $0x80] ss:$28 sps:$4 sm:$0xff]  }
 0x928   : > { %v4574_v34 = vpack.c.bf16 %v4555_v31, %v4554_v30  ;;  %v10219_v30 = vld [vmem:[%s11117_s19 + $0x88] ss:$28 sps:$4 sm:$0xff]  }
 0x92a   : > { %4839 = vmatmul.mubr.bf16.gmra.mrb[48].mxu1 %v4574_v34  ;;  %v8585_v34 = vld [vmem:[%s11117_s19 + $0xbc] ss:$28 sps:$4 sm:$0xff]  }
 0x92b   : > { %4848 = vmatprep.mubr.bf16.mxu1 %v8647_v19 }
 0x930   : > { %v7938_v32 = vpop.f32.mrb[252].mxu1 }
 0x931   : > { %v4524_v37 = vadd.f32 %v7938_v32, %v9923_v56  ;;  %v4515_v35 = vpop.f32.mrb[253].mxu1 }
 0x932   : > { %v4516_v39 = vadd.f32 %v9923_v56, %v4515_v35  ;;  %v7939_v36 = vpop.f32.mrb[254].mxu1  ;;  %4849 = vmatmul.mubr.bf16.gmra.mrb[52].mxu1 %v4575_v33 }
 0x933   : > { %v4527_v41 = vadd.f32 %v7939_v36, %v9923_v56  ;;  %v4518_v38 = vpop.f32.mrb[255].mxu1  ;;  %4858 = vmatprep.mubr.bf16.mxu1 %v8647_v19  ;;  %v4560_v43 = vmax.f32 %v4524_v37, 0.0 }
 0x934   : > { %v4519_v42 = vadd.f32 %v9923_v56, %v4518_v38  ;;  %v4558_v45 = vmax.f32 %v4516_v39, 0.0  ;;  %v4594_v56 = vld [vmem:[%s11116_s18] sm:$0x3] }
 0x935   : > { %v4561_v44 = vmax.f32 %v4527_v41, 0.0  ;;  %v10153_v50 = vrot.slane %v4594_v56, %v9406_v21  ;;  %v10156_v40 = vrot.slane %v4594_v56, %v9412_v23  ;;  %v8583_v41 = vld [vmem:[%s11117_s19 + $0xb8] ss:$28 sps:$4 sm:$0xff]   ;;  %v10245_v38 = vld [vmem:[%s11117_s19 + $0xc0] ss:$28 sps:$4 sm:$0xff]  }
 0x936   : > { %v4559_v46 = vmax.f32 %v4519_v42, 0.0 }
 0x937   : > { %v4577_v47 = vpack.c.bf16 %v4561_v44, %v4560_v43  ;;  %v8588_v44 = vld [vmem:[%s11117_s19 + $0xf4] ss:$28 sps:$4 sm:$0xff]  }
 0x938   : > { %v4576_v48 = vpack.c.bf16 %v4559_v46, %v4558_v45  ;;  %v10254_v45 = vld [vmem:[%s11117_s19 + $0x2b8] ss:$28 sps:$4 sm:$0xff]  }
 0x93a   : > { %4859 = vmatmul.mubr.bf16.gmra.mrb[56].mxu1 %v4576_v48 }
 0x93b   : > { %4868 = vmatprep.mubr.bf16.mxu1 %v8647_v19 }
 0x942   : > { %4869 = vmatmul.mubr.bf16.gmra.mrb[60].mxu1 %v4577_v47 }
 0x99d   : > { %v4720_v51 = vpop.f32.mrb[0].mxu1 }
 0x99e   : > { %v4721_v19 = vadd.f32 %v4720_v51, %v10153_v50  ;;  %v4722_v52 = vpop.f32.mrb[1].mxu1 }
 0x99f   : > { %v4723_v53 = vadd.f32 %v4722_v52, %v10156_v40  ;;  %v4724_v54 = vpop.f32.mrb[2].mxu1  ;;  %v10267_v52 = vld [vmem:[%s11117_s19 + $0xf8] ss:$28 sps:$4 sm:$0xff]  }
 0x9a0   : > { %v4725_v55 = vadd.f32 %v4724_v54, %v10153_v50  ;;  %v4726_v57 = vpop.f32.mrb[3].mxu1  ;;  %v4879_v59 = vmax.f32 %v4721_v19, 0.0  ;;  %v8586_v19 = vld [vmem:[%s11117_s19 + $0xf0] ss:$28 sps:$4 sm:$0xff]  }
 0x9a1   : > { %v4727_v58 = vadd.f32 %v4726_v57, %v10156_v40  ;;  %v4880_v61 = vmax.f32 %v4723_v53, 0.0  ;;  %v10277_v57 = vld [vmem:[%s11117_s19 + $0x2f0] ss:$28 sps:$4 sm:$0xff]  }
 0x9a2   : > { %v4881_v60 = vmax.f32 %v4725_v55, 0.0  ;;  %v8591_v55 = vld [vmem:[%s11117_s19 + $0x12c] ss:$28 sps:$4 sm:$0xff]  }
 0x9a3   : > { %v4882_v62 = vmax.f32 %v4727_v58, 0.0 }
 0x9a4   : > { %v10162_v63 = vpack.c.bf16 %v4881_v60, %v4879_v59 }
 0x9a5   : > { %v10164_v0 = vpack.c.bf16 %v4882_v62, %v4880_v61  ;;  %v4730_v1 = vpop.f32.mrb[4].mxu1 }
 0x9a6   : > { %v4731_v4 = vadd.f32 %v4730_v1, %v10153_v50  ;;  %v4732_v5 = vpop.f32.mrb[5].mxu1  ;;  %v8589_v1 = vld [vmem:[%s11117_s19 + $0x128] ss:$28 sps:$4 sm:$0xff]  }
 0x9a7   : > { %v4733_v8 = vadd.f32 %v4732_v5, %v10156_v40  ;;  %v4734_v9 = vpop.f32.mrb[6].mxu1  ;;  %5748 = vmatprep.mubr.bf16.mxu0 %v10164_v0  ;;  %5941 = vmatprep.mubr.bf16.mxu1 %v10164_v0 }
 0x9a8   : > { %v4735_v10 = vadd.f32 %v4734_v9, %v10153_v50  ;;  %v4736_v11 = vpop.f32.mrb[7].mxu1  ;;  %5749 = vmatmul.mubr.bf16.vlgmr.msra.gmra.mrb[64].mxu0 %v10162_v63  ;;  %5942 = vmatmul.mubr.bf16.vlgmr.msra.gmra.mrb[64].mxu1 %v10162_v63  ;;  %v4883_v15 = vmax.f32 %v4731_v4, 0.0 }
 0x9a9   : > { %v4737_v12 = vadd.f32 %v4736_v11, %v10156_v40  ;;  %6103 = vmatpush1.bf16.msra.mxu0 %v8574_v2  ;;  %7948 = vmatpush3.bf16.msra.mxu1 %v10172_v3  ;;  %v4884_v22 = vmax.f32 %v4733_v8, 0.0  ;;  %v10293_v2 = vld [vmem:[%s11117_s19 + $0x130] ss:$28 sps:$4 sm:$0xff]   ;;  %v10302_v8 = vld [vmem:[%s11117_s19 + $0x328] ss:$28 sps:$4 sm:$0xff]  }
 0x9aa   : > { %v4885_v16 = vmax.f32 %v4735_v10, 0.0  ;;  %6104 = vmatprep.subr.bf16.mxu0 %v8579_v6  ;;  %7941 = vmatprep.subr.bf16.mxu1 %v10181_v7  ;;  %v8594_v6 = vld [vmem:[%s11117_s19 + $0x164] ss:$28 sps:$4 sm:$0xff]  }
 0x9ab   : > { %v4886_v27 = vmax.f32 %v4737_v12, 0.0 }
 0x9ac   : > { %v10208_v24 = vpack.c.bf16 %v4885_v16, %v4883_v15  ;;  %v8592_v15 = vld [vmem:[%s11117_s19 + $0x160] ss:$28 sps:$4 sm:$0xff]   ;;  %v10315_v16 = vld [vmem:[%s11117_s19 + $0x168] ss:$28 sps:$4 sm:$0xff]  }
 0x9ad   : > { %v10210_v28 = vpack.c.bf16 %v4886_v27, %v4884_v22  ;;  %v4740_v29 = vpop.f32.mrb[8].mxu1  ;;  %6105 = vmatpush1.bf16.msra.mxu0 %v8577_v13  ;;  %7949 = vmatpush3.bf16.msra.mxu1 %v10197_v14  ;;  %v8597_v27 = vld [vmem:[%s11117_s19 + $0x19c] ss:$28 sps:$4 sm:$0xff]  }
 0x9ae   : > { %v4741_v31 = vadd.f32 %v4740_v29, %v10153_v50  ;;  %v4742_v33 = vpop.f32.mrb[9].mxu1  ;;  %6106 = vmatprep.subr.bf16.mxu0 %v8582_v17  ;;  %7942 = vmatprep.subr.bf16.mxu1 %v10206_v20  ;;  %v10325_v29 = vld [vmem:[%s11117_s19 + $0x360] ss:$28 sps:$4 sm:$0xff]  }
 0x9af   : > { %v4743_v32 = vadd.f32 %v4742_v33, %v10156_v40  ;;  %v4744_v37 = vpop.f32.mrb[10].mxu1  ;;  %5758 = vmatprep.mubr.bf16.mxu0 %v10210_v28  ;;  %5951 = vmatprep.mubr.bf16.mxu1 %v10210_v28 }
 0x9b0   : > { %v4745_v35 = vadd.f32 %v4744_v37, %v10153_v50  ;;  %v4746_v39 = vpop.f32.mrb[11].mxu1  ;;  %5759 = vmatmul.mubr.bf16.gmra.mrb[68].mxu0 %v10208_v24  ;;  %5952 = vmatmul.mubr.bf16.gmra.mrb[68].mxu1 %v10208_v24  ;;  %v4887_v42 = vmax.f32 %v4741_v31, 0.0  ;;  %v8595_v37 = vld [vmem:[%s11117_s19 + $0x198] ss:$28 sps:$4 sm:$0xff]  }
 0x9b1   : > { %v4747_v36 = vadd.f32 %v4746_v39, %v10156_v40  ;;  %6107 = vmatpush1.bf16.msra.mxu0 %v8580_v25  ;;  %7950 = vmatpush3.bf16.msra.mxu1 %v10219_v30  ;;  %v4888_v46 = vmax.f32 %v4743_v32, 0.0 }
 0x9b2   : > { %v4889_v43 = vmax.f32 %v4745_v35, 0.0  ;;  %6108 = vmatprep.subr.bf16.mxu0 %v8585_v34  ;;  %7943 = vmatprep.subr.bf16.mxu1 %v10229_v26  ;;  %v10341_v35 = vld [vmem:[%s11117_s19 + $0x1a0] ss:$28 sps:$4 sm:$0xff]  }
 0x9b3   : > { %v4890_v47 = vmax.f32 %v4747_v36, 0.0 }
 0x9b4   : > { %v10256_v48 = vpack.c.bf16 %v4889_v43, %v4887_v42 }
 0x9b5   : > { %v10258_v56 = vpack.c.bf16 %v4890_v47, %v4888_v46  ;;  %v4750_v51 = vpop.f32.mrb[12].mxu1  ;;  %6109 = vmatpush1.bf16.msra.mxu0 %v8583_v41  ;;  %7951 = vmatpush3.bf16.msra.mxu1 %v10245_v38  ;;  %v8600_v41 = vld [vmem:[%s11117_s19 + $0x1d4] ss:$28 sps:$4 sm:$0xff]  }
 0x9b6   : > { %v4751_v53 = vadd.f32 %v4750_v51, %v10153_v50  ;;  %v4752_v54 = vpop.f32.mrb[13].mxu1  ;;  %6110 = vmatprep.subr.bf16.mxu0 %v8588_v44  ;;  %7944 = vmatprep.subr.bf16.mxu1 %v10254_v45  ;;  %v8598_v51 = vld [vmem:[%s11117_s19 + $0x1d0] ss:$28 sps:$4 sm:$0xff]  }
 0x9b7   : > { %v4753_v58 = vadd.f32 %v4752_v54, %v10156_v40  ;;  %v4754_v59 = vpop.f32.mrb[14].mxu1  ;;  %5768 = vmatprep.mubr.bf16.mxu0 %v10258_v56  ;;  %5961 = vmatprep.mubr.bf16.mxu1 %v10258_v56  ;;  %v8603_v54 = vld [vmem:[%s11117_s19 + $0x20c] ss:$28 sps:$4 sm:$0xff]  }
 0x9b8   : > { %v4755_v60 = vadd.f32 %v4754_v59, %v10153_v50  ;;  %v4756_v61 = vpop.f32.mrb[15].mxu1  ;;  %5769 = vmatmul.mubr.bf16.gmra.mrb[72].mxu0 %v10256_v48  ;;  %5962 = vmatmul.mubr.bf16.gmra.mrb[72].mxu1 %v10256_v48  ;;  %v4891_v4 = vmax.f32 %v4751_v53, 0.0 }
 0x9b9   : > { %v4757_v62 = vadd.f32 %v4756_v61, %v10156_v40  ;;  %6111 = vmatpush1.bf16.msra.mxu0 %v8586_v19  ;;  %7952 = vmatpush3.bf16.msra.mxu1 %v10267_v52  ;;  %v4892_v9 = vmax.f32 %v4753_v58, 0.0 }
 0x9ba   : > { %v4893_v5 = vmax.f32 %v4755_v60, 0.0  ;;  %6112 = vmatprep.subr.bf16.mxu0 %v8591_v55  ;;  %7945 = vmatprep.subr.bf16.mxu1 %v10277_v57 }
 0x9bb   : > { %v4894_v10 = vmax.f32 %v4757_v62, 0.0  ;;  %v8601_v62 = vld [vmem:[%s11117_s19 + $0x208] ss:$28 sps:$4 sm:$0xff]  }
 0x9bc   : > { %v10304_v11 = vpack.c.bf16 %v4893_v5, %v4891_v4  ;;  %v8606_v5 = vld [vmem:[%s11117_s19 + $0x244] ss:$28 sps:$4 sm:$0xff]  }
 0x9bd   : > { %v10306_v12 = vpack.c.bf16 %v4894_v10, %v4892_v9  ;;  %v4760_v13 = vpop.f32.mrb[16].mxu1  ;;  %6113 = vmatpush1.bf16.msra.mxu0 %v8589_v1  ;;  %7953 = vmatpush3.bf16.msra.mxu1 %v10293_v2 }
 0x9be   : > { %v4761_v17 = vadd.f32 %v4760_v13, %v10153_v50  ;;  %v4762_v22 = vpop.f32.mrb[17].mxu1  ;;  %6114 = vmatprep.subr.bf16.mxu0 %v8594_v6  ;;  %7946 = vmatprep.subr.bf16.mxu1 %v10302_v8 }
 0x9bf   : > { %v4763_v25 = vadd.f32 %v4762_v22, %v10156_v40  ;;  %v4764_v31 = vpop.f32.mrb[18].mxu1  ;;  %5778 = vmatprep.mubr.bf16.mxu0 %v10306_v12  ;;  %5971 = vmatprep.mubr.bf16.mxu1 %v10306_v12 }
 0x9c0   : > { %v4765_v33 = vadd.f32 %v4764_v31, %v10153_v50  ;;  %v4766_v34 = vpop.f32.mrb[19].mxu1  ;;  %5779 = vmatmul.mubr.bf16.gmra.mrb[76].mxu0 %v10304_v11  ;;  %5972 = vmatmul.mubr.bf16.gmra.mrb[76].mxu1 %v10304_v11  ;;  %v4895_v39 = vmax.f32 %v4761_v17, 0.0  ;;  %v8604_v17 = vld [vmem:[%s11117_s19 + $0x240] ss:$28 sps:$4 sm:$0xff]  }
 0x9c1   : > { %v4767_v32 = vadd.f32 %v4766_v34, %v10156_v40  ;;  %6115 = vmatpush1.bf16.msra.mxu0 %v8592_v15  ;;  %7954 = vmatpush3.bf16.msra.mxu1 %v10315_v16  ;;  %v4896_v42 = vmax.f32 %v4763_v25, 0.0  ;;  %v8609_v25 = vld [vmem:[%s11117_s19 + $0x27c] ss:$28 sps:$4 sm:$0xff]  }
 0x9c2   : > { %v4897_v36 = vmax.f32 %v4765_v33, 0.0  ;;  %6116 = vmatprep.subr.bf16.mxu0 %v8597_v27  ;;  %7947 = vmatprep.subr.bf16.mxu1 %v10325_v29 }
 0x9c3   : > { %v4898_v43 = vmax.f32 %v4767_v32, 0.0 }
 0x9c4   : > { %v10347_v44 = vpack.c.bf16 %v4897_v36, %v4895_v39  ;;  %v8607_v39 = vld [vmem:[%s11117_s19 + $0x278] ss:$28 sps:$4 sm:$0xff]  }
 0x9c5   : > { %v10349_v46 = vpack.c.bf16 %v4898_v43, %v4896_v42  ;;  %v4770_v47 = vpop.f32.mrb[20].mxu1  ;;  %6117 = vmatpush1.bf16.msra.mxu0 %v8595_v37  ;;  %7955 = vmatpush3.bf16.msra.mxu1 %v10341_v35  ;;  %v8612_v42 = vld [vmem:[%s11117_s19 + $0x2b4] ss:$28 sps:$4 sm:$0xff]  }
 0x9c6   : > { %v4771_v19 = vadd.f32 %v4770_v47, %v10153_v50  ;;  %v4772_v53 = vpop.f32.mrb[21].mxu1  ;;  %6118 = vmatprep.subr.bf16.mxu0 %v8600_v41 }
 0x9c7   : > { %v4773_v55 = vadd.f32 %v4772_v53, %v10156_v40  ;;  %v4774_v58 = vpop.f32.mrb[22].mxu1  ;;  %5788 = vmatprep.mubr.bf16.mxu0 %v10349_v46  ;;  %5981 = vmatprep.mubr.bf16.mxu1 %v10349_v46 }
 0x9c8   : > { %v4775_v59 = vadd.f32 %v4774_v58, %v10153_v50  ;;  %v4776_v60 = vpop.f32.mrb[23].mxu1  ;;  %5789 = vmatmul.mubr.bf16.gmra.mrb[80].mxu0 %v10347_v44  ;;  %5982 = vmatmul.mubr.bf16.gmra.mrb[80].mxu1 %v10347_v44  ;;  %v4899_v1 = vmax.f32 %v4771_v19, 0.0 }
 0x9c9   : > { %v4777_v61 = vadd.f32 %v4776_v60, %v10156_v40  ;;  %6119 = vmatpush1.bf16.msra.mxu0 %v8598_v51  ;;  %v4900_v6 = vmax.f32 %v4773_v55, 0.0 }
 0x9ca   : > { %v4901_v4 = vmax.f32 %v4775_v59, 0.0  ;;  %6120 = vmatprep.subr.bf16.mxu0 %v8603_v54  ;;  %v8610_v54 = vld [vmem:[%s11117_s19 + $0x2b0] ss:$28 sps:$4 sm:$0xff]  }
 0x9cb   : > { %v4902_v9 = vmax.f32 %v4777_v61, 0.0  ;;  %v8619_v59 = vld [vmem:[%s11117_s19 + $0x2ec] ss:$28 sps:$4 sm:$0xff]  }
 0x9cc   : > { %v10372_v10 = vpack.c.bf16 %v4901_v4, %v4899_v1 }
 0x9cd   : > { %v10374_v13 = vpack.c.bf16 %v4902_v9, %v4900_v6  ;;  %v4780_v15 = vpop.f32.mrb[24].mxu1  ;;  %6121 = vmatpush1.bf16.msra.mxu0 %v8601_v62 }
 0x9ce   : > { %v4781_v22 = vadd.f32 %v4780_v15, %v10153_v50  ;;  %v4782_v27 = vpop.f32.mrb[25].mxu1  ;;  %6122 = vmatprep.subr.bf16.mxu0 %v8606_v5  ;;  %v8617_v5 = vld [vmem:[%s11117_s19 + $0x2e8] ss:$28 sps:$4 sm:$0xff]  }
 0x9cf   : > { %v4783_v31 = vadd.f32 %v4782_v27, %v10156_v40  ;;  %v4784_v33 = vpop.f32.mrb[26].mxu1  ;;  %5798 = vmatprep.mubr.bf16.mxu0 %v10374_v13  ;;  %5991 = vmatprep.mubr.bf16.mxu1 %v10374_v13  ;;  %v8626_v15 = vld [vmem:[%s11117_s19 + $0x324] ss:$28 sps:$4 sm:$0xff]  }
 0x9d0   : > { %v4785_v34 = vadd.f32 %v4784_v33, %v10153_v50  ;;  %v4786_v32 = vpop.f32.mrb[27].mxu1  ;;  %5799 = vmatmul.mubr.bf16.gmra.mrb[84].mxu0 %v10372_v10  ;;  %5992 = vmatmul.mubr.bf16.gmra.mrb[84].mxu1 %v10372_v10  ;;  %v4903_v36 = vmax.f32 %v4781_v22, 0.0  ;;  %v8624_v33 = vld [vmem:[%s11117_s19 + $0x320] ss:$28 sps:$4 sm:$0xff]  }
 0x9d1   : > { %v4787_v37 = vadd.f32 %v4786_v32, %v10156_v40  ;;  %6123 = vmatpush1.bf16.msra.mxu0 %v8604_v17  ;;  %v4904_v43 = vmax.f32 %v4783_v31, 0.0 }
 0x9d2   : > { %v4905_v41 = vmax.f32 %v4785_v34, 0.0  ;;  %6124 = vmatprep.subr.bf16.mxu0 %v8609_v25 }
 0x9d3   : > { %v4906_v47 = vmax.f32 %v4787_v37, 0.0  ;;  %v8633_v37 = vld [vmem:[%s11117_s19 + $0x35c] ss:$28 sps:$4 sm:$0xff]  }
 0x9d4   : > { %v10396_v51 = vpack.c.bf16 %v4905_v41, %v4903_v36 }
 0x9d5   : > { %v10398_v19 = vpack.c.bf16 %v4906_v47, %v4904_v43  ;;  %v4790_v53 = vpop.f32.mrb[28].mxu1  ;;  %6125 = vmatpush1.bf16.msra.mxu0 %v8607_v39  ;;  %v8631_v47 = vld [vmem:[%s11117_s19 + $0x358] ss:$28 sps:$4 sm:$0xff]  }
 0x9d6   : > { %v4791_v55 = vadd.f32 %v4790_v53, %v10153_v50  ;;  %v4792_v58 = vpop.f32.mrb[29].mxu1  ;;  %6126 = vmatprep.subr.bf16.mxu0 %v8612_v42 }
 0x9d7   : > { %v4793_v60 = vadd.f32 %v4792_v58, %v10156_v40  ;;  %v4794_v61 = vpop.f32.mrb[30].mxu1  ;;  %5808 = vmatprep.mubr.bf16.mxu0 %v10398_v19  ;;  %6001 = vmatprep.mubr.bf16.mxu1 %v10398_v19 }
 0x9d8   : > { %v4795_v62 = vadd.f32 %v4794_v61, %v10153_v50  ;;  %v4796_v1 = vpop.f32.mrb[31].mxu1  ;;  %5809 = vmatmul.mubr.bf16.gmra.mrb[88].mxu0 %v10396_v51  ;;  %6002 = vmatmul.mubr.bf16.gmra.mrb[88].mxu1 %v10396_v51  ;;  %v4907_v6 = vmax.f32 %v4791_v55, 0.0 }
 0x9d9   : > { %v4797_v4 = vadd.f32 %v4796_v1, %v10156_v40  ;;  %6127 = vmatpush1.bf16.msra.mxu0 %v8610_v54  ;;  %v4908_v17 = vmax.f32 %v4793_v60, 0.0 }
 0x9da   : > { %v4909_v9 = vmax.f32 %v4795_v62, 0.0  ;;  %6128 = vmatprep.subr.bf16.mxu0 %v8619_v59 }
 0x9db   : > { %v4910_v22 = vmax.f32 %v4797_v4, 0.0 }
 0x9dc   : > { %v10420_v27 = vpack.c.bf16 %v4909_v9, %v4907_v6 }
 0x9dd   : > { %v10422_v25 = vpack.c.bf16 %v4910_v22, %v4908_v17  ;;  %v4800_v31 = vpop.f32.mrb[32].mxu1  ;;  %6129 = vmatpush1.bf16.msra.mxu0 %v8617_v5 }
 0x9de   : > { %v4801_v34 = vadd.f32 %v4800_v31, %v10153_v50  ;;  %v4802_v32 = vpop.f32.mrb[33].mxu1  ;;  %6130 = vmatprep.subr.bf16.mxu0 %v8626_v15 }
 0x9df   : > { %v4803_v39 = vadd.f32 %v4802_v32, %v10156_v40  ;;  %v4804_v36 = vpop.f32.mrb[34].mxu1  ;;  %5818 = vmatprep.mubr.bf16.mxu0 %v10422_v25  ;;  %6011 = vmatprep.mubr.bf16.mxu1 %v10422_v25 }
 0x9e0   : > { %v4805_v41 = vadd.f32 %v4804_v36, %v10153_v50  ;;  %v4806_v42 = vpop.f32.mrb[35].mxu1  ;;  %5819 = vmatmul.mubr.bf16.gmra.mrb[92].mxu0 %v10420_v27  ;;  %6012 = vmatmul.mubr.bf16.gmra.mrb[92].mxu1 %v10420_v27  ;;  %v4911_v53 = vmax.f32 %v4801_v34, 0.0 }
 0x9e1   : > { %v4807_v43 = vadd.f32 %v4806_v42, %v10156_v40  ;;  %6131 = vmatpush1.bf16.msra.mxu0 %v8624_v33  ;;  %v4912_v55 = vmax.f32 %v4803_v39, 0.0 }
 0x9e2   : > { %v4913_v54 = vmax.f32 %v4805_v41, 0.0  ;;  %6132 = vmatprep.subr.bf16.mxu0 %v8633_v37 }
 0x9e3   : > { %v4914_v58 = vmax.f32 %v4807_v43, 0.0 }
 0x9e4   : > { %v10441_v59 = vpack.c.bf16 %v4913_v54, %v4911_v53 }
 0x9e5   : > { %v10443_v60 = vpack.c.bf16 %v4914_v58, %v4912_v55  ;;  %v4810_v61 = vpop.f32.mrb[36].mxu1  ;;  %6133 = vmatpush1.bf16.msra.mxu0 %v8631_v47 }
 0x9e6   : > { %v4811_v62 = vadd.f32 %v4810_v61, %v10153_v50  ;;  %v4812_v1 = vpop.f32.mrb[37].mxu1  ;;  %7540 = vmatprep.subr.bf16.mxu0 %v10146_v49 }
 0x9e7   : > { %v4813_v4 = vadd.f32 %v4812_v1, %v10156_v40  ;;  %v4814_v5 = vpop.f32.mrb[38].mxu1  ;;  %5828 = vmatprep.mubr.bf16.mxu0 %v10443_v60  ;;  %6021 = vmatprep.mubr.bf16.mxu1 %v10443_v60 }
 0x9e8   : > { %v4815_v6 = vadd.f32 %v4814_v5, %v10153_v50  ;;  %v4816_v9 = vpop.f32.mrb[39].mxu1  ;;  %5829 = vmatmul.mubr.bf16.gmra.mrb[96].mxu0 %v10441_v59  ;;  %6022 = vmatmul.mubr.bf16.gmra.mrb[96].mxu1 %v10441_v59  ;;  %v4915_v17 = vmax.f32 %v4811_v62, 0.0 }
 0x9e9   : > { %v4817_v15 = vadd.f32 %v4816_v9, %v10156_v40  ;;  %v4916_v31 = vmax.f32 %v4813_v4, 0.0 }
 0x9ea   : > { %v4917_v22 = vmax.f32 %v4815_v6, 0.0 }
 0x9eb   : > { %v4918_v49 = vmax.f32 %v4817_v15, 0.0 }
 0x9ec   : > { %v10454_v33 = vpack.c.bf16 %v4917_v22, %v4915_v17 }
 0x9ed   : > { %v10456_v34 = vpack.c.bf16 %v4918_v49, %v4916_v31  ;;  %v4820_v32 = vpop.f32.mrb[40].mxu1 }
 0x9ee   : > { %v4821_v37 = vadd.f32 %v4820_v32, %v10153_v50  ;;  %v4822_v39 = vpop.f32.mrb[41].mxu1 }
 0x9ef   : > { %v4823_v36 = vadd.f32 %v4822_v39, %v10156_v40  ;;  %v4824_v41 = vpop.f32.mrb[42].mxu1  ;;  %5838 = vmatprep.mubr.bf16.mxu0 %v10456_v34  ;;  %6031 = vmatprep.mubr.bf16.mxu1 %v10456_v34 }
 0x9f0   : > { %v4825_v42 = vadd.f32 %v4824_v41, %v10153_v50  ;;  %v4826_v43 = vpop.f32.mrb[43].mxu1  ;;  %5839 = vmatmul.mubr.bf16.gmra.mrb[100].mxu0 %v10454_v33  ;;  %6032 = vmatmul.mubr.bf16.gmra.mrb[100].mxu1 %v10454_v33  ;;  %v4919_v53 = vmax.f32 %v4821_v37, 0.0 }
 0x9f1   : > { %v4827_v47 = vadd.f32 %v4826_v43, %v10156_v40  ;;  %v4920_v55 = vmax.f32 %v4823_v36, 0.0 }
 0x9f2   : > { %v4921_v54 = vmax.f32 %v4825_v42, 0.0 }
 0x9f3   : > { %v4922_v58 = vmax.f32 %v4827_v47, 0.0 }
 0x9f4   : > { %v10466_v61 = vpack.c.bf16 %v4921_v54, %v4919_v53 }
 0x9f5   : > { %v10468_v62 = vpack.c.bf16 %v4922_v58, %v4920_v55  ;;  %v4830_v1 = vpop.f32.mrb[44].mxu1 }
 0x9f6   : > { %v4831_v4 = vadd.f32 %v4830_v1, %v10153_v50  ;;  %v4832_v5 = vpop.f32.mrb[45].mxu1 }
 0x9f7   : > { %v4833_v6 = vadd.f32 %v4832_v5, %v10156_v40  ;;  %v4834_v9 = vpop.f32.mrb[46].mxu1  ;;  %5848 = vmatprep.mubr.bf16.mxu0 %v10468_v62  ;;  %6041 = vmatprep.mubr.bf16.mxu1 %v10468_v62 }
 0x9f8   : > { %v4835_v15 = vadd.f32 %v4834_v9, %v10153_v50  ;;  %v4836_v17 = vpop.f32.mrb[47].mxu1  ;;  %5849 = vmatmul.mubr.bf16.gmra.mrb[104].mxu0 %v10466_v61  ;;  %6042 = vmatmul.mubr.bf16.gmra.mrb[104].mxu1 %v10466_v61  ;;  %v4923_v31 = vmax.f32 %v4831_v4, 0.0 }
 0x9f9   : > { %v4837_v22 = vadd.f32 %v4836_v17, %v10156_v40  ;;  %v4924_v32 = vmax.f32 %v4833_v6, 0.0 }
 0x9fa   : > { %v4925_v49 = vmax.f32 %v4835_v15, 0.0 }
 0x9fb   : > { %v4926_v37 = vmax.f32 %v4837_v22, 0.0 }
 0x9fc   : > { %v10478_v39 = vpack.c.bf16 %v4925_v49, %v4923_v31 }
 0x9fd   : > { %v10480_v36 = vpack.c.bf16 %v4926_v37, %v4924_v32  ;;  %v4840_v41 = vpop.f32.mrb[48].mxu1 }
 0x9fe   : > { %v4841_v42 = vadd.f32 %v4840_v41, %v10153_v50  ;;  %v4842_v43 = vpop.f32.mrb[49].mxu1 }
 0x9ff   : > { %v4843_v47 = vadd.f32 %v4842_v43, %v10156_v40  ;;  %v4844_v53 = vpop.f32.mrb[50].mxu1  ;;  %5858 = vmatprep.mubr.bf16.mxu0 %v10480_v36  ;;  %6051 = vmatprep.mubr.bf16.mxu1 %v10480_v36 }
 0xa00   : > { %v4845_v54 = vadd.f32 %v4844_v53, %v10153_v50  ;;  %v4846_v55 = vpop.f32.mrb[51].mxu1  ;;  %5859 = vmatmul.mubr.bf16.gmra.mrb[108].mxu0 %v10478_v39  ;;  %6052 = vmatmul.mubr.bf16.gmra.mrb[108].mxu1 %v10478_v39  ;;  %v4927_v1 = vmax.f32 %v4841_v42, 0.0 }
 0xa01   : > { %v4847_v58 = vadd.f32 %v4846_v55, %v10156_v40  ;;  %v4928_v5 = vmax.f32 %v4843_v47, 0.0 }
 0xa02   : > { %v4929_v4 = vmax.f32 %v4845_v54, 0.0 }
 0xa03   : > { %v4930_v6 = vmax.f32 %v4847_v58, 0.0 }
 0xa04   : > { %v10490_v9 = vpack.c.bf16 %v4929_v4, %v4927_v1 }
 0xa05   : > { %v10492_v15 = vpack.c.bf16 %v4930_v6, %v4928_v5  ;;  %v4850_v17 = vpop.f32.mrb[52].mxu1 }
 0xa06   : > { %v4851_v22 = vadd.f32 %v4850_v17, %v10153_v50  ;;  %v4852_v31 = vpop.f32.mrb[53].mxu1 }
 0xa07   : > { %v4853_v49 = vadd.f32 %v4852_v31, %v10156_v40  ;;  %v4854_v32 = vpop.f32.mrb[54].mxu1  ;;  %5868 = vmatprep.mubr.bf16.mxu0 %v10492_v15  ;;  %6061 = vmatprep.mubr.bf16.mxu1 %v10492_v15 }
 0xa08   : > { %v4855_v37 = vadd.f32 %v4854_v32, %v10153_v50  ;;  %v4856_v41 = vpop.f32.mrb[55].mxu1  ;;  %5869 = vmatmul.mubr.bf16.gmra.mrb[112].mxu0 %v10490_v9  ;;  %6062 = vmatmul.mubr.bf16.gmra.mrb[112].mxu1 %v10490_v9  ;;  %v4931_v43 = vmax.f32 %v4851_v22, 0.0 }
 0xa09   : > { %v4857_v42 = vadd.f32 %v4856_v41, %v10156_v40  ;;  %v4932_v53 = vmax.f32 %v4853_v49, 0.0 }
 0xa0a   : > { %v4933_v47 = vmax.f32 %v4855_v37, 0.0 }
 0xa0b   : > { %v4934_v54 = vmax.f32 %v4857_v42, 0.0 }
 0xa0c   : > { %v10502_v55 = vpack.c.bf16 %v4933_v47, %v4931_v43 }
 0xa0d   : > { %v10504_v58 = vpack.c.bf16 %v4934_v54, %v4932_v53  ;;  %v4860_v1 = vpop.f32.mrb[56].mxu1 }
 0xa0e   : > { %v4861_v4 = vadd.f32 %v4860_v1, %v10153_v50  ;;  %v4862_v5 = vpop.f32.mrb[57].mxu1 }
 0xa0f   : > { %v4863_v6 = vadd.f32 %v4862_v5, %v10156_v40  ;;  %v4864_v17 = vpop.f32.mrb[58].mxu1  ;;  %5878 = vmatprep.mubr.bf16.mxu0 %v10504_v58  ;;  %6071 = vmatprep.mubr.bf16.mxu1 %v10504_v58 }
 0xa10   : > { %v4865_v22 = vadd.f32 %v4864_v17, %v10153_v50  ;;  %v4866_v31 = vpop.f32.mrb[59].mxu1  ;;  %5879 = vmatmul.mubr.bf16.gmra.mrb[116].mxu0 %v10502_v55  ;;  %6072 = vmatmul.mubr.bf16.gmra.mrb[116].mxu1 %v10502_v55  ;;  %v4935_v32 = vmax.f32 %v4861_v4, 0.0 }
 0xa11   : > { %v4867_v49 = vadd.f32 %v4866_v31, %v10156_v40  ;;  %v4936_v41 = vmax.f32 %v4863_v6, 0.0 }
 0xa12   : > { %v4937_v37 = vmax.f32 %v4865_v22, 0.0 }
 0xa13   : > { %v4938_v42 = vmax.f32 %v4867_v49, 0.0 }
 0xa14   : > { %v10514_v43 = vpack.c.bf16 %v4937_v37, %v4935_v32 }
 0xa15   : > { %v10516_v47 = vpack.c.bf16 %v4938_v42, %v4936_v41  ;;  %v4870_v53 = vpop.f32.mrb[60].mxu1 }
 0xa16   : > { %v4871_v54 = vadd.f32 %v4870_v53, %v10153_v50  ;;  %v4872_v1 = vpop.f32.mrb[61].mxu1 }
 0xa17   : > { %v4873_v5 = vadd.f32 %v4872_v1, %v10156_v40  ;;  %v4874_v17 = vpop.f32.mrb[62].mxu1  ;;  %5888 = vmatprep.mubr.bf16.mxu0 %v10516_v47  ;;  %6081 = vmatprep.mubr.bf16.mxu1 %v10516_v47 }
 0xa18   : > { %v4875_v4 = vadd.f32 %v4874_v17, %v10153_v50  ;;  %v4876_v22 = vpop.f32.mrb[63].mxu1  ;;  %5889 = vmatmul.mubr.bf16.gmra.mrb[120].mxu0 %v10514_v43  ;;  %6082 = vmatmul.mubr.bf16.gmra.mrb[120].mxu1 %v10514_v43  ;;  %v4939_v31 = vmax.f32 %v4871_v54, 0.0  ;;  %v5115_v50 = vsub.s32 2, %v9400_v18 }
 0xa19   : > { %v4877_v6 = vadd.f32 %v4876_v22, %v10156_v40  ;;  %v4940_v32 = vmax.f32 %v4873_v5, 0.0  ;;  %v5103_v40 = vld [vmem:[%s11118_s20] sm:$0xff] }
 0xa1a   : > { %v4941_v49 = vmax.f32 %v4875_v4, 0.0 }
 0xa1b   : > { %v4942_v37 = vmax.f32 %v4877_v6, 0.0 }
 0xa1c   : > { %v10526_v41 = vpack.c.bf16 %v4941_v49, %v4939_v31 }
 0xa1d   : > { %v10528_v42 = vpack.c.bf16 %v4942_v37, %v4940_v32 }
 0xa1f   : > { %5898 = vmatprep.mubr.bf16.mxu0 %v10528_v42  ;;  %6091 = vmatprep.mubr.bf16.mxu1 %v10528_v42 }
 0xa20   : > { %5899 = vmatmul.mubr.bf16.gmra.mrb[124].mxu0 %v10526_v41  ;;  %6092 = vmatmul.mubr.bf16.gmra.mrb[124].mxu1 %v10526_v41 }
 0xa21   : > { %6134 = vmatprep.mubr.bf16.mxu0 %v10164_v0  ;;  %6375 = vmatprep.mubr.bf16.mxu1 %v10398_v19 }
 0xa28   : > { %6135 = vmatmul.mubr.bf16.vlgmr.msra.gmra.mrb[128].mxu0 %v10162_v63  ;;  %6376 = vmatmul.mubr.bf16.vlgmr.msra.gmra.mrb[128].mxu1 %v10396_v51 }
 0xa29   : > { %6144 = vmatprep.mubr.bf16.mxu0 %v10210_v28  ;;  %7541 = vmatpush3.bf16.msra.mxu0 %v10172_v3  ;;  %v5119_v3 = vsub.s32 3, %v9400_v18 }
 0xa2a   : > { %6383 = vmatprep.mubr.bf16.mxu1 %v10422_v25  ;;  %7542 = vmatprep.subr.bf16.mxu0 %v10181_v7  ;;  %v10597_v7 = vrot.slane %v5103_v40, %v9406_v21 }
 0xa2d   : > { %7543 = vmatpush3.bf16.msra.mxu0 %v10197_v14  ;;  %v10599_v14 = vrot.slane %v5103_v40, %v5115_v50 }
 0xa2e   : > { %7544 = vmatprep.subr.bf16.mxu0 %v10206_v20  ;;  %v10603_v20 = vrot.slane %v5103_v40, %v9412_v23 }
 0xa30   : > { %6145 = vmatmul.mubr.bf16.gmra.mrb[132].mxu0 %v10208_v24  ;;  %6384 = vmatmul.mubr.bf16.gmra.mrb[132].mxu1 %v10420_v27 }
 0xa31   : > { %6154 = vmatprep.mubr.bf16.mxu0 %v10258_v56  ;;  %6391 = vmatprep.mubr.bf16.mxu1 %v10443_v60 }
 0xa32   : > { %7545 = vmatpush3.bf16.msra.mxu0 %v10219_v30  ;;  %v10605_v30 = vrot.slane %v5103_v40, %v5119_v3 }
 0xa33   : > { %7546 = vmatprep.subr.bf16.mxu0 %v10229_v26 }
 0xa36   : > { %7547 = vmatpush3.bf16.msra.mxu0 %v10245_v38 }
 0xa37   : > { %7548 = vmatprep.subr.bf16.mxu0 %v10254_v45 }
 0xa38   : > { %6155 = vmatmul.mubr.bf16.gmra.mrb[136].mxu0 %v10256_v48  ;;  %6392 = vmatmul.mubr.bf16.gmra.mrb[136].mxu1 %v10441_v59 }
 0xa39   : > { %6164 = vmatprep.mubr.bf16.mxu0 %v10306_v12  ;;  %6399 = vmatprep.mubr.bf16.mxu1 %v10456_v34 }
 0xa3a   : > { %7549 = vmatpush3.bf16.msra.mxu0 %v10267_v52 }
 0xa3b   : > { %7550 = vmatprep.subr.bf16.mxu0 %v10277_v57 }
 0xa3e   : > { %7551 = vmatpush3.bf16.msra.mxu0 %v10293_v2 }
 0xa3f   : > { %7552 = vmatprep.subr.bf16.mxu0 %v10302_v8 }
 0xa40   : > { %6165 = vmatmul.mubr.bf16.gmra.mrb[140].mxu0 %v10304_v11  ;;  %6400 = vmatmul.mubr.bf16.gmra.mrb[140].mxu1 %v10454_v33 }
 0xa41   : > { %6174 = vmatprep.mubr.bf16.mxu0 %v10349_v46  ;;  %6407 = vmatprep.mubr.bf16.mxu1 %v10468_v62 }
 0xa42   : > { %7553 = vmatpush3.bf16.msra.mxu0 %v10315_v16 }
 0xa43   : > { %7554 = vmatprep.subr.bf16.mxu0 %v10325_v29 }
 0xa46   : > { %7555 = vmatpush3.bf16.msra.mxu0 %v10341_v35 }
 0xa48   : > { %6175 = vmatmul.mubr.bf16.gmra.mrb[144].mxu0 %v10347_v44  ;;  %6408 = vmatmul.mubr.bf16.gmra.mrb[144].mxu1 %v10466_v61 }
 0xa49   : > { %6184 = vmatprep.mubr.bf16.mxu0 %v10374_v13  ;;  %6415 = vmatprep.mubr.bf16.mxu1 %v10480_v36 }
 0xa50   : > { %6185 = vmatmul.mubr.bf16.gmra.mrb[148].mxu0 %v10372_v10  ;;  %6416 = vmatmul.mubr.bf16.gmra.mrb[148].mxu1 %v10478_v39 }
 0xa51   : > { %6194 = vmatprep.mubr.bf16.mxu0 %v10398_v19  ;;  %6423 = vmatprep.mubr.bf16.mxu1 %v10492_v15 }
 0xa58   : > { %6195 = vmatmul.mubr.bf16.gmra.mrb[152].mxu0 %v10396_v51  ;;  %6424 = vmatmul.mubr.bf16.gmra.mrb[152].mxu1 %v10490_v9 }
 0xa59   : > { %6204 = vmatprep.mubr.bf16.mxu0 %v10422_v25  ;;  %6431 = vmatprep.mubr.bf16.mxu1 %v10504_v58 }
 0xa60   : > { %6205 = vmatmul.mubr.bf16.gmra.mrb[156].mxu0 %v10420_v27  ;;  %6432 = vmatmul.mubr.bf16.gmra.mrb[156].mxu1 %v10502_v55 }
 0xa61   : > { %6214 = vmatprep.mubr.bf16.mxu0 %v10443_v60  ;;  %6439 = vmatprep.mubr.bf16.mxu1 %v10516_v47 }
 0xa68   : > { %6215 = vmatmul.mubr.bf16.gmra.mrb[160].mxu0 %v10441_v59  ;;  %6440 = vmatmul.mubr.bf16.gmra.mrb[160].mxu1 %v10514_v43 }
 0xa69   : > { %6224 = vmatprep.mubr.bf16.mxu0 %v10456_v34  ;;  %6447 = vmatprep.mubr.bf16.mxu1 %v10528_v42 }
 0xa70   : > { %6225 = vmatmul.mubr.bf16.gmra.mrb[164].mxu0 %v10454_v33  ;;  %6448 = vmatmul.mubr.bf16.gmra.mrb[164].mxu1 %v10526_v41 }
 0xa71   : > { %6234 = vmatprep.mubr.bf16.mxu0 %v10468_v62 }
 0xa78   : > { %6235 = vmatmul.mubr.bf16.gmra.mrb[168].mxu0 %v10466_v61 }
 0xa79   : > { %6244 = vmatprep.mubr.bf16.mxu0 %v10480_v36 }
 0xa7b   : > { %v5750_v26 = vpop.f32.mrb[64].mxu0  ;;  %v5943_v38 = vpop.f32.mrb[64].mxu1 }
 0xa7c   : > { %v5751_v45 = vadd.f32 %v5750_v26, %v10597_v7  ;;  %v5944_v52 = vadd.f32 %v5943_v38, %v10599_v14  ;;  %v5752_v57 = vpop.f32.mrb[65].mxu0  ;;  %v5945_v2 = vpop.f32.mrb[65].mxu1 }
 0xa7d   : > { %v5753_v21 = vadd.f32 %v5752_v57, %v10603_v20  ;;  %v5946_v23 = vadd.f32 %v5945_v2, %v10605_v30  ;;  %v5754_v8 = vpop.f32.mrb[66].mxu0  ;;  %v5947_v16 = vpop.f32.mrb[66].mxu1 }
 0xa7e   : > { %v6456_v29 = vmax.f32 %v5751_v45, 0.0  ;;  %v6458_v35 = vmax.f32 %v5944_v52, 0.0  ;;  %v5755_v51 = vadd.f32 %v5754_v8, %v10597_v7  ;;  %v5948_v19 = vadd.f32 %v5947_v16, %v10599_v14  ;;  %v5756_v27 = vpop.f32.mrb[67].mxu0  ;;  %v5949_v25 = vpop.f32.mrb[67].mxu1 }
 0xa7f   : > { %v6457_v59 = vmax.f32 %v5753_v21, 0.0  ;;  %v6459_v60 = vmax.f32 %v5946_v23, 0.0  ;;  %v5757_v33 = vadd.f32 %v5756_v27, %v10603_v20  ;;  %v5950_v34 = vadd.f32 %v5949_v25, %v10605_v30 }
 0xa80   : > { %6680 = vst [vmem:[%s10614_s4] sm:$0xff] %v6456_v29  ;;  %6682 = vst [vmem:[%s10614_s4 + $0x10] sm:$0xff] %v6458_v35  ;;  %v6463_v61 = vmax.f32 %v5755_v51, 0.0  ;;  %v6465_v62 = vmax.f32 %v5948_v19, 0.0  ;;  %6245 = vmatmul.mubr.bf16.gmra.mrb[172].mxu0 %v10478_v39 }
 0xa81   : > { %6681 = vst [vmem:[%s10614_s4 + $0x8] sm:$0xff] %v6457_v59  ;;  %6683 = vst [vmem:[%s10614_s4 + $0x18] sm:$0xff] %v6459_v60  ;;  %v6464_v36 = vmax.f32 %v5757_v33, 0.0  ;;  %v6466_v53 = vmax.f32 %v5950_v34, 0.0  ;;  %6254 = vmatprep.mubr.bf16.mxu0 %v10492_v15 }
 0xa82   : > { %6687 = vst [vmem:[%s10614_s4 + $0x38] sm:$0xff] %v6463_v61  ;;  %6689 = vst [vmem:[%s10614_s4 + $0x48] sm:$0xff] %v6465_v62 }
 0xa83   : > { %6688 = vst [vmem:[%s10614_s4 + $0x40] sm:$0xff] %v6464_v36  ;;  %6690 = vst [vmem:[%s10614_s4 + $0x50] sm:$0xff] %v6466_v53  ;;  %v5760_v54 = vpop.f32.mrb[68].mxu0  ;;  %v5953_v1 = vpop.f32.mrb[68].mxu1 }
 0xa84   : > { %v5761_v5 = vadd.f32 %v5760_v54, %v10597_v7  ;;  %v5954_v17 = vadd.f32 %v5953_v1, %v10599_v14  ;;  %v5762_v4 = vpop.f32.mrb[69].mxu0  ;;  %v5955_v22 = vpop.f32.mrb[69].mxu1 }
 0xa85   : > { %v5763_v39 = vadd.f32 %v5762_v4, %v10603_v20  ;;  %v5956_v6 = vadd.f32 %v5955_v22, %v10605_v30  ;;  %v5764_v31 = vpop.f32.mrb[70].mxu0  ;;  %v5957_v15 = vpop.f32.mrb[70].mxu1 }
 0xa86   : > { %v6470_v49 = vmax.f32 %v5761_v5, 0.0  ;;  %v6472_v32 = vmax.f32 %v5954_v17, 0.0  ;;  %v5765_v37 = vadd.f32 %v5764_v31, %v10597_v7  ;;  %v5958_v50 = vadd.f32 %v5957_v15, %v10599_v14  ;;  %v5766_v40 = vpop.f32.mrb[71].mxu0  ;;  %v5959_v3 = vpop.f32.mrb[71].mxu1 }
 0xa87   : > { %v6471_v26 = vmax.f32 %v5763_v39, 0.0  ;;  %v6473_v38 = vmax.f32 %v5956_v6, 0.0  ;;  %v5767_v45 = vadd.f32 %v5766_v40, %v10603_v20  ;;  %v5960_v52 = vadd.f32 %v5959_v3, %v10605_v30 }
 0xa88   : > { %6694 = vst [vmem:[%s10614_s4 + $0x70] sm:$0xff] %v6470_v49  ;;  %6696 = vst [vmem:[%s10614_s4 + $0x80] sm:$0xff] %v6472_v32  ;;  %v6477_v57 = vmax.f32 %v5765_v37, 0.0  ;;  %v6479_v2 = vmax.f32 %v5958_v50, 0.0  ;;  %6255 = vmatmul.mubr.bf16.gmra.mrb[176].mxu0 %v10490_v9 }
 0xa89   : > { %6695 = vst [vmem:[%s10614_s4 + $0x78] sm:$0xff] %v6471_v26  ;;  %6697 = vst [vmem:[%s10614_s4 + $0x88] sm:$0xff] %v6473_v38  ;;  %v6478_v21 = vmax.f32 %v5767_v45, 0.0  ;;  %v6480_v23 = vmax.f32 %v5960_v52, 0.0  ;;  %6264 = vmatprep.mubr.bf16.mxu0 %v10504_v58 }
 0xa8a   : > { %6701 = vst [vmem:[%s10614_s4 + $0xa8] sm:$0xff] %v6477_v57  ;;  %6703 = vst [vmem:[%s10614_s4 + $0xb8] sm:$0xff] %v6479_v2 }
 0xa8b   : > { %6702 = vst [vmem:[%s10614_s4 + $0xb0] sm:$0xff] %v6478_v21  ;;  %6704 = vst [vmem:[%s10614_s4 + $0xc0] sm:$0xff] %v6480_v23  ;;  %v5770_v8 = vpop.f32.mrb[72].mxu0  ;;  %v5963_v16 = vpop.f32.mrb[72].mxu1 }
 0xa8c   : > { %v5771_v29 = vadd.f32 %v5770_v8, %v10597_v7  ;;  %v5964_v35 = vadd.f32 %v5963_v16, %v10599_v14  ;;  %v5772_v51 = vpop.f32.mrb[73].mxu0  ;;  %v5965_v19 = vpop.f32.mrb[73].mxu1 }
 0xa8d   : > { %v5773_v9 = vadd.f32 %v5772_v51, %v10603_v20  ;;  %v5966_v27 = vadd.f32 %v5965_v19, %v10605_v30  ;;  %v5774_v25 = vpop.f32.mrb[74].mxu0  ;;  %v5967_v58 = vpop.f32.mrb[74].mxu1 }
 0xa8e   : > { %v6484_v59 = vmax.f32 %v5771_v29, 0.0  ;;  %v6486_v60 = vmax.f32 %v5964_v35, 0.0  ;;  %v5775_v33 = vadd.f32 %v5774_v25, %v10597_v7  ;;  %v5968_v34 = vadd.f32 %v5967_v58, %v10599_v14  ;;  %v5776_v61 = vpop.f32.mrb[75].mxu0  ;;  %v5969_v62 = vpop.f32.mrb[75].mxu1 }
 0xa8f   : > { %v6485_v36 = vmax.f32 %v5773_v9, 0.0  ;;  %v6487_v53 = vmax.f32 %v5966_v27, 0.0  ;;  %v5777_v54 = vadd.f32 %v5776_v61, %v10603_v20  ;;  %v5970_v1 = vadd.f32 %v5969_v62, %v10605_v30 }
 0xa90   : > { %6708 = vst [vmem:[%s10614_s4 + $0xe0] sm:$0xff] %v6484_v59  ;;  %6710 = vst [vmem:[%s10614_s4 + $0xf0] sm:$0xff] %v6486_v60  ;;  %v6491_v5 = vmax.f32 %v5775_v33, 0.0  ;;  %v6493_v17 = vmax.f32 %v5968_v34, 0.0  ;;  %6265 = vmatmul.mubr.bf16.gmra.mrb[180].mxu0 %v10502_v55 }
 0xa91   : > { %6709 = vst [vmem:[%s10614_s4 + $0xe8] sm:$0xff] %v6485_v36  ;;  %6711 = vst [vmem:[%s10614_s4 + $0xf8] sm:$0xff] %v6487_v53  ;;  %v6492_v4 = vmax.f32 %v5777_v54, 0.0  ;;  %v6494_v22 = vmax.f32 %v5970_v1, 0.0  ;;  %6274 = vmatprep.mubr.bf16.mxu0 %v10516_v47 }
 0xa92   : > { %6715 = vst [vmem:[%s10614_s4 + $0x118] sm:$0xff] %v6491_v5  ;;  %6717 = vst [vmem:[%s10614_s4 + $0x128] sm:$0xff] %v6493_v17 }
 0xa93   : > { %6716 = vst [vmem:[%s10614_s4 + $0x120] sm:$0xff] %v6492_v4  ;;  %6718 = vst [vmem:[%s10614_s4 + $0x130] sm:$0xff] %v6494_v22  ;;  %v5780_v39 = vpop.f32.mrb[76].mxu0  ;;  %v5973_v6 = vpop.f32.mrb[76].mxu1 }
 0xa94   : > { %v5781_v31 = vadd.f32 %v5780_v39, %v10597_v7  ;;  %v5974_v15 = vadd.f32 %v5973_v6, %v10599_v14  ;;  %v5782_v49 = vpop.f32.mrb[77].mxu0  ;;  %v5975_v32 = vpop.f32.mrb[77].mxu1 }
 0xa95   : > { %v5783_v55 = vadd.f32 %v5782_v49, %v10603_v20  ;;  %v5976_v37 = vadd.f32 %v5975_v32, %v10605_v30  ;;  %v5784_v50 = vpop.f32.mrb[78].mxu0  ;;  %v5977_v47 = vpop.f32.mrb[78].mxu1 }
 0xa96   : > { %v6498_v40 = vmax.f32 %v5781_v31, 0.0  ;;  %v6500_v3 = vmax.f32 %v5974_v15, 0.0  ;;  %v5785_v26 = vadd.f32 %v5784_v50, %v10597_v7  ;;  %v5978_v38 = vadd.f32 %v5977_v47, %v10599_v14  ;;  %v5786_v45 = vpop.f32.mrb[79].mxu0  ;;  %v5979_v52 = vpop.f32.mrb[79].mxu1 }
 0xa97   : > { %v6499_v57 = vmax.f32 %v5783_v55, 0.0  ;;  %v6501_v2 = vmax.f32 %v5976_v37, 0.0  ;;  %v5787_v21 = vadd.f32 %v5786_v45, %v10603_v20  ;;  %v5980_v23 = vadd.f32 %v5979_v52, %v10605_v30 }
 0xa98   : > { %6722 = vst [vmem:[%s10614_s4 + $0x150] sm:$0xff] %v6498_v40  ;;  %6724 = vst [vmem:[%s10614_s4 + $0x160] sm:$0xff] %v6500_v3  ;;  %v6505_v8 = vmax.f32 %v5785_v26, 0.0  ;;  %v6507_v16 = vmax.f32 %v5978_v38, 0.0  ;;  %6275 = vmatmul.mubr.bf16.gmra.mrb[184].mxu0 %v10514_v43 }
 0xa99   : > { %6723 = vst [vmem:[%s10614_s4 + $0x158] sm:$0xff] %v6499_v57  ;;  %6725 = vst [vmem:[%s10614_s4 + $0x168] sm:$0xff] %v6501_v2  ;;  %v6506_v29 = vmax.f32 %v5787_v21, 0.0  ;;  %v6508_v35 = vmax.f32 %v5980_v23, 0.0  ;;  %6284 = vmatprep.mubr.bf16.mxu0 %v10528_v42 }
 0xa9a   : > { %6729 = vst [vmem:[%s10614_s4 + $0x188] sm:$0xff] %v6505_v8  ;;  %6731 = vst [vmem:[%s10614_s4 + $0x198] sm:$0xff] %v6507_v16 }
 0xa9b   : > { %6730 = vst [vmem:[%s10614_s4 + $0x190] sm:$0xff] %v6506_v29  ;;  %6732 = vst [vmem:[%s10614_s4 + $0x1a0] sm:$0xff] %v6508_v35  ;;  %v5790_v51 = vpop.f32.mrb[80].mxu0  ;;  %v5983_v19 = vpop.f32.mrb[80].mxu1 }
 0xa9c   : > { %v5791_v9 = vadd.f32 %v5790_v51, %v10597_v7  ;;  %v5984_v27 = vadd.f32 %v5983_v19, %v10599_v14  ;;  %v5792_v25 = vpop.f32.mrb[81].mxu0  ;;  %v5985_v58 = vpop.f32.mrb[81].mxu1 }
 0xa9d   : > { %v5793_v43 = vadd.f32 %v5792_v25, %v10603_v20  ;;  %v5986_v59 = vadd.f32 %v5985_v58, %v10605_v30  ;;  %v5794_v60 = vpop.f32.mrb[82].mxu0  ;;  %v5987_v42 = vpop.f32.mrb[82].mxu1 }
 0xa9e   : > { %v6512_v33 = vmax.f32 %v5791_v9, 0.0  ;;  %v6514_v34 = vmax.f32 %v5984_v27, 0.0  ;;  %v5795_v61 = vadd.f32 %v5794_v60, %v10597_v7  ;;  %v5988_v62 = vadd.f32 %v5987_v42, %v10599_v14  ;;  %v5796_v36 = vpop.f32.mrb[83].mxu0  ;;  %v5989_v53 = vpop.f32.mrb[83].mxu1 }
 0xa9f   : > { %v6513_v54 = vmax.f32 %v5793_v43, 0.0  ;;  %v6515_v1 = vmax.f32 %v5986_v59, 0.0  ;;  %v5797_v5 = vadd.f32 %v5796_v36, %v10603_v20  ;;  %v5990_v17 = vadd.f32 %v5989_v53, %v10605_v30 }
 0xaa0   : > { %6736 = vst [vmem:[%s10614_s4 + $0x1c0] sm:$0xff] %v6512_v33  ;;  %6738 = vst [vmem:[%s10614_s4 + $0x1d0] sm:$0xff] %v6514_v34  ;;  %v6519_v4 = vmax.f32 %v5795_v61, 0.0  ;;  %v6521_v22 = vmax.f32 %v5988_v62, 0.0  ;;  %6285 = vmatmul.mubr.bf16.gmra.mrb[188].mxu0 %v10526_v41 }
 0xaa1   : > { %6737 = vst [vmem:[%s10614_s4 + $0x1c8] sm:$0xff] %v6513_v54  ;;  %6739 = vst [vmem:[%s10614_s4 + $0x1d8] sm:$0xff] %v6515_v1  ;;  %v6520_v39 = vmax.f32 %v5797_v5, 0.0  ;;  %v6522_v6 = vmax.f32 %v5990_v17, 0.0  ;;  %6327 = vmatprep.mubr.bf16.mxu0 %v10164_v0 }
 0xaa2   : > { %6743 = vst [vmem:[%s10614_s4 + $0x1f8] sm:$0xff] %v6519_v4  ;;  %6745 = vst [vmem:[%s10614_s4 + $0x208] sm:$0xff] %v6521_v22 }
 0xaa3   : > { %6744 = vst [vmem:[%s10614_s4 + $0x200] sm:$0xff] %v6520_v39  ;;  %6746 = vst [vmem:[%s10614_s4 + $0x210] sm:$0xff] %v6522_v6  ;;  %v5800_v31 = vpop.f32.mrb[84].mxu0  ;;  %v5993_v15 = vpop.f32.mrb[84].mxu1 }
 0xaa4   : > { %v5801_v49 = vadd.f32 %v5800_v31, %v10597_v7  ;;  %v5994_v32 = vadd.f32 %v5993_v15, %v10599_v14  ;;  %v5802_v55 = vpop.f32.mrb[85].mxu0  ;;  %v5995_v37 = vpop.f32.mrb[85].mxu1 }
 0xaa5   : > { %v5803_v41 = vadd.f32 %v5802_v55, %v10603_v20  ;;  %v5996_v50 = vadd.f32 %v5995_v37, %v10605_v30  ;;  %v5804_v47 = vpop.f32.mrb[86].mxu0  ;;  %v5997_v0 = vpop.f32.mrb[86].mxu1 }
 0xaa6   : > { %v6526_v40 = vmax.f32 %v5801_v49, 0.0  ;;  %v6528_v3 = vmax.f32 %v5994_v32, 0.0  ;;  %v5805_v26 = vadd.f32 %v5804_v47, %v10597_v7  ;;  %v5998_v38 = vadd.f32 %v5997_v0, %v10599_v14  ;;  %v5806_v45 = vpop.f32.mrb[87].mxu0  ;;  %v5999_v52 = vpop.f32.mrb[87].mxu1 }
 0xaa7   : > { %v6527_v57 = vmax.f32 %v5803_v41, 0.0  ;;  %v6529_v2 = vmax.f32 %v5996_v50, 0.0  ;;  %v5807_v21 = vadd.f32 %v5806_v45, %v10603_v20  ;;  %v6000_v23 = vadd.f32 %v5999_v52, %v10605_v30 }
 0xaa8   : > { %6750 = vst [vmem:[%s10614_s4 + $0x230] sm:$0xff] %v6526_v40  ;;  %6752 = vst [vmem:[%s10614_s4 + $0x240] sm:$0xff] %v6528_v3  ;;  %v6533_v8 = vmax.f32 %v5805_v26, 0.0  ;;  %v6535_v16 = vmax.f32 %v5998_v38, 0.0  ;;  %6328 = vmatmul.mubr.bf16.vlgmr.msra.gmra.mrb[192].mxu0 %v10162_v63 }
 0xaa9   : > { %6751 = vst [vmem:[%s10614_s4 + $0x238] sm:$0xff] %v6527_v57  ;;  %6753 = vst [vmem:[%s10614_s4 + $0x248] sm:$0xff] %v6529_v2  ;;  %v6534_v29 = vmax.f32 %v5807_v21, 0.0  ;;  %v6536_v35 = vmax.f32 %v6000_v23, 0.0  ;;  %6335 = vmatprep.mubr.bf16.mxu0 %v10210_v28 }
 0xaaa   : > { %6757 = vst [vmem:[%s10614_s4 + $0x268] sm:$0xff] %v6533_v8  ;;  %6759 = vst [vmem:[%s10614_s4 + $0x278] sm:$0xff] %v6535_v16 }
 0xaab   : > { %6758 = vst [vmem:[%s10614_s4 + $0x270] sm:$0xff] %v6534_v29  ;;  %6760 = vst [vmem:[%s10614_s4 + $0x280] sm:$0xff] %v6536_v35  ;;  %v5810_v51 = vpop.f32.mrb[88].mxu0  ;;  %v6003_v19 = vpop.f32.mrb[88].mxu1 }
 0xaac   : > { %v5811_v9 = vadd.f32 %v5810_v51, %v10597_v7  ;;  %v6004_v27 = vadd.f32 %v6003_v19, %v10599_v14  ;;  %v5812_v25 = vpop.f32.mrb[89].mxu0  ;;  %v6005_v58 = vpop.f32.mrb[89].mxu1 }
 0xaad   : > { %v5813_v63 = vadd.f32 %v5812_v25, %v10603_v20  ;;  %v6006_v43 = vadd.f32 %v6005_v58, %v10605_v30  ;;  %v5814_v59 = vpop.f32.mrb[90].mxu0  ;;  %v6007_v28 = vpop.f32.mrb[90].mxu1 }
 0xaae   : > { %v6540_v60 = vmax.f32 %v5811_v9, 0.0  ;;  %v6542_v42 = vmax.f32 %v6004_v27, 0.0  ;;  %v5815_v33 = vadd.f32 %v5814_v59, %v10597_v7  ;;  %v6008_v34 = vadd.f32 %v6007_v28, %v10599_v14  ;;  %v5816_v61 = vpop.f32.mrb[91].mxu0  ;;  %v6009_v62 = vpop.f32.mrb[91].mxu1 }
 0xaaf   : > { %v6541_v36 = vmax.f32 %v5813_v63, 0.0  ;;  %v6543_v53 = vmax.f32 %v6006_v43, 0.0  ;;  %v5817_v54 = vadd.f32 %v5816_v61, %v10603_v20  ;;  %v6010_v1 = vadd.f32 %v6009_v62, %v10605_v30 }
 0xab0   : > { %6764 = vst [vmem:[%s10614_s4 + $0x2a0] sm:$0xff] %v6540_v60  ;;  %6766 = vst [vmem:[%s10614_s4 + $0x2b0] sm:$0xff] %v6542_v42  ;;  %v6547_v5 = vmax.f32 %v5815_v33, 0.0  ;;  %v6549_v17 = vmax.f32 %v6008_v34, 0.0  ;;  %6336 = vmatmul.mubr.bf16.gmra.mrb[196].mxu0 %v10208_v24 }
 0xab1   : > { %6765 = vst [vmem:[%s10614_s4 + $0x2a8] sm:$0xff] %v6541_v36  ;;  %6767 = vst [vmem:[%s10614_s4 + $0x2b8] sm:$0xff] %v6543_v53  ;;  %v6548_v4 = vmax.f32 %v5817_v54, 0.0  ;;  %v6550_v22 = vmax.f32 %v6010_v1, 0.0  ;;  %6343 = vmatprep.mubr.bf16.mxu0 %v10258_v56 }
 0xab2   : > { %6771 = vst [vmem:[%s10614_s4 + $0x2d8] sm:$0xff] %v6547_v5  ;;  %6773 = vst [vmem:[%s10614_s4 + $0x2e8] sm:$0xff] %v6549_v17 }
 0xab3   : > { %6772 = vst [vmem:[%s10614_s4 + $0x2e0] sm:$0xff] %v6548_v4  ;;  %6774 = vst [vmem:[%s10614_s4 + $0x2f0] sm:$0xff] %v6550_v22  ;;  %v5820_v39 = vpop.f32.mrb[92].mxu0  ;;  %v6013_v6 = vpop.f32.mrb[92].mxu1 }
 0xab4   : > { %v5821_v31 = vadd.f32 %v5820_v39, %v10597_v7  ;;  %v6014_v15 = vadd.f32 %v6013_v6, %v10599_v14  ;;  %v5822_v49 = vpop.f32.mrb[93].mxu0  ;;  %v6015_v32 = vpop.f32.mrb[93].mxu1 }
 0xab5   : > { %v5823_v24 = vadd.f32 %v5822_v49, %v10603_v20  ;;  %v6016_v55 = vadd.f32 %v6015_v32, %v10605_v30  ;;  %v5824_v37 = vpop.f32.mrb[94].mxu0  ;;  %v6017_v56 = vpop.f32.mrb[94].mxu1 }
 0xab6   : > { %v6554_v41 = vmax.f32 %v5821_v31, 0.0  ;;  %v6556_v50 = vmax.f32 %v6014_v15, 0.0  ;;  %v5825_v47 = vadd.f32 %v5824_v37, %v10597_v7  ;;  %v6018_v0 = vadd.f32 %v6017_v56, %v10599_v14  ;;  %v5826_v40 = vpop.f32.mrb[95].mxu0  ;;  %v6019_v3 = vpop.f32.mrb[95].mxu1 }
 0xab7   : > { %v6555_v26 = vmax.f32 %v5823_v24, 0.0  ;;  %v6557_v38 = vmax.f32 %v6016_v55, 0.0  ;;  %v5827_v45 = vadd.f32 %v5826_v40, %v10603_v20  ;;  %v6020_v52 = vadd.f32 %v6019_v3, %v10605_v30 }
 0xab8   : > { %6778 = vst [vmem:[%s10614_s4 + $0x310] sm:$0xff] %v6554_v41  ;;  %6780 = vst [vmem:[%s10614_s4 + $0x320] sm:$0xff] %v6556_v50  ;;  %v6561_v57 = vmax.f32 %v5825_v47, 0.0  ;;  %v6563_v2 = vmax.f32 %v6018_v0, 0.0  ;;  %6344 = vmatmul.mubr.bf16.gmra.mrb[200].mxu0 %v10256_v48 }
 0xab9   : > { %6779 = vst [vmem:[%s10614_s4 + $0x318] sm:$0xff] %v6555_v26  ;;  %6781 = vst [vmem:[%s10614_s4 + $0x328] sm:$0xff] %v6557_v38  ;;  %v6562_v21 = vmax.f32 %v5827_v45, 0.0  ;;  %v6564_v23 = vmax.f32 %v6020_v52, 0.0  ;;  %6351 = vmatprep.mubr.bf16.mxu0 %v10306_v12 }
 0xaba   : > { %6785 = vst [vmem:[%s10614_s4 + $0x348] sm:$0xff] %v6561_v57  ;;  %6787 = vst [vmem:[%s10614_s4 + $0x358] sm:$0xff] %v6563_v2 }
 0xabb   : > { %6786 = vst [vmem:[%s10614_s4 + $0x350] sm:$0xff] %v6562_v21  ;;  %6788 = vst [vmem:[%s10614_s4 + $0x360] sm:$0xff] %v6564_v23  ;;  %v5830_v8 = vpop.f32.mrb[96].mxu0  ;;  %v6023_v16 = vpop.f32.mrb[96].mxu1 }
 0xabc   : > { %v5831_v29 = vadd.f32 %v5830_v8, %v10597_v7  ;;  %v6024_v35 = vadd.f32 %v6023_v16, %v10599_v14  ;;  %v5832_v51 = vpop.f32.mrb[97].mxu0  ;;  %v6025_v19 = vpop.f32.mrb[97].mxu1 }
 0xabd   : > { %v5833_v48 = vadd.f32 %v5832_v51, %v10603_v20  ;;  %v6026_v9 = vadd.f32 %v6025_v19, %v10605_v30  ;;  %v5834_v27 = vpop.f32.mrb[98].mxu0  ;;  %v6027_v12 = vpop.f32.mrb[98].mxu1 }
 0xabe   : > { %v6568_v25 = vmax.f32 %v5831_v29, 0.0  ;;  %v6570_v58 = vmax.f32 %v6024_v35, 0.0  ;;  %v5835_v63 = vadd.f32 %v5834_v27, %v10597_v7  ;;  %v6028_v43 = vadd.f32 %v6027_v12, %v10599_v14  ;;  %v5836_v59 = vpop.f32.mrb[99].mxu0  ;;  %v6029_v28 = vpop.f32.mrb[99].mxu1 }
 0xabf   : > { %v6569_v60 = vmax.f32 %v5833_v48, 0.0  ;;  %v6571_v42 = vmax.f32 %v6026_v9, 0.0  ;;  %v5837_v33 = vadd.f32 %v5836_v59, %v10603_v20  ;;  %v6030_v34 = vadd.f32 %v6029_v28, %v10605_v30 }
 0xac0   : > { %6792 = vst [vmem:[%s10614_s4 + $0x380] sm:$0xff] %v6568_v25  ;;  %6794 = vst [vmem:[%s10614_s4 + $0x390] sm:$0xff] %v6570_v58  ;;  %v6575_v61 = vmax.f32 %v5835_v63, 0.0  ;;  %v6577_v62 = vmax.f32 %v6028_v43, 0.0  ;;  %6352 = vmatmul.mubr.bf16.gmra.mrb[204].mxu0 %v10304_v11 }
 0xac1   : > { %6793 = vst [vmem:[%s10614_s4 + $0x388] sm:$0xff] %v6569_v60  ;;  %6795 = vst [vmem:[%s10614_s4 + $0x398] sm:$0xff] %v6571_v42  ;;  %v6576_v36 = vmax.f32 %v5837_v33, 0.0  ;;  %v6578_v53 = vmax.f32 %v6030_v34, 0.0  ;;  %6359 = vmatprep.mubr.bf16.mxu0 %v10349_v46 }
 0xac2   : > { %6799 = vst [vmem:[%s10614_s4 + $0x3b8] sm:$0xff] %v6575_v61  ;;  %6801 = vst [vmem:[%s10614_s4 + $0x3c8] sm:$0xff] %v6577_v62 }
 0xac3   : > { %6800 = vst [vmem:[%s10614_s4 + $0x3c0] sm:$0xff] %v6576_v36  ;;  %6802 = vst [vmem:[%s10614_s4 + $0x3d0] sm:$0xff] %v6578_v53  ;;  %v5840_v54 = vpop.f32.mrb[100].mxu0  ;;  %v6033_v1 = vpop.f32.mrb[100].mxu1 }
 0xac4   : > { %v5841_v5 = vadd.f32 %v5840_v54, %v10597_v7  ;;  %v6034_v17 = vadd.f32 %v6033_v1, %v10599_v14  ;;  %v5842_v4 = vpop.f32.mrb[101].mxu0  ;;  %v6035_v22 = vpop.f32.mrb[101].mxu1 }
 0xac5   : > { %v5843_v11 = vadd.f32 %v5842_v4, %v10603_v20  ;;  %v6036_v39 = vadd.f32 %v6035_v22, %v10605_v30  ;;  %v5844_v6 = vpop.f32.mrb[102].mxu0  ;;  %v6037_v46 = vpop.f32.mrb[102].mxu1 }
 0xac6   : > { %v6582_v31 = vmax.f32 %v5841_v5, 0.0  ;;  %v6584_v15 = vmax.f32 %v6034_v17, 0.0  ;;  %v5845_v49 = vadd.f32 %v5844_v6, %v10597_v7  ;;  %v6038_v32 = vadd.f32 %v6037_v46, %v10599_v14  ;;  %v5846_v24 = vpop.f32.mrb[103].mxu0  ;;  %v6039_v55 = vpop.f32.mrb[103].mxu1 }
 0xac7   : > { %v6583_v37 = vmax.f32 %v5843_v11, 0.0  ;;  %v6585_v56 = vmax.f32 %v6036_v39, 0.0  ;;  %v5847_v41 = vadd.f32 %v5846_v24, %v10603_v20  ;;  %v6040_v50 = vadd.f32 %v6039_v55, %v10605_v30 }
 0xac8   : > { %6806 = vst [vmem:[%s10614_s4 + $0x3f0] sm:$0xff] %v6582_v31  ;;  %6808 = vst [vmem:[%s10614_s4 + $0x400] sm:$0xff] %v6584_v15  ;;  %v6589_v47 = vmax.f32 %v5845_v49, 0.0  ;;  %v6591_v0 = vmax.f32 %v6038_v32, 0.0  ;;  %6360 = vmatmul.mubr.bf16.gmra.mrb[208].mxu0 %v10347_v44 }
 0xac9   : > { %6807 = vst [vmem:[%s10614_s4 + $0x3f8] sm:$0xff] %v6583_v37  ;;  %6809 = vst [vmem:[%s10614_s4 + $0x408] sm:$0xff] %v6585_v56  ;;  %v6590_v40 = vmax.f32 %v5847_v41, 0.0  ;;  %v6592_v3 = vmax.f32 %v6040_v50, 0.0  ;;  %6367 = vmatprep.mubr.bf16.mxu0 %v10374_v13 }
 0xaca   : > { %6813 = vst [vmem:[%s10614_s4 + $0x428] sm:$0xff] %v6589_v47  ;;  %6815 = vst [vmem:[%s10614_s4 + $0x438] sm:$0xff] %v6591_v0 }
 0xacb   : > { %6814 = vst [vmem:[%s10614_s4 + $0x430] sm:$0xff] %v6590_v40  ;;  %6816 = vst [vmem:[%s10614_s4 + $0x440] sm:$0xff] %v6592_v3  ;;  %v5850_v26 = vpop.f32.mrb[104].mxu0  ;;  %v6043_v38 = vpop.f32.mrb[104].mxu1 }
 0xacc   : > { %v5851_v45 = vadd.f32 %v5850_v26, %v10597_v7  ;;  %v6044_v52 = vadd.f32 %v6043_v38, %v10599_v14  ;;  %v5852_v57 = vpop.f32.mrb[105].mxu0  ;;  %v6045_v2 = vpop.f32.mrb[105].mxu1 }
 0xacd   : > { %v5853_v44 = vadd.f32 %v5852_v57, %v10603_v20  ;;  %v6046_v21 = vadd.f32 %v6045_v2, %v10605_v30  ;;  %v5854_v23 = vpop.f32.mrb[106].mxu0  ;;  %v6047_v13 = vpop.f32.mrb[106].mxu1 }
 0xace   : > { %v6596_v8 = vmax.f32 %v5851_v45, 0.0  ;;  %v6598_v16 = vmax.f32 %v6044_v52, 0.0  ;;  %v5855_v29 = vadd.f32 %v5854_v23, %v10597_v7  ;;  %v6048_v35 = vadd.f32 %v6047_v13, %v10599_v14  ;;  %v5856_v51 = vpop.f32.mrb[107].mxu0  ;;  %v6049_v19 = vpop.f32.mrb[107].mxu1 }
 0xacf   : > { %v6597_v48 = vmax.f32 %v5853_v44, 0.0  ;;  %v6599_v9 = vmax.f32 %v6046_v21, 0.0  ;;  %v5857_v27 = vadd.f32 %v5856_v51, %v10603_v20  ;;  %v6050_v12 = vadd.f32 %v6049_v19, %v10605_v30 }
 0xad0   : > { %6820 = vst [vmem:[%s10614_s4 + $0x460] sm:$0xff] %v6596_v8  ;;  %6822 = vst [vmem:[%s10614_s4 + $0x470] sm:$0xff] %v6598_v16  ;;  %v6603_v25 = vmax.f32 %v5855_v29, 0.0  ;;  %v6605_v58 = vmax.f32 %v6048_v35, 0.0  ;;  %6368 = vmatmul.mubr.bf16.gmra.mrb[212].mxu0 %v10372_v10 }
 0xad1   : > { %6821 = vst [vmem:[%s10614_s4 + $0x468] sm:$0xff] %v6597_v48  ;;  %6823 = vst [vmem:[%s10614_s4 + $0x478] sm:$0xff] %v6599_v9  ;;  %v6604_v63 = vmax.f32 %v5857_v27, 0.0  ;;  %v6606_v43 = vmax.f32 %v6050_v12, 0.0 }
 0xad2   : > { %6827 = vst [vmem:[%s10614_s4 + $0x498] sm:$0xff] %v6603_v25  ;;  %6829 = vst [vmem:[%s10614_s4 + $0x4a8] sm:$0xff] %v6605_v58 }
 0xad3   : > { %6828 = vst [vmem:[%s10614_s4 + $0x4a0] sm:$0xff] %v6604_v63  ;;  %6830 = vst [vmem:[%s10614_s4 + $0x4b0] sm:$0xff] %v6606_v43  ;;  %v5860_v59 = vpop.f32.mrb[108].mxu0  ;;  %v6053_v28 = vpop.f32.mrb[108].mxu1 }
 0xad4   : > { %v5861_v60 = vadd.f32 %v5860_v59, %v10597_v7  ;;  %v6054_v42 = vadd.f32 %v6053_v28, %v10599_v14  ;;  %v5862_v33 = vpop.f32.mrb[109].mxu0  ;;  %v6055_v34 = vpop.f32.mrb[109].mxu1 }
 0xad5   : > { %v5863_v10 = vadd.f32 %v5862_v33, %v10603_v20  ;;  %v6056_v61 = vadd.f32 %v6055_v34, %v10605_v30  ;;  %v5864_v62 = vpop.f32.mrb[110].mxu0  ;;  %v6057_v36 = vpop.f32.mrb[110].mxu1 }
 0xad6   : > { %v6610_v53 = vmax.f32 %v5861_v60, 0.0  ;;  %v6612_v54 = vmax.f32 %v6054_v42, 0.0  ;;  %v5865_v1 = vadd.f32 %v5864_v62, %v10597_v7  ;;  %v6058_v5 = vadd.f32 %v6057_v36, %v10599_v14  ;;  %v5866_v17 = vpop.f32.mrb[111].mxu0  ;;  %v6059_v4 = vpop.f32.mrb[111].mxu1 }
 0xad7   : > { %v6611_v22 = vmax.f32 %v5863_v10, 0.0  ;;  %v6613_v11 = vmax.f32 %v6056_v61, 0.0  ;;  %v5867_v39 = vadd.f32 %v5866_v17, %v10603_v20  ;;  %v6060_v6 = vadd.f32 %v6059_v4, %v10605_v30 }
 0xad8   : > { %6834 = vst [vmem:[%s10614_s4 + $0x4d0] sm:$0xff] %v6610_v53  ;;  %6836 = vst [vmem:[%s10614_s4 + $0x4e0] sm:$0xff] %v6612_v54  ;;  %v6617_v46 = vmax.f32 %v5865_v1, 0.0  ;;  %v6619_v31 = vmax.f32 %v6058_v5, 0.0 }
 0xad9   : > { %6835 = vst [vmem:[%s10614_s4 + $0x4d8] sm:$0xff] %v6611_v22  ;;  %6837 = vst [vmem:[%s10614_s4 + $0x4e8] sm:$0xff] %v6613_v11  ;;  %v6618_v15 = vmax.f32 %v5867_v39, 0.0  ;;  %v6620_v49 = vmax.f32 %v6060_v6, 0.0 }
 0xada   : > { %6841 = vst [vmem:[%s10614_s4 + $0x508] sm:$0xff] %v6617_v46  ;;  %6843 = vst [vmem:[%s10614_s4 + $0x518] sm:$0xff] %v6619_v31 }
 0xadb   : > { %6842 = vst [vmem:[%s10614_s4 + $0x510] sm:$0xff] %v6618_v15  ;;  %6844 = vst [vmem:[%s10614_s4 + $0x520] sm:$0xff] %v6620_v49  ;;  %v5870_v32 = vpop.f32.mrb[112].mxu0  ;;  %v6063_v24 = vpop.f32.mrb[112].mxu1 }
 0xadc   : > { %v5871_v55 = vadd.f32 %v5870_v32, %v10597_v7  ;;  %v6064_v37 = vadd.f32 %v6063_v24, %v10599_v14  ;;  %v5872_v56 = vpop.f32.mrb[113].mxu0  ;;  %v6065_v41 = vpop.f32.mrb[113].mxu1 }
 0xadd   : > { %v5873_v50 = vadd.f32 %v5872_v56, %v10603_v20  ;;  %v6066_v47 = vadd.f32 %v6065_v41, %v10605_v30  ;;  %v5874_v0 = vpop.f32.mrb[114].mxu0  ;;  %v6067_v40 = vpop.f32.mrb[114].mxu1 }
 0xade   : > { %v6624_v3 = vmax.f32 %v5871_v55, 0.0  ;;  %v6626_v26 = vmax.f32 %v6064_v37, 0.0  ;;  %v5875_v38 = vadd.f32 %v5874_v0, %v10597_v7  ;;  %v6068_v45 = vadd.f32 %v6067_v40, %v10599_v14  ;;  %v5876_v52 = vpop.f32.mrb[115].mxu0  ;;  %v6069_v57 = vpop.f32.mrb[115].mxu1 }
 0xadf   : > { %v6625_v2 = vmax.f32 %v5873_v50, 0.0  ;;  %v6627_v44 = vmax.f32 %v6066_v47, 0.0  ;;  %v5877_v21 = vadd.f32 %v5876_v52, %v10603_v20  ;;  %v6070_v23 = vadd.f32 %v6069_v57, %v10605_v30 }
 0xae0   : > { %6848 = vst [vmem:[%s10614_s4 + $0x540] sm:$0xff] %v6624_v3  ;;  %6850 = vst [vmem:[%s10614_s4 + $0x550] sm:$0xff] %v6626_v26  ;;  %v6631_v13 = vmax.f32 %v5875_v38, 0.0  ;;  %v6633_v8 = vmax.f32 %v6068_v45, 0.0 }
 0xae1   : > { %6849 = vst [vmem:[%s10614_s4 + $0x548] sm:$0xff] %v6625_v2  ;;  %6851 = vst [vmem:[%s10614_s4 + $0x558] sm:$0xff] %v6627_v44  ;;  %v6632_v16 = vmax.f32 %v5877_v21, 0.0  ;;  %v6634_v29 = vmax.f32 %v6070_v23, 0.0  ;;  %v5123_v23 = vsub.s32 4, %v9400_v18 }
 0xae2   : > { %6855 = vst [vmem:[%s10614_s4 + $0x578] sm:$0xff] %v6631_v13  ;;  %6857 = vst [vmem:[%s10614_s4 + $0x588] sm:$0xff] %v6633_v8 }
 0xae3   : > { %6856 = vst [vmem:[%s10614_s4 + $0x580] sm:$0xff] %v6632_v16  ;;  %6858 = vst [vmem:[%s10614_s4 + $0x590] sm:$0xff] %v6634_v29  ;;  %v5880_v35 = vpop.f32.mrb[116].mxu0  ;;  %v6073_v51 = vpop.f32.mrb[116].mxu1 }
 0xae4   : > { %v5881_v19 = vadd.f32 %v5880_v35, %v10597_v7  ;;  %v6074_v48 = vadd.f32 %v6073_v51, %v10599_v14  ;;  %v5882_v9 = vpop.f32.mrb[117].mxu0  ;;  %v6075_v27 = vpop.f32.mrb[117].mxu1  ;;  %v5127_v35 = vsub.s32 5, %v9400_v18  ;;  %v5131_v51 = vsub.s32 6, %v9400_v18 }
 0xae5   : > { %v5883_v12 = vadd.f32 %v5882_v9, %v10603_v20  ;;  %v6076_v25 = vadd.f32 %v6075_v27, %v10605_v30  ;;  %v5884_v58 = vpop.f32.mrb[118].mxu0  ;;  %v6077_v63 = vpop.f32.mrb[118].mxu1 }
 0xae6   : > { %v6638_v43 = vmax.f32 %v5881_v19, 0.0  ;;  %v6640_v59 = vmax.f32 %v6074_v48, 0.0  ;;  %v5885_v28 = vadd.f32 %v5884_v58, %v10597_v7  ;;  %v6078_v60 = vadd.f32 %v6077_v63, %v10599_v14  ;;  %v5886_v42 = vpop.f32.mrb[119].mxu0  ;;  %v6079_v33 = vpop.f32.mrb[119].mxu1 }
 0xae7   : > { %v6639_v34 = vmax.f32 %v5883_v12, 0.0  ;;  %v6641_v10 = vmax.f32 %v6076_v25, 0.0  ;;  %v5887_v61 = vadd.f32 %v5886_v42, %v10603_v20  ;;  %v6080_v62 = vadd.f32 %v6079_v33, %v10605_v30 }
 0xae8   : > { %6862 = vst [vmem:[%s10614_s4 + $0x5b0] sm:$0xff] %v6638_v43  ;;  %6864 = vst [vmem:[%s10614_s4 + $0x5c0] sm:$0xff] %v6640_v59  ;;  %v6645_v36 = vmax.f32 %v5885_v28, 0.0  ;;  %v6647_v53 = vmax.f32 %v6078_v60, 0.0 }
 0xae9   : > { %6863 = vst [vmem:[%s10614_s4 + $0x5b8] sm:$0xff] %v6639_v34  ;;  %6865 = vst [vmem:[%s10614_s4 + $0x5c8] sm:$0xff] %v6641_v10  ;;  %v6646_v54 = vmax.f32 %v5887_v61, 0.0  ;;  %v6648_v1 = vmax.f32 %v6080_v62, 0.0 }
 0xaea   : > { %6869 = vst [vmem:[%s10614_s4 + $0x5e8] sm:$0xff] %v6645_v36  ;;  %6871 = vst [vmem:[%s10614_s4 + $0x5f8] sm:$0xff] %v6647_v53 }
 0xaeb   : > { %6870 = vst [vmem:[%s10614_s4 + $0x5f0] sm:$0xff] %v6646_v54  ;;  %6872 = vst [vmem:[%s10614_s4 + $0x600] sm:$0xff] %v6648_v1  ;;  %v5890_v5 = vpop.f32.mrb[120].mxu0  ;;  %v6083_v17 = vpop.f32.mrb[120].mxu1 }
 0xaec   : > { %v5891_v4 = vadd.f32 %v5890_v5, %v10597_v7  ;;  %v6084_v22 = vadd.f32 %v6083_v17, %v10599_v14  ;;  %v5892_v11 = vpop.f32.mrb[121].mxu0  ;;  %v6085_v39 = vpop.f32.mrb[121].mxu1 }
 0xaed   : > { %v5893_v6 = vadd.f32 %v5892_v11, %v10603_v20  ;;  %v6086_v46 = vadd.f32 %v6085_v39, %v10605_v30  ;;  %v5894_v31 = vpop.f32.mrb[122].mxu0  ;;  %v6087_v15 = vpop.f32.mrb[122].mxu1 }
 0xaee   : > { %v6652_v49 = vmax.f32 %v5891_v4, 0.0  ;;  %v6654_v32 = vmax.f32 %v6084_v22, 0.0  ;;  %v5895_v24 = vadd.f32 %v5894_v31, %v10597_v7  ;;  %v6088_v55 = vadd.f32 %v6087_v15, %v10599_v14  ;;  %v5896_v37 = vpop.f32.mrb[123].mxu0  ;;  %v6089_v56 = vpop.f32.mrb[123].mxu1 }
 0xaef   : > { %v6653_v41 = vmax.f32 %v5893_v6, 0.0  ;;  %v6655_v50 = vmax.f32 %v6086_v46, 0.0  ;;  %v5897_v47 = vadd.f32 %v5896_v37, %v10603_v20  ;;  %v6090_v0 = vadd.f32 %v6089_v56, %v10605_v30 }
 0xaf0   : > { %6876 = vst [vmem:[%s10614_s4 + $0x620] sm:$0xff] %v6652_v49  ;;  %6878 = vst [vmem:[%s10614_s4 + $0x630] sm:$0xff] %v6654_v32  ;;  %v6659_v40 = vmax.f32 %v5895_v24, 0.0  ;;  %v6661_v3 = vmax.f32 %v6088_v55, 0.0 }
 0xaf1   : > { %6877 = vst [vmem:[%s10614_s4 + $0x628] sm:$0xff] %v6653_v41  ;;  %6879 = vst [vmem:[%s10614_s4 + $0x638] sm:$0xff] %v6655_v50  ;;  %v6660_v26 = vmax.f32 %v5897_v47, 0.0  ;;  %v6662_v38 = vmax.f32 %v6090_v0, 0.0 }
 0xaf2   : > { %6883 = vst [vmem:[%s10614_s4 + $0x658] sm:$0xff] %v6659_v40  ;;  %6885 = vst [vmem:[%s10614_s4 + $0x668] sm:$0xff] %v6661_v3 }
 0xaf3   : > { %6884 = vst [vmem:[%s10614_s4 + $0x660] sm:$0xff] %v6660_v26  ;;  %6886 = vst [vmem:[%s10614_s4 + $0x670] sm:$0xff] %v6662_v38  ;;  %v5900_v45 = vpop.f32.mrb[124].mxu0  ;;  %v6093_v52 = vpop.f32.mrb[124].mxu1 }
 0xaf4   : > { %v5901_v57 = vadd.f32 %v5900_v45, %v10597_v7  ;;  %v6094_v2 = vadd.f32 %v6093_v52, %v10599_v14  ;;  %v5902_v44 = vpop.f32.mrb[125].mxu0  ;;  %v6095_v21 = vpop.f32.mrb[125].mxu1 }
 0xaf5   : > { %v5903_v13 = vadd.f32 %v5902_v44, %v10603_v20  ;;  %v6096_v8 = vadd.f32 %v6095_v21, %v10605_v30  ;;  %v5904_v16 = vpop.f32.mrb[126].mxu0  ;;  %v6097_v29 = vpop.f32.mrb[126].mxu1 }
 0xaf6   : > { %v6666_v19 = vmax.f32 %v5901_v57, 0.0  ;;  %v6668_v48 = vmax.f32 %v6094_v2, 0.0  ;;  %v5905_v9 = vadd.f32 %v5904_v16, %v10597_v7  ;;  %v6098_v27 = vadd.f32 %v6097_v29, %v10599_v14  ;;  %v5906_v12 = vpop.f32.mrb[127].mxu0  ;;  %v6099_v25 = vpop.f32.mrb[127].mxu1  ;;  %v8638_v7 = vld [vmem:[%s11118_s20] sm:$0xff] }
 0xaf7   : > { %v6667_v58 = vmax.f32 %v5903_v13, 0.0  ;;  %v6669_v63 = vmax.f32 %v6096_v8, 0.0  ;;  %v5907_v43 = vadd.f32 %v5906_v12, %v10603_v20  ;;  %v6100_v18 = vadd.f32 %v6099_v25, %v10605_v30 }
 0xaf8   : > { %6890 = vst [vmem:[%s10614_s4 + $0x690] sm:$0xff] %v6666_v19  ;;  %6892 = vst [vmem:[%s10614_s4 + $0x6a0] sm:$0xff] %v6668_v48  ;;  %v6673_v59 = vmax.f32 %v5905_v9, 0.0  ;;  %v6675_v28 = vmax.f32 %v6098_v27, 0.0  ;;  %v10891_v14 = vrot.slane %v8638_v7, %v5123_v23  ;;  %v10895_v33 = vrot.slane %v8638_v7, %v5127_v35 }
 0xaf9   : > { %6891 = vst [vmem:[%s10614_s4 + $0x698] sm:$0xff] %v6667_v58  ;;  %6893 = vst [vmem:[%s10614_s4 + $0x6a8] sm:$0xff] %v6669_v63  ;;  %v6674_v60 = vmax.f32 %v5907_v43, 0.0  ;;  %v6676_v42 = vmax.f32 %v6100_v18, 0.0  ;;  %v10901_v34 = vrot.slane %v8638_v7, %v5131_v51 }
 0xafa   : > { %6897 = vst [vmem:[%s10614_s4 + $0x6c8] sm:$0xff] %v6673_v59  ;;  %6899 = vst [vmem:[%s10614_s4 + $0x6d8] sm:$0xff] %v6675_v28 }
 0xafb   : > { %6898 = vst [vmem:[%s10614_s4 + $0x6d0] sm:$0xff] %v6674_v60  ;;  %6900 = vst [vmem:[%s10614_s4 + $0x6e0] sm:$0xff] %v6676_v42  ;;  %v6136_v20 = vpop.f32.mrb[128].mxu0  ;;  %v7592_v30 = vpop.f32.mrb[128].mxu1 }
 0xafc   : > { %v6137_v10 = vadd.f32 %v6136_v20, %v10891_v14  ;;  %v6138_v61 = vpop.f32.mrb[129].mxu0  ;;  %v7593_v62 = vpop.f32.mrb[129].mxu1 }
 0xafd   : > { %v6139_v36 = vadd.f32 %v6138_v61, %v10895_v33  ;;  %v7594_v53 = vadd.f32 %v7593_v62, %v7592_v30  ;;  %v6140_v54 = vpop.f32.mrb[130].mxu0  ;;  %v7595_v1 = vpop.f32.mrb[130].mxu1 }
 0xafe   : > { %v6460_v5 = vmax.f32 %v6137_v10, 0.0  ;;  %v6141_v17 = vadd.f32 %v6140_v54, %v10891_v14  ;;  %v6142_v4 = vpop.f32.mrb[131].mxu0  ;;  %v7596_v22 = vpop.f32.mrb[131].mxu1 }
 0xaff   : > { %v6461_v11 = vmax.f32 %v6139_v36, 0.0  ;;  %v6378_v39 = vadd.f32 %v7594_v53, %v10901_v34  ;;  %v6143_v6 = vadd.f32 %v6142_v4, %v10895_v33  ;;  %v7597_v46 = vadd.f32 %v7596_v22, %v7595_v1 }
 0xb00   : > { %6684 = vst [vmem:[%s10614_s4 + $0x20] sm:$0xff] %v6460_v5  ;;  %v6467_v31 = vmax.f32 %v6141_v17, 0.0 }
 0xb01   : > { %6685 = vst [vmem:[%s10614_s4 + $0x28] sm:$0xff] %v6461_v11  ;;  %v6546_v15 = vmax.f32 %v6378_v39, 0.0  ;;  %v6468_v49 = vmax.f32 %v6143_v6, 0.0  ;;  %v6381_v32 = vadd.f32 %v7597_v46, %v10901_v34 }
 0xb02   : > { %6691 = vst [vmem:[%s10614_s4 + $0x58] sm:$0xff] %v6467_v31 }
 0xb03   : > { %6770 = vst [vmem:[%s10614_s4 + $0x2d0] sm:$0xff] %v6546_v15  ;;  %6692 = vst [vmem:[%s10614_s4 + $0x60] sm:$0xff] %v6468_v49  ;;  %v6553_v24 = vmax.f32 %v6381_v32, 0.0  ;;  %v6146_v55 = vpop.f32.mrb[132].mxu0  ;;  %v7598_v37 = vpop.f32.mrb[132].mxu1 }
 0xb04   : > { %v6147_v56 = vadd.f32 %v6146_v55, %v10891_v14  ;;  %v6148_v41 = vpop.f32.mrb[133].mxu0  ;;  %v7599_v50 = vpop.f32.mrb[133].mxu1 }
 0xb05   : > { %6777 = vst [vmem:[%s10614_s4 + $0x308] sm:$0xff] %v6553_v24  ;;  %v6149_v47 = vadd.f32 %v6148_v41, %v10895_v33  ;;  %v7600_v0 = vadd.f32 %v7599_v50, %v7598_v37  ;;  %v6150_v40 = vpop.f32.mrb[134].mxu0  ;;  %v7601_v3 = vpop.f32.mrb[134].mxu1 }
 0xb06   : > { %v6474_v26 = vmax.f32 %v6147_v56, 0.0  ;;  %v6151_v38 = vadd.f32 %v6150_v40, %v10891_v14  ;;  %v6152_v45 = vpop.f32.mrb[135].mxu0  ;;  %v7602_v52 = vpop.f32.mrb[135].mxu1 }
 0xb07   : > { %v6475_v57 = vmax.f32 %v6149_v47, 0.0  ;;  %v6386_v2 = vadd.f32 %v7600_v0, %v10901_v34  ;;  %v6153_v44 = vadd.f32 %v6152_v45, %v10895_v33  ;;  %v7603_v21 = vadd.f32 %v7602_v52, %v7601_v3 }
 0xb08   : > { %6698 = vst [vmem:[%s10614_s4 + $0x90] sm:$0xff] %v6474_v26  ;;  %v6481_v23 = vmax.f32 %v6151_v38, 0.0 }
 0xb09   : > { %6699 = vst [vmem:[%s10614_s4 + $0x98] sm:$0xff] %v6475_v57  ;;  %v6560_v13 = vmax.f32 %v6386_v2, 0.0  ;;  %v6482_v8 = vmax.f32 %v6153_v44, 0.0  ;;  %v6389_v16 = vadd.f32 %v7603_v21, %v10901_v34 }
 0xb0a   : > { %6705 = vst [vmem:[%s10614_s4 + $0xc8] sm:$0xff] %v6481_v23 }
 0xb0b   : > { %6784 = vst [vmem:[%s10614_s4 + $0x340] sm:$0xff] %v6560_v13  ;;  %6706 = vst [vmem:[%s10614_s4 + $0xd0] sm:$0xff] %v6482_v8  ;;  %v6567_v29 = vmax.f32 %v6389_v16, 0.0  ;;  %v6156_v35 = vpop.f32.mrb[136].mxu0  ;;  %v7604_v51 = vpop.f32.mrb[136].mxu1 }
 0xb0c   : > { %v6157_v19 = vadd.f32 %v6156_v35, %v10891_v14  ;;  %v6158_v48 = vpop.f32.mrb[137].mxu0  ;;  %v7605_v9 = vpop.f32.mrb[137].mxu1 }
 0xb0d   : > { %6791 = vst [vmem:[%s10614_s4 + $0x378] sm:$0xff] %v6567_v29  ;;  %v6159_v27 = vadd.f32 %v6158_v48, %v10895_v33  ;;  %v7606_v12 = vadd.f32 %v7605_v9, %v7604_v51  ;;  %v6160_v25 = vpop.f32.mrb[138].mxu0  ;;  %v7607_v58 = vpop.f32.mrb[138].mxu1 }
 0xb0e   : > { %v6488_v63 = vmax.f32 %v6157_v19, 0.0  ;;  %v6161_v43 = vadd.f32 %v6160_v25, %v10891_v14  ;;  %v6162_v18 = vpop.f32.mrb[139].mxu0  ;;  %v7608_v59 = vpop.f32.mrb[139].mxu1 }
 0xb0f   : > { %v6489_v28 = vmax.f32 %v6159_v27, 0.0  ;;  %v6394_v7 = vadd.f32 %v7606_v12, %v10901_v34  ;;  %v6163_v60 = vadd.f32 %v6162_v18, %v10895_v33  ;;  %v7609_v42 = vadd.f32 %v7608_v59, %v7607_v58 }
 0xb10   : > { %6712 = vst [vmem:[%s10614_s4 + $0x100] sm:$0xff] %v6488_v63  ;;  %v6495_v20 = vmax.f32 %v6161_v43, 0.0 }
 0xb11   : > { %6713 = vst [vmem:[%s10614_s4 + $0x108] sm:$0xff] %v6489_v28  ;;  %v6574_v30 = vmax.f32 %v6394_v7, 0.0  ;;  %v6496_v10 = vmax.f32 %v6163_v60, 0.0  ;;  %v6397_v61 = vadd.f32 %v7609_v42, %v10901_v34 }
 0xb12   : > { %6719 = vst [vmem:[%s10614_s4 + $0x138] sm:$0xff] %v6495_v20 }
 0xb13   : > { %6798 = vst [vmem:[%s10614_s4 + $0x3b0] sm:$0xff] %v6574_v30  ;;  %6720 = vst [vmem:[%s10614_s4 + $0x140] sm:$0xff] %v6496_v10  ;;  %v6581_v62 = vmax.f32 %v6397_v61, 0.0  ;;  %v6166_v36 = vpop.f32.mrb[140].mxu0  ;;  %v7610_v53 = vpop.f32.mrb[140].mxu1 }
 0xb14   : > { %v6167_v54 = vadd.f32 %v6166_v36, %v10891_v14  ;;  %v6168_v1 = vpop.f32.mrb[141].mxu0  ;;  %v7611_v5 = vpop.f32.mrb[141].mxu1 }
 0xb15   : > { %6805 = vst [vmem:[%s10614_s4 + $0x3e8] sm:$0xff] %v6581_v62  ;;  %v6169_v17 = vadd.f32 %v6168_v1, %v10895_v33  ;;  %v7612_v4 = vadd.f32 %v7611_v5, %v7610_v53  ;;  %v6170_v22 = vpop.f32.mrb[142].mxu0  ;;  %v7613_v11 = vpop.f32.mrb[142].mxu1 }
 0xb16   : > { %v6502_v39 = vmax.f32 %v6167_v54, 0.0  ;;  %v6171_v6 = vadd.f32 %v6170_v22, %v10891_v14  ;;  %v6172_v46 = vpop.f32.mrb[143].mxu0  ;;  %v7614_v31 = vpop.f32.mrb[143].mxu1 }
 0xb17   : > { %v6503_v15 = vmax.f32 %v6169_v17, 0.0  ;;  %v6402_v49 = vadd.f32 %v7612_v4, %v10901_v34  ;;  %v6173_v32 = vadd.f32 %v6172_v46, %v10895_v33  ;;  %v7615_v24 = vadd.f32 %v7614_v31, %v7613_v11 }
 0xb18   : > { %6726 = vst [vmem:[%s10614_s4 + $0x170] sm:$0xff] %v6502_v39  ;;  %v6509_v55 = vmax.f32 %v6171_v6, 0.0 }
 0xb19   : > { %6727 = vst [vmem:[%s10614_s4 + $0x178] sm:$0xff] %v6503_v15  ;;  %v6588_v37 = vmax.f32 %v6402_v49, 0.0  ;;  %v6510_v56 = vmax.f32 %v6173_v32, 0.0  ;;  %v6405_v41 = vadd.f32 %v7615_v24, %v10901_v34 }
 0xb1a   : > { %6733 = vst [vmem:[%s10614_s4 + $0x1a8] sm:$0xff] %v6509_v55 }
 0xb1b   : > { %6812 = vst [vmem:[%s10614_s4 + $0x420] sm:$0xff] %v6588_v37  ;;  %6734 = vst [vmem:[%s10614_s4 + $0x1b0] sm:$0xff] %v6510_v56  ;;  %v6595_v50 = vmax.f32 %v6405_v41, 0.0  ;;  %v6176_v47 = vpop.f32.mrb[144].mxu0  ;;  %v7616_v0 = vpop.f32.mrb[144].mxu1 }
 0xb1c   : > { %v6177_v40 = vadd.f32 %v6176_v47, %v10891_v14  ;;  %v6178_v3 = vpop.f32.mrb[145].mxu0  ;;  %v7617_v26 = vpop.f32.mrb[145].mxu1 }
 0xb1d   : > { %6819 = vst [vmem:[%s10614_s4 + $0x458] sm:$0xff] %v6595_v50  ;;  %v6179_v38 = vadd.f32 %v6178_v3, %v10895_v33  ;;  %v7618_v45 = vadd.f32 %v7617_v26, %v7616_v0  ;;  %v6180_v52 = vpop.f32.mrb[146].mxu0  ;;  %v7619_v57 = vpop.f32.mrb[146].mxu1 }
 0xb1e   : > { %v6516_v2 = vmax.f32 %v6177_v40, 0.0  ;;  %v6181_v44 = vadd.f32 %v6180_v52, %v10891_v14  ;;  %v6182_v21 = vpop.f32.mrb[147].mxu0  ;;  %v7620_v23 = vpop.f32.mrb[147].mxu1 }
 0xb1f   : > { %v6517_v13 = vmax.f32 %v6179_v38, 0.0  ;;  %v6410_v8 = vadd.f32 %v7618_v45, %v10901_v34  ;;  %v6183_v16 = vadd.f32 %v6182_v21, %v10895_v33  ;;  %v7621_v29 = vadd.f32 %v7620_v23, %v7619_v57 }
 0xb20   : > { %6740 = vst [vmem:[%s10614_s4 + $0x1e0] sm:$0xff] %v6516_v2  ;;  %v6523_v35 = vmax.f32 %v6181_v44, 0.0 }
 0xb21   : > { %6741 = vst [vmem:[%s10614_s4 + $0x1e8] sm:$0xff] %v6517_v13  ;;  %v6602_v51 = vmax.f32 %v6410_v8, 0.0  ;;  %v6524_v19 = vmax.f32 %v6183_v16, 0.0  ;;  %v6413_v48 = vadd.f32 %v7621_v29, %v10901_v34 }
 0xb22   : > { %6747 = vst [vmem:[%s10614_s4 + $0x218] sm:$0xff] %v6523_v35 }
 0xb23   : > { %6826 = vst [vmem:[%s10614_s4 + $0x490] sm:$0xff] %v6602_v51  ;;  %6748 = vst [vmem:[%s10614_s4 + $0x220] sm:$0xff] %v6524_v19  ;;  %v6609_v9 = vmax.f32 %v6413_v48, 0.0  ;;  %v6186_v27 = vpop.f32.mrb[148].mxu0  ;;  %v7622_v12 = vpop.f32.mrb[148].mxu1 }
 0xb24   : > { %v6187_v25 = vadd.f32 %v6186_v27, %v10891_v14  ;;  %v6188_v58 = vpop.f32.mrb[149].mxu0  ;;  %v7623_v63 = vpop.f32.mrb[149].mxu1 }
 0xb25   : > { %6833 = vst [vmem:[%s10614_s4 + $0x4c8] sm:$0xff] %v6609_v9  ;;  %v6189_v43 = vadd.f32 %v6188_v58, %v10895_v33  ;;  %v7624_v18 = vadd.f32 %v7623_v63, %v7622_v12  ;;  %v6190_v59 = vpop.f32.mrb[150].mxu0  ;;  %v7625_v28 = vpop.f32.mrb[150].mxu1 }
 0xb26   : > { %v6530_v7 = vmax.f32 %v6187_v25, 0.0  ;;  %v6191_v60 = vadd.f32 %v6190_v59, %v10891_v14  ;;  %v6192_v42 = vpop.f32.mrb[151].mxu0  ;;  %v7626_v20 = vpop.f32.mrb[151].mxu1 }
 0xb27   : > { %v6531_v30 = vmax.f32 %v6189_v43, 0.0  ;;  %v6418_v10 = vadd.f32 %v7624_v18, %v10901_v34  ;;  %v6193_v61 = vadd.f32 %v6192_v42, %v10895_v33  ;;  %v7627_v62 = vadd.f32 %v7626_v20, %v7625_v28 }
 0xb28   : > { %6754 = vst [vmem:[%s10614_s4 + $0x250] sm:$0xff] %v6530_v7  ;;  %v6537_v36 = vmax.f32 %v6191_v60, 0.0 }
 0xb29   : > { %6755 = vst [vmem:[%s10614_s4 + $0x258] sm:$0xff] %v6531_v30  ;;  %v6616_v53 = vmax.f32 %v6418_v10, 0.0  ;;  %v6538_v54 = vmax.f32 %v6193_v61, 0.0  ;;  %v6421_v1 = vadd.f32 %v7627_v62, %v10901_v34 }
 0xb2a   : > { %6761 = vst [vmem:[%s10614_s4 + $0x288] sm:$0xff] %v6537_v36 }
 0xb2b   : > { %6840 = vst [vmem:[%s10614_s4 + $0x500] sm:$0xff] %v6616_v53  ;;  %6762 = vst [vmem:[%s10614_s4 + $0x290] sm:$0xff] %v6538_v54  ;;  %v6623_v5 = vmax.f32 %v6421_v1, 0.0  ;;  %v6196_v17 = vpop.f32.mrb[152].mxu0  ;;  %v7628_v4 = vpop.f32.mrb[152].mxu1 }
 0xb2c   : > { %v6197_v22 = vadd.f32 %v6196_v17, %v10891_v14  ;;  %v6198_v11 = vpop.f32.mrb[153].mxu0  ;;  %v7629_v39 = vpop.f32.mrb[153].mxu1 }
 0xb2d   : > { %6847 = vst [vmem:[%s10614_s4 + $0x538] sm:$0xff] %v6623_v5  ;;  %v6199_v6 = vadd.f32 %v6198_v11, %v10895_v33  ;;  %v7630_v46 = vadd.f32 %v7629_v39, %v7628_v4  ;;  %v6200_v31 = vpop.f32.mrb[154].mxu0  ;;  %v7631_v15 = vpop.f32.mrb[154].mxu1 }
 0xb2e   : > { %v6544_v49 = vmax.f32 %v6197_v22, 0.0  ;;  %v6201_v32 = vadd.f32 %v6200_v31, %v10891_v14  ;;  %v6202_v24 = vpop.f32.mrb[155].mxu0  ;;  %v7632_v55 = vpop.f32.mrb[155].mxu1 }
 0xb2f   : > { %v6545_v37 = vmax.f32 %v6199_v6, 0.0  ;;  %v6426_v56 = vadd.f32 %v7630_v46, %v10901_v34  ;;  %v6203_v41 = vadd.f32 %v6202_v24, %v10895_v33  ;;  %v7633_v50 = vadd.f32 %v7632_v55, %v7631_v15 }
 0xb30   : > { %6768 = vst [vmem:[%s10614_s4 + $0x2c0] sm:$0xff] %v6544_v49  ;;  %v6551_v47 = vmax.f32 %v6201_v32, 0.0 }
 0xb31   : > { %6769 = vst [vmem:[%s10614_s4 + $0x2c8] sm:$0xff] %v6545_v37  ;;  %v6630_v0 = vmax.f32 %v6426_v56, 0.0  ;;  %v6552_v40 = vmax.f32 %v6203_v41, 0.0  ;;  %v6429_v3 = vadd.f32 %v7633_v50, %v10901_v34 }
 0xb32   : > { %6775 = vst [vmem:[%s10614_s4 + $0x2f8] sm:$0xff] %v6551_v47 }
 0xb33   : > { %6854 = vst [vmem:[%s10614_s4 + $0x570] sm:$0xff] %v6630_v0  ;;  %6776 = vst [vmem:[%s10614_s4 + $0x300] sm:$0xff] %v6552_v40  ;;  %v6637_v26 = vmax.f32 %v6429_v3, 0.0  ;;  %v6206_v38 = vpop.f32.mrb[156].mxu0  ;;  %v7634_v45 = vpop.f32.mrb[156].mxu1 }
 0xb34   : > { %v6207_v52 = vadd.f32 %v6206_v38, %v10891_v14  ;;  %v6208_v57 = vpop.f32.mrb[157].mxu0  ;;  %v7635_v2 = vpop.f32.mrb[157].mxu1 }
 0xb35   : > { %6861 = vst [vmem:[%s10614_s4 + $0x5a8] sm:$0xff] %v6637_v26  ;;  %v6209_v44 = vadd.f32 %v6208_v57, %v10895_v33  ;;  %v7636_v21 = vadd.f32 %v7635_v2, %v7634_v45  ;;  %v6210_v23 = vpop.f32.mrb[158].mxu0  ;;  %v7637_v13 = vpop.f32.mrb[158].mxu1 }
 0xb36   : > { %v6558_v8 = vmax.f32 %v6207_v52, 0.0  ;;  %v6211_v16 = vadd.f32 %v6210_v23, %v10891_v14  ;;  %v6212_v29 = vpop.f32.mrb[159].mxu0  ;;  %v7638_v35 = vpop.f32.mrb[159].mxu1 }
 0xb37   : > { %v6559_v51 = vmax.f32 %v6209_v44, 0.0  ;;  %v6434_v19 = vadd.f32 %v7636_v21, %v10901_v34  ;;  %v6213_v48 = vadd.f32 %v6212_v29, %v10895_v33  ;;  %v7639_v9 = vadd.f32 %v7638_v35, %v7637_v13 }
 0xb38   : > { %6782 = vst [vmem:[%s10614_s4 + $0x330] sm:$0xff] %v6558_v8  ;;  %v6565_v27 = vmax.f32 %v6211_v16, 0.0 }
 0xb39   : > { %6783 = vst [vmem:[%s10614_s4 + $0x338] sm:$0xff] %v6559_v51  ;;  %v6644_v12 = vmax.f32 %v6434_v19, 0.0  ;;  %v6566_v25 = vmax.f32 %v6213_v48, 0.0  ;;  %v6437_v58 = vadd.f32 %v7639_v9, %v10901_v34 }
 0xb3a   : > { %6789 = vst [vmem:[%s10614_s4 + $0x368] sm:$0xff] %v6565_v27 }
 0xb3b   : > { %6868 = vst [vmem:[%s10614_s4 + $0x5e0] sm:$0xff] %v6644_v12  ;;  %6790 = vst [vmem:[%s10614_s4 + $0x370] sm:$0xff] %v6566_v25  ;;  %v6651_v63 = vmax.f32 %v6437_v58, 0.0  ;;  %v6216_v43 = vpop.f32.mrb[160].mxu0  ;;  %v7640_v18 = vpop.f32.mrb[160].mxu1 }
 0xb3c   : > { %v6217_v59 = vadd.f32 %v6216_v43, %v10891_v14  ;;  %v6218_v28 = vpop.f32.mrb[161].mxu0  ;;  %v7641_v7 = vpop.f32.mrb[161].mxu1 }
 0xb3d   : > { %6875 = vst [vmem:[%s10614_s4 + $0x618] sm:$0xff] %v6651_v63  ;;  %v6219_v60 = vadd.f32 %v6218_v28, %v10895_v33  ;;  %v7642_v42 = vadd.f32 %v7641_v7, %v7640_v18  ;;  %v6220_v20 = vpop.f32.mrb[162].mxu0  ;;  %v7643_v30 = vpop.f32.mrb[162].mxu1 }
 0xb3e   : > { %v6572_v10 = vmax.f32 %v6217_v59, 0.0  ;;  %v6221_v61 = vadd.f32 %v6220_v20, %v10891_v14  ;;  %v6222_v62 = vpop.f32.mrb[163].mxu0  ;;  %v7644_v36 = vpop.f32.mrb[163].mxu1 }
 0xb3f   : > { %v6573_v53 = vmax.f32 %v6219_v60, 0.0  ;;  %v6442_v54 = vadd.f32 %v7642_v42, %v10901_v34  ;;  %v6223_v1 = vadd.f32 %v6222_v62, %v10895_v33  ;;  %v7645_v5 = vadd.f32 %v7644_v36, %v7643_v30 }
 0xb40   : > { %6796 = vst [vmem:[%s10614_s4 + $0x3a0] sm:$0xff] %v6572_v10  ;;  %v6579_v17 = vmax.f32 %v6221_v61, 0.0 }
 0xb41   : > { %6797 = vst [vmem:[%s10614_s4 + $0x3a8] sm:$0xff] %v6573_v53  ;;  %v6658_v4 = vmax.f32 %v6442_v54, 0.0  ;;  %v6580_v22 = vmax.f32 %v6223_v1, 0.0  ;;  %v6445_v11 = vadd.f32 %v7645_v5, %v10901_v34 }
 0xb42   : > { %6803 = vst [vmem:[%s10614_s4 + $0x3d8] sm:$0xff] %v6579_v17 }
 0xb43   : > { %6882 = vst [vmem:[%s10614_s4 + $0x650] sm:$0xff] %v6658_v4  ;;  %6804 = vst [vmem:[%s10614_s4 + $0x3e0] sm:$0xff] %v6580_v22  ;;  %v6665_v39 = vmax.f32 %v6445_v11, 0.0  ;;  %v6226_v6 = vpop.f32.mrb[164].mxu0  ;;  %v7646_v46 = vpop.f32.mrb[164].mxu1 }
 0xb44   : > { %v6227_v31 = vadd.f32 %v6226_v6, %v10891_v14  ;;  %v6228_v15 = vpop.f32.mrb[165].mxu0  ;;  %v7647_v49 = vpop.f32.mrb[165].mxu1 }
 0xb45   : > { %6889 = vst [vmem:[%s10614_s4 + $0x688] sm:$0xff] %v6665_v39  ;;  %v6229_v32 = vadd.f32 %v6228_v15, %v10895_v33  ;;  %v7648_v24 = vadd.f32 %v7647_v49, %v7646_v46  ;;  %v6230_v55 = vpop.f32.mrb[166].mxu0  ;;  %v7649_v37 = vpop.f32.mrb[166].mxu1 }
 0xb46   : > { %v6586_v56 = vmax.f32 %v6227_v31, 0.0  ;;  %v6231_v41 = vadd.f32 %v6230_v55, %v10891_v14  ;;  %v6232_v50 = vpop.f32.mrb[167].mxu0  ;;  %v7650_v47 = vpop.f32.mrb[167].mxu1 }
 0xb47   : > { %v6587_v0 = vmax.f32 %v6229_v32, 0.0  ;;  %v6450_v40 = vadd.f32 %v7648_v24, %v10901_v34  ;;  %v6233_v3 = vadd.f32 %v6232_v50, %v10895_v33  ;;  %v7651_v26 = vadd.f32 %v7650_v47, %v7649_v37 }
 0xb48   : > { %6810 = vst [vmem:[%s10614_s4 + $0x410] sm:$0xff] %v6586_v56  ;;  %v6593_v38 = vmax.f32 %v6231_v41, 0.0 }
 0xb49   : > { %6811 = vst [vmem:[%s10614_s4 + $0x418] sm:$0xff] %v6587_v0  ;;  %v6672_v45 = vmax.f32 %v6450_v40, 0.0  ;;  %v6594_v52 = vmax.f32 %v6233_v3, 0.0  ;;  %v6453_v57 = vadd.f32 %v7651_v26, %v10901_v34 }
 0xb4a   : > { %6817 = vst [vmem:[%s10614_s4 + $0x448] sm:$0xff] %v6593_v38 }
 0xb4b   : > { %6896 = vst [vmem:[%s10614_s4 + $0x6c0] sm:$0xff] %v6672_v45  ;;  %6818 = vst [vmem:[%s10614_s4 + $0x450] sm:$0xff] %v6594_v52  ;;  %v6679_v2 = vmax.f32 %v6453_v57, 0.0  ;;  %v6236_v44 = vpop.f32.mrb[168].mxu0 }
 0xb4c   : > { %v6237_v21 = vadd.f32 %v6236_v44, %v10891_v14  ;;  %v6238_v23 = vpop.f32.mrb[169].mxu0 }
 0xb4d   : > { %6903 = vst [vmem:[%s10614_s4 + $0x6f8] sm:$0xff] %v6679_v2  ;;  %v6239_v13 = vadd.f32 %v6238_v23, %v10895_v33  ;;  %v6240_v8 = vpop.f32.mrb[170].mxu0 }
 0xb4e   : > { %v6600_v16 = vmax.f32 %v6237_v21, 0.0  ;;  %v6241_v29 = vadd.f32 %v6240_v8, %v10891_v14  ;;  %v6242_v35 = vpop.f32.mrb[171].mxu0 }
 0xb4f   : > { %v6601_v51 = vmax.f32 %v6239_v13, 0.0  ;;  %v6243_v19 = vadd.f32 %v6242_v35, %v10895_v33 }
 0xb50   : > { %6824 = vst [vmem:[%s10614_s4 + $0x480] sm:$0xff] %v6600_v16  ;;  %v6607_v48 = vmax.f32 %v6241_v29, 0.0 }
 0xb51   : > { %6825 = vst [vmem:[%s10614_s4 + $0x488] sm:$0xff] %v6601_v51  ;;  %v6608_v9 = vmax.f32 %v6243_v19, 0.0 }
 0xb52   : > { %6831 = vst [vmem:[%s10614_s4 + $0x4b8] sm:$0xff] %v6607_v48 }
 0xb53   : > { %6832 = vst [vmem:[%s10614_s4 + $0x4c0] sm:$0xff] %v6608_v9  ;;  %v6246_v27 = vpop.f32.mrb[172].mxu0 }
 0xb54   : > { %v6247_v12 = vadd.f32 %v6246_v27, %v10891_v14  ;;  %v6248_v25 = vpop.f32.mrb[173].mxu0 }
 0xb55   : > { %v6249_v58 = vadd.f32 %v6248_v25, %v10895_v33  ;;  %v6250_v63 = vpop.f32.mrb[174].mxu0 }
 0xb56   : > { %v6614_v43 = vmax.f32 %v6247_v12, 0.0  ;;  %v6251_v18 = vadd.f32 %v6250_v63, %v10891_v14  ;;  %v6252_v59 = vpop.f32.mrb[175].mxu0 }
 0xb57   : > { %v6615_v28 = vmax.f32 %v6249_v58, 0.0  ;;  %v6253_v7 = vadd.f32 %v6252_v59, %v10895_v33 }
 0xb58   : > { %6838 = vst [vmem:[%s10614_s4 + $0x4f0] sm:$0xff] %v6614_v43  ;;  %v6621_v60 = vmax.f32 %v6251_v18, 0.0 }
 0xb59   : > { %6839 = vst [vmem:[%s10614_s4 + $0x4f8] sm:$0xff] %v6615_v28  ;;  %v6622_v42 = vmax.f32 %v6253_v7, 0.0 }
 0xb5a   : > { %6845 = vst [vmem:[%s10614_s4 + $0x528] sm:$0xff] %v6621_v60 }
 0xb5b   : > { %6846 = vst [vmem:[%s10614_s4 + $0x530] sm:$0xff] %v6622_v42  ;;  %v6256_v20 = vpop.f32.mrb[176].mxu0 }
 0xb5c   : > { %v6257_v30 = vadd.f32 %v6256_v20, %v10891_v14  ;;  %v6258_v10 = vpop.f32.mrb[177].mxu0 }
 0xb5d   : > { %v6259_v61 = vadd.f32 %v6258_v10, %v10895_v33  ;;  %v6260_v62 = vpop.f32.mrb[178].mxu0 }
 0xb5e   : > { %v6628_v36 = vmax.f32 %v6257_v30, 0.0  ;;  %v6261_v53 = vadd.f32 %v6260_v62, %v10891_v14  ;;  %v6262_v54 = vpop.f32.mrb[179].mxu0 }
 0xb5f   : > { %v6629_v1 = vmax.f32 %v6259_v61, 0.0  ;;  %v6263_v5 = vadd.f32 %v6262_v54, %v10895_v33 }
 0xb60   : > { %6852 = vst [vmem:[%s10614_s4 + $0x560] sm:$0xff] %v6628_v36  ;;  %v6635_v17 = vmax.f32 %v6261_v53, 0.0 }
 0xb61   : > { %6853 = vst [vmem:[%s10614_s4 + $0x568] sm:$0xff] %v6629_v1  ;;  %v6636_v4 = vmax.f32 %v6263_v5, 0.0 }
 0xb62   : > { %6859 = vst [vmem:[%s10614_s4 + $0x598] sm:$0xff] %v6635_v17 }
 0xb63   : > { %6860 = vst [vmem:[%s10614_s4 + $0x5a0] sm:$0xff] %v6636_v4  ;;  %v6266_v22 = vpop.f32.mrb[180].mxu0 }
 0xb64   : > { %v6267_v11 = vadd.f32 %v6266_v22, %v10891_v14  ;;  %v6268_v39 = vpop.f32.mrb[181].mxu0 }
 0xb65   : > { %v6269_v6 = vadd.f32 %v6268_v39, %v10895_v33  ;;  %v6270_v46 = vpop.f32.mrb[182].mxu0 }
 0xb66   : > { %v6642_v31 = vmax.f32 %v6267_v11, 0.0  ;;  %v6271_v15 = vadd.f32 %v6270_v46, %v10891_v14  ;;  %v6272_v49 = vpop.f32.mrb[183].mxu0 }
 0xb67   : > { %v6643_v32 = vmax.f32 %v6269_v6, 0.0  ;;  %v6273_v24 = vadd.f32 %v6272_v49, %v10895_v33 }
 0xb68   : > { %6866 = vst [vmem:[%s10614_s4 + $0x5d0] sm:$0xff] %v6642_v31  ;;  %v6649_v55 = vmax.f32 %v6271_v15, 0.0 }
 0xb69   : > { %6867 = vst [vmem:[%s10614_s4 + $0x5d8] sm:$0xff] %v6643_v32  ;;  %v6650_v37 = vmax.f32 %v6273_v24, 0.0 }
 0xb6a   : > { %6873 = vst [vmem:[%s10614_s4 + $0x608] sm:$0xff] %v6649_v55 }
 0xb6b   : > { %6874 = vst [vmem:[%s10614_s4 + $0x610] sm:$0xff] %v6650_v37  ;;  %v6276_v56 = vpop.f32.mrb[184].mxu0 }
 0xb6c   : > { %v6277_v41 = vadd.f32 %v6276_v56, %v10891_v14  ;;  %v6278_v50 = vpop.f32.mrb[185].mxu0 }
 0xb6d   : > { %v6279_v47 = vadd.f32 %v6278_v50, %v10895_v33  ;;  %v6280_v0 = vpop.f32.mrb[186].mxu0 }
 0xb6e   : > { %v6656_v40 = vmax.f32 %v6277_v41, 0.0  ;;  %v6281_v3 = vadd.f32 %v6280_v0, %v10891_v14  ;;  %v6282_v26 = vpop.f32.mrb[187].mxu0 }
 0xb6f   : > { %v6657_v38 = vmax.f32 %v6279_v47, 0.0  ;;  %v6283_v45 = vadd.f32 %v6282_v26, %v10895_v33 }
 0xb70   : > { %6880 = vst [vmem:[%s10614_s4 + $0x640] sm:$0xff] %v6656_v40  ;;  %v6663_v52 = vmax.f32 %v6281_v3, 0.0 }
 0xb71   : > { %6881 = vst [vmem:[%s10614_s4 + $0x648] sm:$0xff] %v6657_v38  ;;  %v6664_v57 = vmax.f32 %v6283_v45, 0.0 }
 0xb72   : > { %6887 = vst [vmem:[%s10614_s4 + $0x678] sm:$0xff] %v6663_v52 }
 0xb73   : > { %6888 = vst [vmem:[%s10614_s4 + $0x680] sm:$0xff] %v6664_v57  ;;  %v6286_v2 = vpop.f32.mrb[188].mxu0 }
 0xb74   : > { %v6287_v44 = vadd.f32 %v6286_v2, %v10891_v14  ;;  %v6288_v21 = vpop.f32.mrb[189].mxu0 }
 0xb75   : > { %v6289_v23 = vadd.f32 %v6288_v21, %v10895_v33  ;;  %v6290_v13 = vpop.f32.mrb[190].mxu0 }
 0xb76   : > { %v6670_v8 = vmax.f32 %v6287_v44, 0.0  ;;  %v6291_v16 = vadd.f32 %v6290_v13, %v10891_v14  ;;  %v6292_v29 = vpop.f32.mrb[191].mxu0 }
 0xb77   : > { %v6671_v35 = vmax.f32 %v6289_v23, 0.0  ;;  %v6293_v51 = vadd.f32 %v6292_v29, %v10895_v33 }
 0xb78   : > { %6894 = vst [vmem:[%s10614_s4 + $0x6b0] sm:$0xff] %v6670_v8  ;;  %v6677_v19 = vmax.f32 %v6291_v16, 0.0 }
 0xb79   : > { %6895 = vst [vmem:[%s10614_s4 + $0x6b8] sm:$0xff] %v6671_v35  ;;  %v6678_v48 = vmax.f32 %v6293_v51, 0.0 }
 0xb7a   : > { %6901 = vst [vmem:[%s10614_s4 + $0x6e8] sm:$0xff] %v6677_v19 }
 0xb7b   : > { %6902 = vst [vmem:[%s10614_s4 + $0x6f0] sm:$0xff] %v6678_v48  ;;  %v7556_v9 = vpop.f32.mrb[192].mxu0 }
 0xb7c   : > { %v7557_v27 = vpop.f32.mrb[193].mxu0 }
 0xb7d   : > { %v7558_v12 = vadd.f32 %v7557_v27, %v7556_v9  ;;  %v7559_v25 = vpop.f32.mrb[194].mxu0 }
 0xb7e   : > { %v7560_v58 = vpop.f32.mrb[195].mxu0 }
 0xb7f   : > { %v6330_v63 = vadd.f32 %v7558_v12, %v10901_v34  ;;  %v7561_v14 = vadd.f32 %v7560_v58, %v7559_v25 }
 0xb81   : > { %v6462_v43 = vmax.f32 %v6330_v63, 0.0  ;;  %v6333_v33 = vadd.f32 %v7561_v14, %v10901_v34 }
 0xb83   : > { %6686 = vst [vmem:[%s10614_s4 + $0x30] sm:$0xff] %v6462_v43  ;;  %v6469_v18 = vmax.f32 %v6333_v33, 0.0  ;;  %v7562_v59 = vpop.f32.mrb[196].mxu0 }
 0xb84   : > { %v7563_v28 = vpop.f32.mrb[197].mxu0 }
 0xb85   : > { %6693 = vst [vmem:[%s10614_s4 + $0x68] sm:$0xff] %v6469_v18  ;;  %v7564_v7 = vadd.f32 %v7563_v28, %v7562_v59  ;;  %v7565_v60 = vpop.f32.mrb[198].mxu0 }
 0xb86   : > { %v7566_v42 = vpop.f32.mrb[199].mxu0 }
 0xb87   : > { %v6338_v20 = vadd.f32 %v7564_v7, %v10901_v34  ;;  %v7567_v30 = vadd.f32 %v7566_v42, %v7565_v60 }
 0xb89   : > { %v6476_v10 = vmax.f32 %v6338_v20, 0.0  ;;  %v6341_v61 = vadd.f32 %v7567_v30, %v10901_v34 }
 0xb8b   : > { %6700 = vst [vmem:[%s10614_s4 + $0xa0] sm:$0xff] %v6476_v10  ;;  %v6483_v62 = vmax.f32 %v6341_v61, 0.0  ;;  %v7568_v36 = vpop.f32.mrb[200].mxu0 }
 0xb8c   : > { %v7569_v53 = vpop.f32.mrb[201].mxu0 }
 0xb8d   : > { %6707 = vst [vmem:[%s10614_s4 + $0xd8] sm:$0xff] %v6483_v62  ;;  %v7570_v54 = vadd.f32 %v7569_v53, %v7568_v36  ;;  %v7571_v1 = vpop.f32.mrb[202].mxu0 }
 0xb8e   : > { %v7572_v5 = vpop.f32.mrb[203].mxu0 }
 0xb8f   : > { %v6346_v17 = vadd.f32 %v7570_v54, %v10901_v34  ;;  %v7573_v4 = vadd.f32 %v7572_v5, %v7571_v1 }
 0xb91   : > { %v6490_v22 = vmax.f32 %v6346_v17, 0.0  ;;  %v6349_v11 = vadd.f32 %v7573_v4, %v10901_v34 }
 0xb93   : > { %6714 = vst [vmem:[%s10614_s4 + $0x110] sm:$0xff] %v6490_v22  ;;  %v6497_v39 = vmax.f32 %v6349_v11, 0.0  ;;  %v7574_v6 = vpop.f32.mrb[204].mxu0 }
 0xb94   : > { %v7575_v46 = vpop.f32.mrb[205].mxu0 }
 0xb95   : > { %6721 = vst [vmem:[%s10614_s4 + $0x148] sm:$0xff] %v6497_v39  ;;  %v7576_v31 = vadd.f32 %v7575_v46, %v7574_v6  ;;  %v7577_v15 = vpop.f32.mrb[206].mxu0 }
 0xb96   : > { %v7578_v49 = vpop.f32.mrb[207].mxu0 }
 0xb97   : > { %v6354_v32 = vadd.f32 %v7576_v31, %v10901_v34  ;;  %v7579_v24 = vadd.f32 %v7578_v49, %v7577_v15 }
 0xb99   : > { %v6504_v55 = vmax.f32 %v6354_v32, 0.0  ;;  %v6357_v37 = vadd.f32 %v7579_v24, %v10901_v34 }
 0xb9b   : > { %6728 = vst [vmem:[%s10614_s4 + $0x180] sm:$0xff] %v6504_v55  ;;  %v6511_v56 = vmax.f32 %v6357_v37, 0.0  ;;  %v7580_v41 = vpop.f32.mrb[208].mxu0 }
 0xb9c   : > { %v7581_v50 = vpop.f32.mrb[209].mxu0 }
 0xb9d   : > { %6735 = vst [vmem:[%s10614_s4 + $0x1b8] sm:$0xff] %v6511_v56  ;;  %v7582_v47 = vadd.f32 %v7581_v50, %v7580_v41  ;;  %v7583_v0 = vpop.f32.mrb[210].mxu0 }
 0xb9e   : > { %v7584_v40 = vpop.f32.mrb[211].mxu0 }
 0xb9f   : > { %v6362_v3 = vadd.f32 %v7582_v47, %v10901_v34  ;;  %v7585_v26 = vadd.f32 %v7584_v40, %v7583_v0 }
 0xba1   : > { %v6518_v38 = vmax.f32 %v6362_v3, 0.0  ;;  %v6365_v45 = vadd.f32 %v7585_v26, %v10901_v34 }
 0xba3   : > { %6742 = vst [vmem:[%s10614_s4 + $0x1f0] sm:$0xff] %v6518_v38  ;;  %v6525_v52 = vmax.f32 %v6365_v45, 0.0  ;;  %v7586_v57 = vpop.f32.mrb[212].mxu0 }
 0xba4   : > { %v7587_v2 = vpop.f32.mrb[213].mxu0 }
 0xba5   : > { %6749 = vst [vmem:[%s10614_s4 + $0x228] sm:$0xff] %v6525_v52  ;;  %v7588_v44 = vadd.f32 %v7587_v2, %v7586_v57  ;;  %v7589_v21 = vpop.f32.mrb[214].mxu0 }
 0xba6   : > { %v7590_v23 = vpop.f32.mrb[215].mxu0 }
 0xba7   : > { %v6370_v13 = vadd.f32 %v7588_v44, %v10901_v34  ;;  %v7591_v8 = vadd.f32 %v7590_v23, %v7589_v21 }
 0xba9   : > { %v6532_v16 = vmax.f32 %v6370_v13, 0.0  ;;  %v6373_v29 = vadd.f32 %v7591_v8, %v10901_v34 }
 0xbab   : > { %6756 = vst [vmem:[%s10614_s4 + $0x260] sm:$0xff] %v6532_v16  ;;  %v6539_v35 = vmax.f32 %v6373_v29, 0.0 }
 0xbad   : > { %6763 = vst [vmem:[%s10614_s4 + $0x298] sm:$0xff] %v6539_v35 }
 0xbae PF: > { %s31_s2 = sadd.s32 1, %s8645_s2  }
 0xbaf   : > { %p28_p4 = scmp.ge.s32.totalorder %s31_s2, 4  }
 0xbb1   :  { %30 = sbr.rel (!%p28_p4) target bundleno = 7 (0x7), region = 134 }

</bundles_post_ra>
